<compile_context>
chip_gen: v5e
topology: v5e:2x2
jax: 0.10.0
libtpu: 0.0.40
codegen_flags: <defaults>
</compile_context>

<pallas_src>
import functools
from types import SimpleNamespace

import jax
import jax.numpy as jnp
from jax.experimental import pallas as pl
from jax.experimental.pallas import tpu as pltpu

LEAKY_SLOPE = 0.01     # nn.LeakyReLU default negative_slope
COS_EPS = 1e-8         # F.cosine_similarity default eps


# ----------------------------------------------------------------------------- config

def conv_config(hp):
    Z = hp.z_dim
    LS = hp.latent_dim if hp.latent_dim != 0 else Z
    # (C_in, C_out, kernel, stride, has_bn_and_act) -- mirrors the nn.Sequential encoder.
    return [
        (1, LS, 10, 5, True),
        (LS, LS, 8, 4, True),
        (LS, LS, 4, 2, True),
        (LS, LS, 4, 2, True),
        (LS, Z, 4, 2, False),
    ]


def _conv_out_lengths(T_wav, cfg):
    lens, L = [], T_wav
    for (_ci, _co, K, st, _act) in cfg:
        L = (L - K) // st + 1
        lens.append(L)
    return lens


def _multi_tensorcore_chip():
    """True for chips with >1 TensorCore per device (v4/v5p megacore, v7x)."""
    try:
        kind = jax.devices()[0].device_kind.lower()
    except Exception:
        return False
    return any(m in kind for m in ("v4", "v5p", "7"))


# ----------------------------------------------------------------------------- kernel

def _fused_forward_kernel(*args, cfg, L_outs, pred_steps, cosine_coef, has_proj,
                          bs, lmax_pad):
    """Processes `bs` batch elements per grid step; everything stays in VMEM / registers."""
    n_layers = len(cfg)
    p0_ref = args[0]                                   # (bs, L0, K0) prebuilt layer-0 im2col
    layer_w = [args[1 + 2 * i] for i in range(n_layers)]
    layer_s = [args[2 + 2 * i] for i in range(n_layers)]
    idx = 1 + 2 * n_layers
    if has_proj:
        wp_ref, bp_ref = args[idx], args[idx + 1]
        idx += 2
    o_ref = args[idx]                                  # (bs, 1, total_cols) lane-dense scores
    act_ref = args[idx + 1]                            # (bs*lmax_pad, LS) VMEM activation scratch

    Tp = L_outs[-1]
    rows = []
    for b in range(bs):
        # ---- layer 0: prebuilt im2col patches -> single dot ----
        x = jnp.dot(p0_ref[b], layer_w[0][...], preferred_element_type=jnp.float32)
        x = x + layer_s[0][...]                        # BN shift (scale folded into W)
        x = jnp.maximum(x, LEAKY_SLOPE * x)            # LeakyReLU(0.01)

        base = b * lmax_pad
        for i in range(1, n_layers):
            cin, _cout, K, st, has_act = cfg[i]
            L_in, L_out = L_outs[i - 1], L_outs[i]
            act_ref[base:base + L_in, :] = x           # keep activation in VMEM
            # conv as K per-tap accumulating matmuls (no im2col lane concat, MXU has slack).
            y = None
            for k in range(K):
                piece = act_ref[pl.ds(base + k, L_out, stride=st), :]      # (L_out, C_in)
                wk = layer_w[i][k * cin:(k + 1) * cin, :]                  # (C_in, C_out)
                part = jnp.dot(piece, wk, preferred_element_type=jnp.float32)
                y = part if y is None else y + part
            y = y + layer_s[i][...]
            if has_act:
                y = jnp.maximum(y, LEAKY_SLOPE * y)
            x = y

        z = x                                          # (Tp, Z) channels-last
        if has_proj:                                   # Dropout2d is identity in eval
            z = jnp.dot(z, wp_ref[...], preferred_element_type=jnp.float32) + bp_ref[...]

        # Put time on the lane axis so reductions produce lane-dense (1, T) scores directly.
        zt = jnp.transpose(z)                          # (C, Tp)

        # Hoisted per-frame sum-of-squares / clamped norms (reused by every pred step).
        ss = jnp.sum(zt * zt, axis=0, keepdims=True)   # (1, Tp)
        cl = jnp.maximum(jnp.sqrt(ss), COS_EPS)        # (1, Tp)

        segs = []
        for t in pred_steps:
            Tt = Tp - t
            dot_t = jnp.sum(zt[:, :Tt] * zt[:, t:t + Tt], axis=0, keepdims=True)
            # positive: cosine(z[:Tt], z[t:t+Tt]) * coef
            segs.append(dot_t / (cl[:, :Tt] * cl[:, t:t + Tt]) * cosine_coef)
            # eval-mode negative is cosine(a, a): reconstruct from ss (exact eps-clamp match),
            # no second dot/sqrt pass.
            segs.append(ss[:, :Tt] / (cl[:, :Tt] * cl[:, :Tt]) * cosine_coef)
        rows.append(jnp.concatenate(segs, axis=-1))    # (1, total_cols)

    # ONE full-block lane-dense store.
    o_ref[...] = jnp.stack(rows, axis=0)               # (bs, 1, total_cols)


# ----------------------------------------------------------------------------- params

def init_params(hp, key):
    """Random params in kernel-ready layout: BN scale folded into the (K*C_in, C_out) weights."""
    params = {}
    for i, (cin, cout, K, _st, has_bn) in enumerate(conv_config(hp)):
        key, k1, k2, k3, k4, k5 = jax.random.split(key, 6)
        w = jax.random.normal(k1, (cout, cin, K), jnp.float32) * (1.0 / (cin * K) ** 0.5)
        wmat = jnp.transpose(w, (2, 1, 0)).reshape(K * cin, cout)   # (k outer, c_in inner, c_out)
        if has_bn:
            gamma = jax.random.uniform(k2, (cout,), jnp.float32, 0.8, 1.2)
            beta = jax.random.normal(k3, (cout,), jnp.float32) * 0.1
            rmean = jax.random.normal(k4, (cout,), jnp.float32) * 0.1
            rvar = jax.random.uniform(k5, (cout,), jnp.float32, 0.8, 1.2)
            scale = gamma / jnp.sqrt(rvar + 1e-5)                   # eval-mode BN fold
            shift = beta - rmean * scale
        else:
            scale = jnp.ones((cout,), jnp.float32)
            shift = jnp.zeros((cout,), jnp.float32)
        params[f"conv{i}"] = dict(w=wmat * scale[None, :], shift=shift.reshape(1, cout))
    if hp.z_proj != 0:
        key, k1, k2 = jax.random.split(key, 3)
        wl = jax.random.normal(k1, (hp.z_proj, hp.z_dim), jnp.float32) * (1.0 / hp.z_dim ** 0.5)
        bl = jax.random.normal(k2, (hp.z_proj,), jnp.float32) * 0.1
        params["z_proj"] = dict(w=wl.T, shift=bl.reshape(1, hp.z_proj))
    return params


# ----------------------------------------------------------------------------- forward

def next_frame_classifier_forward(spect, params, hp):
    """spect: (B, T_wav) float32. Returns {t: [pos_pred, neg_pred x n_negatives]} of (B, T'-t)."""
    B, T_wav = spect.shape
    cfg = conv_config(hp)
    L_outs = _conv_out_lengths(T_wav, cfg)
    Tp = L_outs[-1]
    LS = cfg[0][1]
    _cin0, _co0, K0, s0, _a0 = cfg[0]
    L0 = L_outs[0]

    # Layer-0 im2col built in the wrapper (XLA): (B, L0, K0) lane-dense patches,
    # wider HBM->VMEM DMA rows and no in-kernel lane concat.
    patches0 = jnp.stack(
        [spect[:, k:k + (L0 - 1) * s0 + 1:s0] for k in range(K0)], axis=-1)

    pred_steps = list(range(1 + hp.pred_offset, 1 + hp.pred_offset + hp.pred_steps))
    seg = [Tp - t for t in pred_steps]
    total_cols = 2 * sum(seg)            # packed lane-dense [pos_t, neg_t] per prediction step
    has_proj = hp.z_proj != 0

    # Single-TC chips (v5e/v6e): fold the batch into one grid step (no per-step overhead).
    # Multi-TC chips (v7x/v4/v5p): one batch element per grid step, sharded across cores.
    bs = 1 if (_multi_tensorcore_chip() and B > 1) else B
    grid = (B // bs,)
    lmax_pad = (L_outs[0] + 7) // 8 * 8  # sublane-aligned per-batch stride in the act scratch

    args = [patches0]
    in_specs = [pl.BlockSpec((bs, L0, K0), lambda g: (g, 0, 0))]

    def add_resident(arr):               # full-array block, identical for every grid step
        args.append(arr)
        in_specs.append(pl.BlockSpec(arr.shape, lambda g: (0, 0)))

    for i in range(len(cfg)):
        add_resident(params[f"conv{i}"]["w"])
        add_resident(params[f"conv{i}"]["shift"])
    if has_proj:
        add_resident(params["z_proj"]["w"])
        add_resident(params["z_proj"]["shift"])

    kernel = functools.partial(
        _fused_forward_kernel,
        cfg=tuple(cfg), L_outs=tuple(L_outs), pred_steps=tuple(pred_steps),
        cosine_coef=float(hp.cosine_coef), has_proj=has_proj,
        bs=bs, lmax_pad=lmax_pad)

    scores = pl.pallas_call(
        kernel,
        out_shape=jax.ShapeDtypeStruct((B, 1, total_cols), jnp.float32),
        grid=grid,
        in_specs=in_specs,
        out_specs=pl.BlockSpec((bs, 1, total_cols), lambda g: (g, 0, 0)),
        scratch_shapes=[pltpu.VMEM((bs * lmax_pad, LS), jnp.float32)],
        compiler_params=pltpu.CompilerParams(dimension_semantics=("parallel",)),
    )(*args)

    preds = {}
    off = 0
    for t, Tt in zip(pred_steps, seg):
        pos = scores[:, 0, off:off + Tt]
        neg = scores[:, 0, off + Tt:off + 2 * Tt]
        off += 2 * Tt
        # eval-mode negatives are all identical (arange reorder) -> compute once, reuse.
        preds[t] = [pos] + [neg] * hp.n_negatives
    return preds


# ----------------------------------------------------------------------------- main

if __name__ == "__main__":
    hp = SimpleNamespace(
        z_dim=32, latent_dim=0,
        z_proj=32, z_proj_linear=True, z_proj_dropout=0.0,
        pred_steps=1, pred_offset=0, n_negatives=1,
        cosine_coef=1.0, batch_shuffle=False,
    )
    key = jax.random.PRNGKey(0)
    key, kparams, kx = jax.random.split(key, 3)
    params = init_params(hp, kparams)

    # T_wav = 1585 -> conv stack output length T' = 8 frames.
    spect = jax.random.normal(kx, (2, 1585), dtype=jnp.float32)

    forward = jax.jit(lambda s, p: next_frame_classifier_forward(s, p, hp))
    preds = forward(spect, params)

    for t, t_preds in preds.items():
        assert len(t_preds) == 1 + hp.n_negatives
        for p in t_preds:
            jax.block_until_ready(p)
            assert p.shape == (2, 8 - t) and p.dtype == jnp.float32

    print("KERNEL_OK")
</pallas_src>

<mosaic_0001>
module attributes {stable_mosaic.version = 11 : i64} {
  func.func @_fused_forward_kernel(%arg0: i32, %arg1: memref<2x316x10xf32, #tpu.memory_space<vmem>>, %arg2: memref<10x32xf32, #tpu.memory_space<vmem>>, %arg3: memref<1x32xf32, #tpu.memory_space<vmem>>, %arg4: memref<256x32xf32, #tpu.memory_space<vmem>>, %arg5: memref<1x32xf32, #tpu.memory_space<vmem>>, %arg6: memref<128x32xf32, #tpu.memory_space<vmem>>, %arg7: memref<1x32xf32, #tpu.memory_space<vmem>>, %arg8: memref<128x32xf32, #tpu.memory_space<vmem>>, %arg9: memref<1x32xf32, #tpu.memory_space<vmem>>, %arg10: memref<128x32xf32, #tpu.memory_space<vmem>>, %arg11: memref<1x32xf32, #tpu.memory_space<vmem>>, %arg12: memref<32x32xf32, #tpu.memory_space<vmem>>, %arg13: memref<1x32xf32, #tpu.memory_space<vmem>>, %arg14: memref<2x1x14xf32, #tpu.memory_space<vmem>>, %arg15: memref<640x32xf32, #tpu.memory_space<vmem>>) attributes {dimension_semantics = [#tpu.dimension_semantics<parallel>], iteration_bounds = array<i64: 1>, scalar_prefetch = 0 : i64, scratch_operands = 1 : i64, tpu.core_type = #tpu.core_type<tc>, window_params = [{transform_indices = @transform_0, window_bounds = array<i64: 2, 316, 10>}, {pipeline_mode = #tpu.pipeline_mode<synchronous>, transform_indices = @transform_1, window_bounds = array<i64: 10, 32>}, {pipeline_mode = #tpu.pipeline_mode<synchronous>, transform_indices = @transform_2, window_bounds = array<i64: 1, 32>}, {pipeline_mode = #tpu.pipeline_mode<synchronous>, transform_indices = @transform_3, window_bounds = array<i64: 256, 32>}, {pipeline_mode = #tpu.pipeline_mode<synchronous>, transform_indices = @transform_4, window_bounds = array<i64: 1, 32>}, {pipeline_mode = #tpu.pipeline_mode<synchronous>, transform_indices = @transform_5, window_bounds = array<i64: 128, 32>}, {pipeline_mode = #tpu.pipeline_mode<synchronous>, transform_indices = @transform_6, window_bounds = array<i64: 1, 32>}, {pipeline_mode = #tpu.pipeline_mode<synchronous>, transform_indices = @transform_7, window_bounds = array<i64: 128, 32>}, {pipeline_mode = #tpu.pipeline_mode<synchronous>, transform_indices = @transform_8, window_bounds = array<i64: 1, 32>}, {pipeline_mode = #tpu.pipeline_mode<synchronous>, transform_indices = @transform_9, window_bounds = array<i64: 128, 32>}, {pipeline_mode = #tpu.pipeline_mode<synchronous>, transform_indices = @transform_10, window_bounds = array<i64: 1, 32>}, {pipeline_mode = #tpu.pipeline_mode<synchronous>, transform_indices = @transform_11, window_bounds = array<i64: 32, 32>}, {pipeline_mode = #tpu.pipeline_mode<synchronous>, transform_indices = @transform_12, window_bounds = array<i64: 1, 32>}, {transform_indices = @transform_13, window_bounds = array<i64: 2, 1, 14>}]} {
    %c0 = arith.constant 0 : index
    %c0_0 = arith.constant 0 : index
    %c0_1 = arith.constant 0 : index
    %0 = vector.load %arg1[%c0, %c0_0, %c0_1] : memref<2x316x10xf32, #tpu.memory_space<vmem>>, vector<1x316x10xf32>
    %1 = vector.shape_cast %0 : vector<1x316x10xf32> to vector<316x10xf32>
    %c0_2 = arith.constant 0 : index
    %c0_3 = arith.constant 0 : index
    %2 = vector.load %arg2[%c0_2, %c0_3] : memref<10x32xf32, #tpu.memory_space<vmem>>, vector<10x32xf32>
    %cst = arith.constant dense<0.000000e+00> : vector<316x32xf32>
    %3 = tpu.matmul %1, %2, %cst {dimension_numbers = #tpu.dot_dimension_numbers<[1], [0], [0], [1], [0, 0, 1, 1], [], []>} : vector<316x10xf32>, vector<10x32xf32>, vector<316x32xf32> -> vector<316x32xf32>
    %c0_4 = arith.constant 0 : index
    %c0_5 = arith.constant 0 : index
    %4 = vector.load %arg3[%c0_4, %c0_5] : memref<1x32xf32, #tpu.memory_space<vmem>>, vector<1x32xf32>
    %5 = vector.broadcast %4 : vector<1x32xf32> to vector<316x32xf32>
    %6 = arith.addf %3, %5 : vector<316x32xf32>
    %cst_6 = arith.constant 0.00999999977 : f32
    %7 = vector.broadcast %cst_6 : f32 to vector<316x32xf32>
    %8 = arith.mulf %7, %6 : vector<316x32xf32>
    %9 = arith.maximumf %6, %8 : vector<316x32xf32>
    %c0_7 = arith.constant 0 : index
    %c0_8 = arith.constant 0 : index
    %10 = vector.load %arg15[%c0_7, %c0_8] : memref<640x32xf32, #tpu.memory_space<vmem>>, vector<316x32xf32>
    tpu.vector_store %arg15[%c0_7, %c0_8], %9 {strides = array<i32>} : memref<640x32xf32, #tpu.memory_space<vmem>>, vector<316x32xf32>,
    %c0_9 = arith.constant 0 : index
    %c0_10 = arith.constant 0 : index
    %11 = tpu.strided_load %arg15[%c0_9, %c0_10] {strides = array<i32: 4, 1>} : memref<640x32xf32, #tpu.memory_space<vmem>>, vector<78x32xf32>
    %c0_11 = arith.constant 0 : index
    %c0_12 = arith.constant 0 : index
    %12 = vector.load %arg4[%c0_11, %c0_12] : memref<256x32xf32, #tpu.memory_space<vmem>>, vector<32x32xf32>
    %cst_13 = arith.constant dense<0.000000e+00> : vector<78x32xf32>
    %13 = tpu.matmul %11, %12, %cst_13 {dimension_numbers = #tpu.dot_dimension_numbers<[1], [0], [0], [1], [0, 0, 1, 1], [], []>} : vector<78x32xf32>, vector<32x32xf32>, vector<78x32xf32> -> vector<78x32xf32>
    %c1 = arith.constant 1 : index
    %c0_14 = arith.constant 0 : index
    %14 = tpu.strided_load %arg15[%c1, %c0_14] {strides = array<i32: 4, 1>} : memref<640x32xf32, #tpu.memory_space<vmem>>, vector<78x32xf32>
    %c32 = arith.constant 32 : index
    %c0_15 = arith.constant 0 : index
    %15 = vector.load %arg4[%c32, %c0_15] : memref<256x32xf32, #tpu.memory_space<vmem>>, vector<32x32xf32>
    %cst_16 = arith.constant dense<0.000000e+00> : vector<78x32xf32>
    %16 = tpu.matmul %14, %15, %cst_16 {dimension_numbers = #tpu.dot_dimension_numbers<[1], [0], [0], [1], [0, 0, 1, 1], [], []>} : vector<78x32xf32>, vector<32x32xf32>, vector<78x32xf32> -> vector<78x32xf32>
    %17 = arith.addf %13, %16 : vector<78x32xf32>
    %c2 = arith.constant 2 : index
    %c0_17 = arith.constant 0 : index
    %18 = tpu.strided_load %arg15[%c2, %c0_17] {strides = array<i32: 4, 1>} : memref<640x32xf32, #tpu.memory_space<vmem>>, vector<78x32xf32>
    %c64 = arith.constant 64 : index
    %c0_18 = arith.constant 0 : index
    %19 = vector.load %arg4[%c64, %c0_18] : memref<256x32xf32, #tpu.memory_space<vmem>>, vector<32x32xf32>
    %cst_19 = arith.constant dense<0.000000e+00> : vector<78x32xf32>
    %20 = tpu.matmul %18, %19, %cst_19 {dimension_numbers = #tpu.dot_dimension_numbers<[1], [0], [0], [1], [0, 0, 1, 1], [], []>} : vector<78x32xf32>, vector<32x32xf32>, vector<78x32xf32> -> vector<78x32xf32>
    %21 = arith.addf %17, %20 : vector<78x32xf32>
    %c3 = arith.constant 3 : index
    %c0_20 = arith.constant 0 : index
    %22 = tpu.strided_load %arg15[%c3, %c0_20] {strides = array<i32: 4, 1>} : memref<640x32xf32, #tpu.memory_space<vmem>>, vector<78x32xf32>
    %c96 = arith.constant 96 : index
    %c0_21 = arith.constant 0 : index
    %23 = vector.load %arg4[%c96, %c0_21] : memref<256x32xf32, #tpu.memory_space<vmem>>, vector<32x32xf32>
    %cst_22 = arith.constant dense<0.000000e+00> : vector<78x32xf32>
    %24 = tpu.matmul %22, %23, %cst_22 {dimension_numbers = #tpu.dot_dimension_numbers<[1], [0], [0], [1], [0, 0, 1, 1], [], []>} : vector<78x32xf32>, vector<32x32xf32>, vector<78x32xf32> -> vector<78x32xf32>
    %25 = arith.addf %21, %24 : vector<78x32xf32>
    %c4 = arith.constant 4 : index
    %c0_23 = arith.constant 0 : index
    %26 = tpu.strided_load %arg15[%c4, %c0_23] {strides = array<i32: 4, 1>} : memref<640x32xf32, #tpu.memory_space<vmem>>, vector<78x32xf32>
    %c128 = arith.constant 128 : index
    %c0_24 = arith.constant 0 : index
    %27 = vector.load %arg4[%c128, %c0_24] : memref<256x32xf32, #tpu.memory_space<vmem>>, vector<32x32xf32>
    %cst_25 = arith.constant dense<0.000000e+00> : vector<78x32xf32>
    %28 = tpu.matmul %26, %27, %cst_25 {dimension_numbers = #tpu.dot_dimension_numbers<[1], [0], [0], [1], [0, 0, 1, 1], [], []>} : vector<78x32xf32>, vector<32x32xf32>, vector<78x32xf32> -> vector<78x32xf32>
    %29 = arith.addf %25, %28 : vector<78x32xf32>
    %c5 = arith.constant 5 : index
    %c0_26 = arith.constant 0 : index
    %30 = tpu.strided_load %arg15[%c5, %c0_26] {strides = array<i32: 4, 1>} : memref<640x32xf32, #tpu.memory_space<vmem>>, vector<78x32xf32>
    %c160 = arith.constant 160 : index
    %c0_27 = arith.constant 0 : index
    %31 = vector.load %arg4[%c160, %c0_27] : memref<256x32xf32, #tpu.memory_space<vmem>>, vector<32x32xf32>
    %cst_28 = arith.constant dense<0.000000e+00> : vector<78x32xf32>
    %32 = tpu.matmul %30, %31, %cst_28 {dimension_numbers = #tpu.dot_dimension_numbers<[1], [0], [0], [1], [0, 0, 1, 1], [], []>} : vector<78x32xf32>, vector<32x32xf32>, vector<78x32xf32> -> vector<78x32xf32>
    %33 = arith.addf %29, %32 : vector<78x32xf32>
    %c6 = arith.constant 6 : index
    %c0_29 = arith.constant 0 : index
    %34 = tpu.strided_load %arg15[%c6, %c0_29] {strides = array<i32: 4, 1>} : memref<640x32xf32, #tpu.memory_space<vmem>>, vector<78x32xf32>
    %c192 = arith.constant 192 : index
    %c0_30 = arith.constant 0 : index
    %35 = vector.load %arg4[%c192, %c0_30] : memref<256x32xf32, #tpu.memory_space<vmem>>, vector<32x32xf32>
    %cst_31 = arith.constant dense<0.000000e+00> : vector<78x32xf32>
    %36 = tpu.matmul %34, %35, %cst_31 {dimension_numbers = #tpu.dot_dimension_numbers<[1], [0], [0], [1], [0, 0, 1, 1], [], []>} : vector<78x32xf32>, vector<32x32xf32>, vector<78x32xf32> -> vector<78x32xf32>
    %37 = arith.addf %33, %36 : vector<78x32xf32>
    %c7 = arith.constant 7 : index
    %c0_32 = arith.constant 0 : index
    %38 = tpu.strided_load %arg15[%c7, %c0_32] {strides = array<i32: 4, 1>} : memref<640x32xf32, #tpu.memory_space<vmem>>, vector<78x32xf32>
    %c224 = arith.constant 224 : index
    %c0_33 = arith.constant 0 : index
    %39 = vector.load %arg4[%c224, %c0_33] : memref<256x32xf32, #tpu.memory_space<vmem>>, vector<32x32xf32>
    %cst_34 = arith.constant dense<0.000000e+00> : vector<78x32xf32>
    %40 = tpu.matmul %38, %39, %cst_34 {dimension_numbers = #tpu.dot_dimension_numbers<[1], [0], [0], [1], [0, 0, 1, 1], [], []>} : vector<78x32xf32>, vector<32x32xf32>, vector<78x32xf32> -> vector<78x32xf32>
    %41 = arith.addf %37, %40 : vector<78x32xf32>
    %c0_35 = arith.constant 0 : index
    %c0_36 = arith.constant 0 : index
    %42 = vector.load %arg5[%c0_35, %c0_36] : memref<1x32xf32, #tpu.memory_space<vmem>>, vector<1x32xf32>
    %43 = vector.broadcast %42 : vector<1x32xf32> to vector<78x32xf32>
    %44 = arith.addf %41, %43 : vector<78x32xf32>
    %cst_37 = arith.constant 0.00999999977 : f32
    %45 = vector.broadcast %cst_37 : f32 to vector<78x32xf32>
    %46 = arith.mulf %45, %44 : vector<78x32xf32>
    %47 = arith.maximumf %44, %46 : vector<78x32xf32>
    %c0_38 = arith.constant 0 : index
    %c0_39 = arith.constant 0 : index
    %48 = vector.load %arg15[%c0_38, %c0_39] : memref<640x32xf32, #tpu.memory_space<vmem>>, vector<78x32xf32>
    tpu.vector_store %arg15[%c0_38, %c0_39], %47 {strides = array<i32>} : memref<640x32xf32, #tpu.memory_space<vmem>>, vector<78x32xf32>,
    %c0_40 = arith.constant 0 : index
    %c0_41 = arith.constant 0 : index
    %49 = tpu.strided_load %arg15[%c0_40, %c0_41] {strides = array<i32: 2, 1>} : memref<640x32xf32, #tpu.memory_space<vmem>>, vector<38x32xf32>
    %c0_42 = arith.constant 0 : index
    %c0_43 = arith.constant 0 : index
    %50 = vector.load %arg6[%c0_42, %c0_43] : memref<128x32xf32, #tpu.memory_space<vmem>>, vector<32x32xf32>
    %cst_44 = arith.constant dense<0.000000e+00> : vector<38x32xf32>
    %51 = tpu.matmul %49, %50, %cst_44 {dimension_numbers = #tpu.dot_dimension_numbers<[1], [0], [0], [1], [0, 0, 1, 1], [], []>} : vector<38x32xf32>, vector<32x32xf32>, vector<38x32xf32> -> vector<38x32xf32>
    %c1_45 = arith.constant 1 : index
    %c0_46 = arith.constant 0 : index
    %52 = tpu.strided_load %arg15[%c1_45, %c0_46] {strides = array<i32: 2, 1>} : memref<640x32xf32, #tpu.memory_space<vmem>>, vector<38x32xf32>
    %c32_47 = arith.constant 32 : index
    %c0_48 = arith.constant 0 : index
    %53 = vector.load %arg6[%c32_47, %c0_48] : memref<128x32xf32, #tpu.memory_space<vmem>>, vector<32x32xf32>
    %cst_49 = arith.constant dense<0.000000e+00> : vector<38x32xf32>
    %54 = tpu.matmul %52, %53, %cst_49 {dimension_numbers = #tpu.dot_dimension_numbers<[1], [0], [0], [1], [0, 0, 1, 1], [], []>} : vector<38x32xf32>, vector<32x32xf32>, vector<38x32xf32> -> vector<38x32xf32>
    %55 = arith.addf %51, %54 : vector<38x32xf32>
    %c2_50 = arith.constant 2 : index
    %c0_51 = arith.constant 0 : index
    %56 = tpu.strided_load %arg15[%c2_50, %c0_51] {strides = array<i32: 2, 1>} : memref<640x32xf32, #tpu.memory_space<vmem>>, vector<38x32xf32>
    %c64_52 = arith.constant 64 : index
    %c0_53 = arith.constant 0 : index
    %57 = vector.load %arg6[%c64_52, %c0_53] : memref<128x32xf32, #tpu.memory_space<vmem>>, vector<32x32xf32>
    %cst_54 = arith.constant dense<0.000000e+00> : vector<38x32xf32>
    %58 = tpu.matmul %56, %57, %cst_54 {dimension_numbers = #tpu.dot_dimension_numbers<[1], [0], [0], [1], [0, 0, 1, 1], [], []>} : vector<38x32xf32>, vector<32x32xf32>, vector<38x32xf32> -> vector<38x32xf32>
    %59 = arith.addf %55, %58 : vector<38x32xf32>
    %c3_55 = arith.constant 3 : index
    %c0_56 = arith.constant 0 : index
    %60 = tpu.strided_load %arg15[%c3_55, %c0_56] {strides = array<i32: 2, 1>} : memref<640x32xf32, #tpu.memory_space<vmem>>, vector<38x32xf32>
    %c96_57 = arith.constant 96 : index
    %c0_58 = arith.constant 0 : index
    %61 = vector.load %arg6[%c96_57, %c0_58] : memref<128x32xf32, #tpu.memory_space<vmem>>, vector<32x32xf32>
    %cst_59 = arith.constant dense<0.000000e+00> : vector<38x32xf32>
    %62 = tpu.matmul %60, %61, %cst_59 {dimension_numbers = #tpu.dot_dimension_numbers<[1], [0], [0], [1], [0, 0, 1, 1], [], []>} : vector<38x32xf32>, vector<32x32xf32>, vector<38x32xf32> -> vector<38x32xf32>
    %63 = arith.addf %59, %62 : vector<38x32xf32>
    %c0_60 = arith.constant 0 : index
    %c0_61 = arith.constant 0 : index
    %64 = vector.load %arg7[%c0_60, %c0_61] : memref<1x32xf32, #tpu.memory_space<vmem>>, vector<1x32xf32>
    %65 = vector.broadcast %64 : vector<1x32xf32> to vector<38x32xf32>
    %66 = arith.addf %63, %65 : vector<38x32xf32>
    %cst_62 = arith.constant 0.00999999977 : f32
    %67 = vector.broadcast %cst_62 : f32 to vector<38x32xf32>
    %68 = arith.mulf %67, %66 : vector<38x32xf32>
    %69 = arith.maximumf %66, %68 : vector<38x32xf32>
    %c0_63 = arith.constant 0 : index
    %c0_64 = arith.constant 0 : index
    %70 = vector.load %arg15[%c0_63, %c0_64] : memref<640x32xf32, #tpu.memory_space<vmem>>, vector<38x32xf32>
    tpu.vector_store %arg15[%c0_63, %c0_64], %69 {strides = array<i32>} : memref<640x32xf32, #tpu.memory_space<vmem>>, vector<38x32xf32>,
    %c0_65 = arith.constant 0 : index
    %c0_66 = arith.constant 0 : index
    %71 = tpu.strided_load %arg15[%c0_65, %c0_66] {strides = array<i32: 2, 1>} : memref<640x32xf32, #tpu.memory_space<vmem>>, vector<18x32xf32>
    %c0_67 = arith.constant 0 : index
    %c0_68 = arith.constant 0 : index
    %72 = vector.load %arg8[%c0_67, %c0_68] : memref<128x32xf32, #tpu.memory_space<vmem>>, vector<32x32xf32>
    %cst_69 = arith.constant dense<0.000000e+00> : vector<18x32xf32>
    %73 = tpu.matmul %71, %72, %cst_69 {dimension_numbers = #tpu.dot_dimension_numbers<[1], [0], [0], [1], [0, 0, 1, 1], [], []>} : vector<18x32xf32>, vector<32x32xf32>, vector<18x32xf32> -> vector<18x32xf32>
    %c1_70 = arith.constant 1 : index
    %c0_71 = arith.constant 0 : index
    %74 = tpu.strided_load %arg15[%c1_70, %c0_71] {strides = array<i32: 2, 1>} : memref<640x32xf32, #tpu.memory_space<vmem>>, vector<18x32xf32>
    %c32_72 = arith.constant 32 : index
    %c0_73 = arith.constant 0 : index
    %75 = vector.load %arg8[%c32_72, %c0_73] : memref<128x32xf32, #tpu.memory_space<vmem>>, vector<32x32xf32>
    %cst_74 = arith.constant dense<0.000000e+00> : vector<18x32xf32>
    %76 = tpu.matmul %74, %75, %cst_74 {dimension_numbers = #tpu.dot_dimension_numbers<[1], [0], [0], [1], [0, 0, 1, 1], [], []>} : vector<18x32xf32>, vector<32x32xf32>, vector<18x32xf32> -> vector<18x32xf32>
    %77 = arith.addf %73, %76 : vector<18x32xf32>
    %c2_75 = arith.constant 2 : index
    %c0_76 = arith.constant 0 : index
    %78 = tpu.strided_load %arg15[%c2_75, %c0_76] {strides = array<i32: 2, 1>} : memref<640x32xf32, #tpu.memory_space<vmem>>, vector<18x32xf32>
    %c64_77 = arith.constant 64 : index
    %c0_78 = arith.constant 0 : index
    %79 = vector.load %arg8[%c64_77, %c0_78] : memref<128x32xf32, #tpu.memory_space<vmem>>, vector<32x32xf32>
    %cst_79 = arith.constant dense<0.000000e+00> : vector<18x32xf32>
    %80 = tpu.matmul %78, %79, %cst_79 {dimension_numbers = #tpu.dot_dimension_numbers<[1], [0], [0], [1], [0, 0, 1, 1], [], []>} : vector<18x32xf32>, vector<32x32xf32>, vector<18x32xf32> -> vector<18x32xf32>
    %81 = arith.addf %77, %80 : vector<18x32xf32>
    %c3_80 = arith.constant 3 : index
    %c0_81 = arith.constant 0 : index
    %82 = tpu.strided_load %arg15[%c3_80, %c0_81] {strides = array<i32: 2, 1>} : memref<640x32xf32, #tpu.memory_space<vmem>>, vector<18x32xf32>
    %c96_82 = arith.constant 96 : index
    %c0_83 = arith.constant 0 : index
    %83 = vector.load %arg8[%c96_82, %c0_83] : memref<128x32xf32, #tpu.memory_space<vmem>>, vector<32x32xf32>
    %cst_84 = arith.constant dense<0.000000e+00> : vector<18x32xf32>
    %84 = tpu.matmul %82, %83, %cst_84 {dimension_numbers = #tpu.dot_dimension_numbers<[1], [0], [0], [1], [0, 0, 1, 1], [], []>} : vector<18x32xf32>, vector<32x32xf32>, vector<18x32xf32> -> vector<18x32xf32>
    %85 = arith.addf %81, %84 : vector<18x32xf32>
    %c0_85 = arith.constant 0 : index
    %c0_86 = arith.constant 0 : index
    %86 = vector.load %arg9[%c0_85, %c0_86] : memref<1x32xf32, #tpu.memory_space<vmem>>, vector<1x32xf32>
    %87 = vector.broadcast %86 : vector<1x32xf32> to vector<18x32xf32>
    %88 = arith.addf %85, %87 : vector<18x32xf32>
    %cst_87 = arith.constant 0.00999999977 : f32
    %89 = vector.broadcast %cst_87 : f32 to vector<18x32xf32>
    %90 = arith.mulf %89, %88 : vector<18x32xf32>
    %91 = arith.maximumf %88, %90 : vector<18x32xf32>
    %c0_88 = arith.constant 0 : index
    %c0_89 = arith.constant 0 : index
    %92 = vector.load %arg15[%c0_88, %c0_89] : memref<640x32xf32, #tpu.memory_space<vmem>>, vector<18x32xf32>
    tpu.vector_store %arg15[%c0_88, %c0_89], %91 {strides = array<i32>} : memref<640x32xf32, #tpu.memory_space<vmem>>, vector<18x32xf32>,
    %c0_90 = arith.constant 0 : index
    %c0_91 = arith.constant 0 : index
    %93 = tpu.strided_load %arg15[%c0_90, %c0_91] {strides = array<i32: 2, 1>} : memref<640x32xf32, #tpu.memory_space<vmem>>, vector<8x32xf32>
    %c0_92 = arith.constant 0 : index
    %c0_93 = arith.constant 0 : index
    %94 = vector.load %arg10[%c0_92, %c0_93] : memref<128x32xf32, #tpu.memory_space<vmem>>, vector<32x32xf32>
    %cst_94 = arith.constant dense<0.000000e+00> : vector<8x32xf32>
    %95 = tpu.matmul %93, %94, %cst_94 {dimension_numbers = #tpu.dot_dimension_numbers<[1], [0], [0], [1], [0, 0, 1, 1], [], []>} : vector<8x32xf32>, vector<32x32xf32>, vector<8x32xf32> -> vector<8x32xf32>
    %c1_95 = arith.constant 1 : index
    %c0_96 = arith.constant 0 : index
    %96 = tpu.strided_load %arg15[%c1_95, %c0_96] {strides = array<i32: 2, 1>} : memref<640x32xf32, #tpu.memory_space<vmem>>, vector<8x32xf32>
    %c32_97 = arith.constant 32 : index
    %c0_98 = arith.constant 0 : index
    %97 = vector.load %arg10[%c32_97, %c0_98] : memref<128x32xf32, #tpu.memory_space<vmem>>, vector<32x32xf32>
    %cst_99 = arith.constant dense<0.000000e+00> : vector<8x32xf32>
    %98 = tpu.matmul %96, %97, %cst_99 {dimension_numbers = #tpu.dot_dimension_numbers<[1], [0], [0], [1], [0, 0, 1, 1], [], []>} : vector<8x32xf32>, vector<32x32xf32>, vector<8x32xf32> -> vector<8x32xf32>
    %99 = arith.addf %95, %98 : vector<8x32xf32>
    %c2_100 = arith.constant 2 : index
    %c0_101 = arith.constant 0 : index
    %100 = tpu.strided_load %arg15[%c2_100, %c0_101] {strides = array<i32: 2, 1>} : memref<640x32xf32, #tpu.memory_space<vmem>>, vector<8x32xf32>
    %c64_102 = arith.constant 64 : index
    %c0_103 = arith.constant 0 : index
    %101 = vector.load %arg10[%c64_102, %c0_103] : memref<128x32xf32, #tpu.memory_space<vmem>>, vector<32x32xf32>
    %cst_104 = arith.constant dense<0.000000e+00> : vector<8x32xf32>
    %102 = tpu.matmul %100, %101, %cst_104 {dimension_numbers = #tpu.dot_dimension_numbers<[1], [0], [0], [1], [0, 0, 1, 1], [], []>} : vector<8x32xf32>, vector<32x32xf32>, vector<8x32xf32> -> vector<8x32xf32>
    %103 = arith.addf %99, %102 : vector<8x32xf32>
    %c3_105 = arith.constant 3 : index
    %c0_106 = arith.constant 0 : index
    %104 = tpu.strided_load %arg15[%c3_105, %c0_106] {strides = array<i32: 2, 1>} : memref<640x32xf32, #tpu.memory_space<vmem>>, vector<8x32xf32>
    %c96_107 = arith.constant 96 : index
    %c0_108 = arith.constant 0 : index
    %105 = vector.load %arg10[%c96_107, %c0_108] : memref<128x32xf32, #tpu.memory_space<vmem>>, vector<32x32xf32>
    %cst_109 = arith.constant dense<0.000000e+00> : vector<8x32xf32>
    %106 = tpu.matmul %104, %105, %cst_109 {dimension_numbers = #tpu.dot_dimension_numbers<[1], [0], [0], [1], [0, 0, 1, 1], [], []>} : vector<8x32xf32>, vector<32x32xf32>, vector<8x32xf32> -> vector<8x32xf32>
    %107 = arith.addf %103, %106 : vector<8x32xf32>
    %c0_110 = arith.constant 0 : index
    %c0_111 = arith.constant 0 : index
    %108 = vector.load %arg11[%c0_110, %c0_111] : memref<1x32xf32, #tpu.memory_space<vmem>>, vector<1x32xf32>
    %109 = vector.broadcast %108 : vector<1x32xf32> to vector<8x32xf32>
    %110 = arith.addf %107, %109 : vector<8x32xf32>
    %c0_112 = arith.constant 0 : index
    %c0_113 = arith.constant 0 : index
    %111 = vector.load %arg12[%c0_112, %c0_113] : memref<32x32xf32, #tpu.memory_space<vmem>>, vector<32x32xf32>
    %cst_114 = arith.constant dense<0.000000e+00> : vector<8x32xf32>
    %112 = tpu.matmul %110, %111, %cst_114 {dimension_numbers = #tpu.dot_dimension_numbers<[1], [0], [0], [1], [0, 0, 1, 1], [], []>} : vector<8x32xf32>, vector<32x32xf32>, vector<8x32xf32> -> vector<8x32xf32>
    %c0_115 = arith.constant 0 : index
    %c0_116 = arith.constant 0 : index
    %113 = vector.load %arg13[%c0_115, %c0_116] : memref<1x32xf32, #tpu.memory_space<vmem>>, vector<1x32xf32>
    %114 = vector.broadcast %113 : vector<1x32xf32> to vector<8x32xf32>
    %115 = arith.addf %112, %114 : vector<8x32xf32>
    %116 = tpu.transpose %115, [1, 0] : vector<8x32xf32> -> vector<32x8xf32>
    %117 = arith.mulf %116, %116 : vector<32x8xf32>
    %cst_117 = arith.constant dense<0.000000e+00> : vector<8xf32>
    %118 = vector.multi_reduction <add>, %117, %cst_117 [0] : vector<32x8xf32> to vector<8xf32>
    %119 = vector.shape_cast %118 : vector<8xf32> to vector<1x8xf32>
    %120 = math.sqrt %119 : vector<1x8xf32>
    %cst_118 = arith.constant 9.99999993E-9 : f32
    %121 = vector.broadcast %cst_118 : f32 to vector<1x8xf32>
    %122 = arith.maximumf %120, %121 : vector<1x8xf32>
    %123 = vector.extract_strided_slice %116 {offsets = [0, 0], sizes = [32, 7], strides = [1, 1]} : vector<32x8xf32> to vector<32x7xf32>
    %124 = vector.extract_strided_slice %116 {offsets = [0, 1], sizes = [32, 7], strides = [1, 1]} : vector<32x8xf32> to vector<32x7xf32>
    %125 = arith.mulf %123, %124 : vector<32x7xf32>
    %cst_119 = arith.constant dense<0.000000e+00> : vector<7xf32>
    %126 = vector.multi_reduction <add>, %125, %cst_119 [0] : vector<32x7xf32> to vector<7xf32>
    %127 = vector.shape_cast %126 : vector<7xf32> to vector<1x7xf32>
    %128 = vector.extract_strided_slice %122 {offsets = [0, 0], sizes = [1, 7], strides = [1, 1]} : vector<1x8xf32> to vector<1x7xf32>
    %129 = vector.extract_strided_slice %122 {offsets = [0, 1], sizes = [1, 7], strides = [1, 1]} : vector<1x8xf32> to vector<1x7xf32>
    %130 = arith.mulf %128, %129 : vector<1x7xf32>
    %131 = arith.divf %127, %130 : vector<1x7xf32>
    %cst_120 = arith.constant 1.000000e+00 : f32
    %132 = vector.broadcast %cst_120 : f32 to vector<1x7xf32>
    %133 = arith.mulf %131, %132 : vector<1x7xf32>
    %134 = vector.extract_strided_slice %119 {offsets = [0, 0], sizes = [1, 7], strides = [1, 1]} : vector<1x8xf32> to vector<1x7xf32>
    %135 = vector.extract_strided_slice %122 {offsets = [0, 0], sizes = [1, 7], strides = [1, 1]} : vector<1x8xf32> to vector<1x7xf32>
    %136 = vector.extract_strided_slice %122 {offsets = [0, 0], sizes = [1, 7], strides = [1, 1]} : vector<1x8xf32> to vector<1x7xf32>
    %137 = arith.mulf %135, %136 : vector<1x7xf32>
    %138 = arith.divf %134, %137 : vector<1x7xf32>
    %cst_121 = arith.constant 1.000000e+00 : f32
    %139 = vector.broadcast %cst_121 : f32 to vector<1x7xf32>
    %140 = arith.mulf %138, %139 : vector<1x7xf32>
    %141 = tpu.concatenate %133, %140 in 1 : vector<1x7xf32>, vector<1x7xf32> -> vector<1x14xf32>
    %c1_122 = arith.constant 1 : index
    %c0_123 = arith.constant 0 : index
    %c0_124 = arith.constant 0 : index
    %142 = vector.load %arg1[%c1_122, %c0_123, %c0_124] : memref<2x316x10xf32, #tpu.memory_space<vmem>>, vector<1x316x10xf32>
    %143 = vector.shape_cast %142 : vector<1x316x10xf32> to vector<316x10xf32>
    %c0_125 = arith.constant 0 : index
    %c0_126 = arith.constant 0 : index
    %144 = vector.load %arg2[%c0_125, %c0_126] : memref<10x32xf32, #tpu.memory_space<vmem>>, vector<10x32xf32>
    %cst_127 = arith.constant dense<0.000000e+00> : vector<316x32xf32>
    %145 = tpu.matmul %143, %144, %cst_127 {dimension_numbers = #tpu.dot_dimension_numbers<[1], [0], [0], [1], [0, 0, 1, 1], [], []>} : vector<316x10xf32>, vector<10x32xf32>, vector<316x32xf32> -> vector<316x32xf32>
    %c0_128 = arith.constant 0 : index
    %c0_129 = arith.constant 0 : index
    %146 = vector.load %arg3[%c0_128, %c0_129] : memref<1x32xf32, #tpu.memory_space<vmem>>, vector<1x32xf32>
    %147 = vector.broadcast %146 : vector<1x32xf32> to vector<316x32xf32>
    %148 = arith.addf %145, %147 : vector<316x32xf32>
    %cst_130 = arith.constant 0.00999999977 : f32
    %149 = vector.broadcast %cst_130 : f32 to vector<316x32xf32>
    %150 = arith.mulf %149, %148 : vector<316x32xf32>
    %151 = arith.maximumf %148, %150 : vector<316x32xf32>
    %c320 = arith.constant 320 : index
    %c0_131 = arith.constant 0 : index
    %152 = vector.load %arg15[%c320, %c0_131] : memref<640x32xf32, #tpu.memory_space<vmem>>, vector<316x32xf32>
    tpu.vector_store %arg15[%c320, %c0_131], %151 {strides = array<i32>} : memref<640x32xf32, #tpu.memory_space<vmem>>, vector<316x32xf32>,
    %c320_132 = arith.constant 320 : index
    %c0_133 = arith.constant 0 : index
    %153 = tpu.strided_load %arg15[%c320_132, %c0_133] {strides = array<i32: 4, 1>} : memref<640x32xf32, #tpu.memory_space<vmem>>, vector<78x32xf32>
    %c0_134 = arith.constant 0 : index
    %c0_135 = arith.constant 0 : index
    %154 = vector.load %arg4[%c0_134, %c0_135] : memref<256x32xf32, #tpu.memory_space<vmem>>, vector<32x32xf32>
    %cst_136 = arith.constant dense<0.000000e+00> : vector<78x32xf32>
    %155 = tpu.matmul %153, %154, %cst_136 {dimension_numbers = #tpu.dot_dimension_numbers<[1], [0], [0], [1], [0, 0, 1, 1], [], []>} : vector<78x32xf32>, vector<32x32xf32>, vector<78x32xf32> -> vector<78x32xf32>
    %c321 = arith.constant 321 : index
    %c0_137 = arith.constant 0 : index
    %156 = tpu.strided_load %arg15[%c321, %c0_137] {strides = array<i32: 4, 1>} : memref<640x32xf32, #tpu.memory_space<vmem>>, vector<78x32xf32>
    %c32_138 = arith.constant 32 : index
    %c0_139 = arith.constant 0 : index
    %157 = vector.load %arg4[%c32_138, %c0_139] : memref<256x32xf32, #tpu.memory_space<vmem>>, vector<32x32xf32>
    %cst_140 = arith.constant dense<0.000000e+00> : vector<78x32xf32>
    %158 = tpu.matmul %156, %157, %cst_140 {dimension_numbers = #tpu.dot_dimension_numbers<[1], [0], [0], [1], [0, 0, 1, 1], [], []>} : vector<78x32xf32>, vector<32x32xf32>, vector<78x32xf32> -> vector<78x32xf32>
    %159 = arith.addf %155, %158 : vector<78x32xf32>
    %c322 = arith.constant 322 : index
    %c0_141 = arith.constant 0 : index
    %160 = tpu.strided_load %arg15[%c322, %c0_141] {strides = array<i32: 4, 1>} : memref<640x32xf32, #tpu.memory_space<vmem>>, vector<78x32xf32>
    %c64_142 = arith.constant 64 : index
    %c0_143 = arith.constant 0 : index
    %161 = vector.load %arg4[%c64_142, %c0_143] : memref<256x32xf32, #tpu.memory_space<vmem>>, vector<32x32xf32>
    %cst_144 = arith.constant dense<0.000000e+00> : vector<78x32xf32>
    %162 = tpu.matmul %160, %161, %cst_144 {dimension_numbers = #tpu.dot_dimension_numbers<[1], [0], [0], [1], [0, 0, 1, 1], [], []>} : vector<78x32xf32>, vector<32x32xf32>, vector<78x32xf32> -> vector<78x32xf32>
    %163 = arith.addf %159, %162 : vector<78x32xf32>
    %c323 = arith.constant 323 : index
    %c0_145 = arith.constant 0 : index
    %164 = tpu.strided_load %arg15[%c323, %c0_145] {strides = array<i32: 4, 1>} : memref<640x32xf32, #tpu.memory_space<vmem>>, vector<78x32xf32>
    %c96_146 = arith.constant 96 : index
    %c0_147 = arith.constant 0 : index
    %165 = vector.load %arg4[%c96_146, %c0_147] : memref<256x32xf32, #tpu.memory_space<vmem>>, vector<32x32xf32>
    %cst_148 = arith.constant dense<0.000000e+00> : vector<78x32xf32>
    %166 = tpu.matmul %164, %165, %cst_148 {dimension_numbers = #tpu.dot_dimension_numbers<[1], [0], [0], [1], [0, 0, 1, 1], [], []>} : vector<78x32xf32>, vector<32x32xf32>, vector<78x32xf32> -> vector<78x32xf32>
    %167 = arith.addf %163, %166 : vector<78x32xf32>
    %c324 = arith.constant 324 : index
    %c0_149 = arith.constant 0 : index
    %168 = tpu.strided_load %arg15[%c324, %c0_149] {strides = array<i32: 4, 1>} : memref<640x32xf32, #tpu.memory_space<vmem>>, vector<78x32xf32>
    %c128_150 = arith.constant 128 : index
    %c0_151 = arith.constant 0 : index
    %169 = vector.load %arg4[%c128_150, %c0_151] : memref<256x32xf32, #tpu.memory_space<vmem>>, vector<32x32xf32>
    %cst_152 = arith.constant dense<0.000000e+00> : vector<78x32xf32>
    %170 = tpu.matmul %168, %169, %cst_152 {dimension_numbers = #tpu.dot_dimension_numbers<[1], [0], [0], [1], [0, 0, 1, 1], [], []>} : vector<78x32xf32>, vector<32x32xf32>, vector<78x32xf32> -> vector<78x32xf32>
    %171 = arith.addf %167, %170 : vector<78x32xf32>
    %c325 = arith.constant 325 : index
    %c0_153 = arith.constant 0 : index
    %172 = tpu.strided_load %arg15[%c325, %c0_153] {strides = array<i32: 4, 1>} : memref<640x32xf32, #tpu.memory_space<vmem>>, vector<78x32xf32>
    %c160_154 = arith.constant 160 : index
    %c0_155 = arith.constant 0 : index
    %173 = vector.load %arg4[%c160_154, %c0_155] : memref<256x32xf32, #tpu.memory_space<vmem>>, vector<32x32xf32>
    %cst_156 = arith.constant dense<0.000000e+00> : vector<78x32xf32>
    %174 = tpu.matmul %172, %173, %cst_156 {dimension_numbers = #tpu.dot_dimension_numbers<[1], [0], [0], [1], [0, 0, 1, 1], [], []>} : vector<78x32xf32>, vector<32x32xf32>, vector<78x32xf32> -> vector<78x32xf32>
    %175 = arith.addf %171, %174 : vector<78x32xf32>
    %c326 = arith.constant 326 : index
    %c0_157 = arith.constant 0 : index
    %176 = tpu.strided_load %arg15[%c326, %c0_157] {strides = array<i32: 4, 1>} : memref<640x32xf32, #tpu.memory_space<vmem>>, vector<78x32xf32>
    %c192_158 = arith.constant 192 : index
    %c0_159 = arith.constant 0 : index
    %177 = vector.load %arg4[%c192_158, %c0_159] : memref<256x32xf32, #tpu.memory_space<vmem>>, vector<32x32xf32>
    %cst_160 = arith.constant dense<0.000000e+00> : vector<78x32xf32>
    %178 = tpu.matmul %176, %177, %cst_160 {dimension_numbers = #tpu.dot_dimension_numbers<[1], [0], [0], [1], [0, 0, 1, 1], [], []>} : vector<78x32xf32>, vector<32x32xf32>, vector<78x32xf32> -> vector<78x32xf32>
    %179 = arith.addf %175, %178 : vector<78x32xf32>
    %c327 = arith.constant 327 : index
    %c0_161 = arith.constant 0 : index
    %180 = tpu.strided_load %arg15[%c327, %c0_161] {strides = array<i32: 4, 1>} : memref<640x32xf32, #tpu.memory_space<vmem>>, vector<78x32xf32>
    %c224_162 = arith.constant 224 : index
    %c0_163 = arith.constant 0 : index
    %181 = vector.load %arg4[%c224_162, %c0_163] : memref<256x32xf32, #tpu.memory_space<vmem>>, vector<32x32xf32>
    %cst_164 = arith.constant dense<0.000000e+00> : vector<78x32xf32>
    %182 = tpu.matmul %180, %181, %cst_164 {dimension_numbers = #tpu.dot_dimension_numbers<[1], [0], [0], [1], [0, 0, 1, 1], [], []>} : vector<78x32xf32>, vector<32x32xf32>, vector<78x32xf32> -> vector<78x32xf32>
    %183 = arith.addf %179, %182 : vector<78x32xf32>
    %c0_165 = arith.constant 0 : index
    %c0_166 = arith.constant 0 : index
    %184 = vector.load %arg5[%c0_165, %c0_166] : memref<1x32xf32, #tpu.memory_space<vmem>>, vector<1x32xf32>
    %185 = vector.broadcast %184 : vector<1x32xf32> to vector<78x32xf32>
    %186 = arith.addf %183, %185 : vector<78x32xf32>
    %cst_167 = arith.constant 0.00999999977 : f32
    %187 = vector.broadcast %cst_167 : f32 to vector<78x32xf32>
    %188 = arith.mulf %187, %186 : vector<78x32xf32>
    %189 = arith.maximumf %186, %188 : vector<78x32xf32>
    %c320_168 = arith.constant 320 : index
    %c0_169 = arith.constant 0 : index
    %190 = vector.load %arg15[%c320_168, %c0_169] : memref<640x32xf32, #tpu.memory_space<vmem>>, vector<78x32xf32>
    tpu.vector_store %arg15[%c320_168, %c0_169], %189 {strides = array<i32>} : memref<640x32xf32, #tpu.memory_space<vmem>>, vector<78x32xf32>,
    %c320_170 = arith.constant 320 : index
    %c0_171 = arith.constant 0 : index
    %191 = tpu.strided_load %arg15[%c320_170, %c0_171] {strides = array<i32: 2, 1>} : memref<640x32xf32, #tpu.memory_space<vmem>>, vector<38x32xf32>
    %c0_172 = arith.constant 0 : index
    %c0_173 = arith.constant 0 : index
    %192 = vector.load %arg6[%c0_172, %c0_173] : memref<128x32xf32, #tpu.memory_space<vmem>>, vector<32x32xf32>
    %cst_174 = arith.constant dense<0.000000e+00> : vector<38x32xf32>
    %193 = tpu.matmul %191, %192, %cst_174 {dimension_numbers = #tpu.dot_dimension_numbers<[1], [0], [0], [1], [0, 0, 1, 1], [], []>} : vector<38x32xf32>, vector<32x32xf32>, vector<38x32xf32> -> vector<38x32xf32>
    %c321_175 = arith.constant 321 : index
    %c0_176 = arith.constant 0 : index
    %194 = tpu.strided_load %arg15[%c321_175, %c0_176] {strides = array<i32: 2, 1>} : memref<640x32xf32, #tpu.memory_space<vmem>>, vector<38x32xf32>
    %c32_177 = arith.constant 32 : index
    %c0_178 = arith.constant 0 : index
    %195 = vector.load %arg6[%c32_177, %c0_178] : memref<128x32xf32, #tpu.memory_space<vmem>>, vector<32x32xf32>
    %cst_179 = arith.constant dense<0.000000e+00> : vector<38x32xf32>
    %196 = tpu.matmul %194, %195, %cst_179 {dimension_numbers = #tpu.dot_dimension_numbers<[1], [0], [0], [1], [0, 0, 1, 1], [], []>} : vector<38x32xf32>, vector<32x32xf32>, vector<38x32xf32> -> vector<38x32xf32>
    %197 = arith.addf %193, %196 : vector<38x32xf32>
    %c322_180 = arith.constant 322 : index
    %c0_181 = arith.constant 0 : index
    %198 = tpu.strided_load %arg15[%c322_180, %c0_181] {strides = array<i32: 2, 1>} : memref<640x32xf32, #tpu.memory_space<vmem>>, vector<38x32xf32>
    %c64_182 = arith.constant 64 : index
    %c0_183 = arith.constant 0 : index
    %199 = vector.load %arg6[%c64_182, %c0_183] : memref<128x32xf32, #tpu.memory_space<vmem>>, vector<32x32xf32>
    %cst_184 = arith.constant dense<0.000000e+00> : vector<38x32xf32>
    %200 = tpu.matmul %198, %199, %cst_184 {dimension_numbers = #tpu.dot_dimension_numbers<[1], [0], [0], [1], [0, 0, 1, 1], [], []>} : vector<38x32xf32>, vector<32x32xf32>, vector<38x32xf32> -> vector<38x32xf32>
    %201 = arith.addf %197, %200 : vector<38x32xf32>
    %c323_185 = arith.constant 323 : index
    %c0_186 = arith.constant 0 : index
    %202 = tpu.strided_load %arg15[%c323_185, %c0_186] {strides = array<i32: 2, 1>} : memref<640x32xf32, #tpu.memory_space<vmem>>, vector<38x32xf32>
    %c96_187 = arith.constant 96 : index
    %c0_188 = arith.constant 0 : index
    %203 = vector.load %arg6[%c96_187, %c0_188] : memref<128x32xf32, #tpu.memory_space<vmem>>, vector<32x32xf32>
    %cst_189 = arith.constant dense<0.000000e+00> : vector<38x32xf32>
    %204 = tpu.matmul %202, %203, %cst_189 {dimension_numbers = #tpu.dot_dimension_numbers<[1], [0], [0], [1], [0, 0, 1, 1], [], []>} : vector<38x32xf32>, vector<32x32xf32>, vector<38x32xf32> -> vector<38x32xf32>
    %205 = arith.addf %201, %204 : vector<38x32xf32>
    %c0_190 = arith.constant 0 : index
    %c0_191 = arith.constant 0 : index
    %206 = vector.load %arg7[%c0_190, %c0_191] : memref<1x32xf32, #tpu.memory_space<vmem>>, vector<1x32xf32>
    %207 = vector.broadcast %206 : vector<1x32xf32> to vector<38x32xf32>
    %208 = arith.addf %205, %207 : vector<38x32xf32>
    %cst_192 = arith.constant 0.00999999977 : f32
    %209 = vector.broadcast %cst_192 : f32 to vector<38x32xf32>
    %210 = arith.mulf %209, %208 : vector<38x32xf32>
    %211 = arith.maximumf %208, %210 : vector<38x32xf32>
    %c320_193 = arith.constant 320 : index
    %c0_194 = arith.constant 0 : index
    %212 = vector.load %arg15[%c320_193, %c0_194] : memref<640x32xf32, #tpu.memory_space<vmem>>, vector<38x32xf32>
    tpu.vector_store %arg15[%c320_193, %c0_194], %211 {strides = array<i32>} : memref<640x32xf32, #tpu.memory_space<vmem>>, vector<38x32xf32>,
    %c320_195 = arith.constant 320 : index
    %c0_196 = arith.constant 0 : index
    %213 = tpu.strided_load %arg15[%c320_195, %c0_196] {strides = array<i32: 2, 1>} : memref<640x32xf32, #tpu.memory_space<vmem>>, vector<18x32xf32>
    %c0_197 = arith.constant 0 : index
    %c0_198 = arith.constant 0 : index
    %214 = vector.load %arg8[%c0_197, %c0_198] : memref<128x32xf32, #tpu.memory_space<vmem>>, vector<32x32xf32>
    %cst_199 = arith.constant dense<0.000000e+00> : vector<18x32xf32>
    %215 = tpu.matmul %213, %214, %cst_199 {dimension_numbers = #tpu.dot_dimension_numbers<[1], [0], [0], [1], [0, 0, 1, 1], [], []>} : vector<18x32xf32>, vector<32x32xf32>, vector<18x32xf32> -> vector<18x32xf32>
    %c321_200 = arith.constant 321 : index
    %c0_201 = arith.constant 0 : index
    %216 = tpu.strided_load %arg15[%c321_200, %c0_201] {strides = array<i32: 2, 1>} : memref<640x32xf32, #tpu.memory_space<vmem>>, vector<18x32xf32>
    %c32_202 = arith.constant 32 : index
    %c0_203 = arith.constant 0 : index
    %217 = vector.load %arg8[%c32_202, %c0_203] : memref<128x32xf32, #tpu.memory_space<vmem>>, vector<32x32xf32>
    %cst_204 = arith.constant dense<0.000000e+00> : vector<18x32xf32>
    %218 = tpu.matmul %216, %217, %cst_204 {dimension_numbers = #tpu.dot_dimension_numbers<[1], [0], [0], [1], [0, 0, 1, 1], [], []>} : vector<18x32xf32>, vector<32x32xf32>, vector<18x32xf32> -> vector<18x32xf32>
    %219 = arith.addf %215, %218 : vector<18x32xf32>
    %c322_205 = arith.constant 322 : index
    %c0_206 = arith.constant 0 : index
    %220 = tpu.strided_load %arg15[%c322_205, %c0_206] {strides = array<i32: 2, 1>} : memref<640x32xf32, #tpu.memory_space<vmem>>, vector<18x32xf32>
    %c64_207 = arith.constant 64 : index
    %c0_208 = arith.constant 0 : index
    %221 = vector.load %arg8[%c64_207, %c0_208] : memref<128x32xf32, #tpu.memory_space<vmem>>, vector<32x32xf32>
    %cst_209 = arith.constant dense<0.000000e+00> : vector<18x32xf32>
    %222 = tpu.matmul %220, %221, %cst_209 {dimension_numbers = #tpu.dot_dimension_numbers<[1], [0], [0], [1], [0, 0, 1, 1], [], []>} : vector<18x32xf32>, vector<32x32xf32>, vector<18x32xf32> -> vector<18x32xf32>
    %223 = arith.addf %219, %222 : vector<18x32xf32>
    %c323_210 = arith.constant 323 : index
    %c0_211 = arith.constant 0 : index
    %224 = tpu.strided_load %arg15[%c323_210, %c0_211] {strides = array<i32: 2, 1>} : memref<640x32xf32, #tpu.memory_space<vmem>>, vector<18x32xf32>
    %c96_212 = arith.constant 96 : index
    %c0_213 = arith.constant 0 : index
    %225 = vector.load %arg8[%c96_212, %c0_213] : memref<128x32xf32, #tpu.memory_space<vmem>>, vector<32x32xf32>
    %cst_214 = arith.constant dense<0.000000e+00> : vector<18x32xf32>
    %226 = tpu.matmul %224, %225, %cst_214 {dimension_numbers = #tpu.dot_dimension_numbers<[1], [0], [0], [1], [0, 0, 1, 1], [], []>} : vector<18x32xf32>, vector<32x32xf32>, vector<18x32xf32> -> vector<18x32xf32>
    %227 = arith.addf %223, %226 : vector<18x32xf32>
    %c0_215 = arith.constant 0 : index
    %c0_216 = arith.constant 0 : index
    %228 = vector.load %arg9[%c0_215, %c0_216] : memref<1x32xf32, #tpu.memory_space<vmem>>, vector<1x32xf32>
    %229 = vector.broadcast %228 : vector<1x32xf32> to vector<18x32xf32>
    %230 = arith.addf %227, %229 : vector<18x32xf32>
    %cst_217 = arith.constant 0.00999999977 : f32
    %231 = vector.broadcast %cst_217 : f32 to vector<18x32xf32>
    %232 = arith.mulf %231, %230 : vector<18x32xf32>
    %233 = arith.maximumf %230, %232 : vector<18x32xf32>
    %c320_218 = arith.constant 320 : index
    %c0_219 = arith.constant 0 : index
    %234 = vector.load %arg15[%c320_218, %c0_219] : memref<640x32xf32, #tpu.memory_space<vmem>>, vector<18x32xf32>
    tpu.vector_store %arg15[%c320_218, %c0_219], %233 {strides = array<i32>} : memref<640x32xf32, #tpu.memory_space<vmem>>, vector<18x32xf32>,
    %c320_220 = arith.constant 320 : index
    %c0_221 = arith.constant 0 : index
    %235 = tpu.strided_load %arg15[%c320_220, %c0_221] {strides = array<i32: 2, 1>} : memref<640x32xf32, #tpu.memory_space<vmem>>, vector<8x32xf32>
    %c0_222 = arith.constant 0 : index
    %c0_223 = arith.constant 0 : index
    %236 = vector.load %arg10[%c0_222, %c0_223] : memref<128x32xf32, #tpu.memory_space<vmem>>, vector<32x32xf32>
    %cst_224 = arith.constant dense<0.000000e+00> : vector<8x32xf32>
    %237 = tpu.matmul %235, %236, %cst_224 {dimension_numbers = #tpu.dot_dimension_numbers<[1], [0], [0], [1], [0, 0, 1, 1], [], []>} : vector<8x32xf32>, vector<32x32xf32>, vector<8x32xf32> -> vector<8x32xf32>
    %c321_225 = arith.constant 321 : index
    %c0_226 = arith.constant 0 : index
    %238 = tpu.strided_load %arg15[%c321_225, %c0_226] {strides = array<i32: 2, 1>} : memref<640x32xf32, #tpu.memory_space<vmem>>, vector<8x32xf32>
    %c32_227 = arith.constant 32 : index
    %c0_228 = arith.constant 0 : index
    %239 = vector.load %arg10[%c32_227, %c0_228] : memref<128x32xf32, #tpu.memory_space<vmem>>, vector<32x32xf32>
    %cst_229 = arith.constant dense<0.000000e+00> : vector<8x32xf32>
    %240 = tpu.matmul %238, %239, %cst_229 {dimension_numbers = #tpu.dot_dimension_numbers<[1], [0], [0], [1], [0, 0, 1, 1], [], []>} : vector<8x32xf32>, vector<32x32xf32>, vector<8x32xf32> -> vector<8x32xf32>
    %241 = arith.addf %237, %240 : vector<8x32xf32>
    %c322_230 = arith.constant 322 : index
    %c0_231 = arith.constant 0 : index
    %242 = tpu.strided_load %arg15[%c322_230, %c0_231] {strides = array<i32: 2, 1>} : memref<640x32xf32, #tpu.memory_space<vmem>>, vector<8x32xf32>
    %c64_232 = arith.constant 64 : index
    %c0_233 = arith.constant 0 : index
    %243 = vector.load %arg10[%c64_232, %c0_233] : memref<128x32xf32, #tpu.memory_space<vmem>>, vector<32x32xf32>
    %cst_234 = arith.constant dense<0.000000e+00> : vector<8x32xf32>
    %244 = tpu.matmul %242, %243, %cst_234 {dimension_numbers = #tpu.dot_dimension_numbers<[1], [0], [0], [1], [0, 0, 1, 1], [], []>} : vector<8x32xf32>, vector<32x32xf32>, vector<8x32xf32> -> vector<8x32xf32>
    %245 = arith.addf %241, %244 : vector<8x32xf32>
    %c323_235 = arith.constant 323 : index
    %c0_236 = arith.constant 0 : index
    %246 = tpu.strided_load %arg15[%c323_235, %c0_236] {strides = array<i32: 2, 1>} : memref<640x32xf32, #tpu.memory_space<vmem>>, vector<8x32xf32>
    %c96_237 = arith.constant 96 : index
    %c0_238 = arith.constant 0 : index
    %247 = vector.load %arg10[%c96_237, %c0_238] : memref<128x32xf32, #tpu.memory_space<vmem>>, vector<32x32xf32>
    %cst_239 = arith.constant dense<0.000000e+00> : vector<8x32xf32>
    %248 = tpu.matmul %246, %247, %cst_239 {dimension_numbers = #tpu.dot_dimension_numbers<[1], [0], [0], [1], [0, 0, 1, 1], [], []>} : vector<8x32xf32>, vector<32x32xf32>, vector<8x32xf32> -> vector<8x32xf32>
    %249 = arith.addf %245, %248 : vector<8x32xf32>
    %c0_240 = arith.constant 0 : index
    %c0_241 = arith.constant 0 : index
    %250 = vector.load %arg11[%c0_240, %c0_241] : memref<1x32xf32, #tpu.memory_space<vmem>>, vector<1x32xf32>
    %251 = vector.broadcast %250 : vector<1x32xf32> to vector<8x32xf32>
    %252 = arith.addf %249, %251 : vector<8x32xf32>
    %c0_242 = arith.constant 0 : index
    %c0_243 = arith.constant 0 : index
    %253 = vector.load %arg12[%c0_242, %c0_243] : memref<32x32xf32, #tpu.memory_space<vmem>>, vector<32x32xf32>
    %cst_244 = arith.constant dense<0.000000e+00> : vector<8x32xf32>
    %254 = tpu.matmul %252, %253, %cst_244 {dimension_numbers = #tpu.dot_dimension_numbers<[1], [0], [0], [1], [0, 0, 1, 1], [], []>} : vector<8x32xf32>, vector<32x32xf32>, vector<8x32xf32> -> vector<8x32xf32>
    %c0_245 = arith.constant 0 : index
    %c0_246 = arith.constant 0 : index
    %255 = vector.load %arg13[%c0_245, %c0_246] : memref<1x32xf32, #tpu.memory_space<vmem>>, vector<1x32xf32>
    %256 = vector.broadcast %255 : vector<1x32xf32> to vector<8x32xf32>
    %257 = arith.addf %254, %256 : vector<8x32xf32>
    %258 = tpu.transpose %257, [1, 0] : vector<8x32xf32> -> vector<32x8xf32>
    %259 = arith.mulf %258, %258 : vector<32x8xf32>
    %cst_247 = arith.constant dense<0.000000e+00> : vector<8xf32>
    %260 = vector.multi_reduction <add>, %259, %cst_247 [0] : vector<32x8xf32> to vector<8xf32>
    %261 = vector.shape_cast %260 : vector<8xf32> to vector<1x8xf32>
    %262 = math.sqrt %261 : vector<1x8xf32>
    %cst_248 = arith.constant 9.99999993E-9 : f32
    %263 = vector.broadcast %cst_248 : f32 to vector<1x8xf32>
    %264 = arith.maximumf %262, %263 : vector<1x8xf32>
    %265 = vector.extract_strided_slice %258 {offsets = [0, 0], sizes = [32, 7], strides = [1, 1]} : vector<32x8xf32> to vector<32x7xf32>
    %266 = vector.extract_strided_slice %258 {offsets = [0, 1], sizes = [32, 7], strides = [1, 1]} : vector<32x8xf32> to vector<32x7xf32>
    %267 = arith.mulf %265, %266 : vector<32x7xf32>
    %cst_249 = arith.constant dense<0.000000e+00> : vector<7xf32>
    %268 = vector.multi_reduction <add>, %267, %cst_249 [0] : vector<32x7xf32> to vector<7xf32>
    %269 = vector.shape_cast %268 : vector<7xf32> to vector<1x7xf32>
    %270 = vector.extract_strided_slice %264 {offsets = [0, 0], sizes = [1, 7], strides = [1, 1]} : vector<1x8xf32> to vector<1x7xf32>
    %271 = vector.extract_strided_slice %264 {offsets = [0, 1], sizes = [1, 7], strides = [1, 1]} : vector<1x8xf32> to vector<1x7xf32>
    %272 = arith.mulf %270, %271 : vector<1x7xf32>
    %273 = arith.divf %269, %272 : vector<1x7xf32>
    %cst_250 = arith.constant 1.000000e+00 : f32
    %274 = vector.broadcast %cst_250 : f32 to vector<1x7xf32>
    %275 = arith.mulf %273, %274 : vector<1x7xf32>
    %276 = vector.extract_strided_slice %261 {offsets = [0, 0], sizes = [1, 7], strides = [1, 1]} : vector<1x8xf32> to vector<1x7xf32>
    %277 = vector.extract_strided_slice %264 {offsets = [0, 0], sizes = [1, 7], strides = [1, 1]} : vector<1x8xf32> to vector<1x7xf32>
    %278 = vector.extract_strided_slice %264 {offsets = [0, 0], sizes = [1, 7], strides = [1, 1]} : vector<1x8xf32> to vector<1x7xf32>
    %279 = arith.mulf %277, %278 : vector<1x7xf32>
    %280 = arith.divf %276, %279 : vector<1x7xf32>
    %cst_251 = arith.constant 1.000000e+00 : f32
    %281 = vector.broadcast %cst_251 : f32 to vector<1x7xf32>
    %282 = arith.mulf %280, %281 : vector<1x7xf32>
    %283 = tpu.concatenate %275, %282 in 1 : vector<1x7xf32>, vector<1x7xf32> -> vector<1x14xf32>
    %284 = vector.shape_cast %141 : vector<1x14xf32> to vector<1x1x14xf32>
    %285 = vector.shape_cast %283 : vector<1x14xf32> to vector<1x1x14xf32>
    %286 = tpu.concatenate %284, %285 in 0 : vector<1x1x14xf32>, vector<1x1x14xf32> -> vector<2x1x14xf32>
    %c0_252 = arith.constant 0 : index
    %c0_253 = arith.constant 0 : index
    %c0_254 = arith.constant 0 : index
    %287 = vector.load %arg14[%c0_252, %c0_253, %c0_254] : memref<2x1x14xf32, #tpu.memory_space<vmem>>, vector<2x1x14xf32>
    tpu.vector_store %arg14[%c0_252, %c0_253, %c0_254], %286 {strides = array<i32>} : memref<2x1x14xf32, #tpu.memory_space<vmem>>, vector<2x1x14xf32>,
    return
  }
  func.func @transform_0(%arg0: i32) -> (i32, i32, i32) {
    %c0_i32 = arith.constant 0 : i32
    %c0_i32_0 = arith.constant 0 : i32
    %c0_i32_1 = arith.constant 0 : i32
    return %arg0, %c0_i32, %c0_i32_0 : i32, i32, i32
  }
  func.func @transform_1(%arg0: i32) -> (i32, i32) {
    %c0_i32 = arith.constant 0 : i32
    %c0_i32_0 = arith.constant 0 : i32
    %c0_i32_1 = arith.constant 0 : i32
    return %c0_i32, %c0_i32_0 : i32, i32
  }
  func.func @transform_2(%arg0: i32) -> (i32, i32) {
    %c0_i32 = arith.constant 0 : i32
    %c0_i32_0 = arith.constant 0 : i32
    %c0_i32_1 = arith.constant 0 : i32
    return %c0_i32, %c0_i32_0 : i32, i32
  }
  func.func @transform_3(%arg0: i32) -> (i32, i32) {
    %c0_i32 = arith.constant 0 : i32
    %c0_i32_0 = arith.constant 0 : i32
    %c0_i32_1 = arith.constant 0 : i32
    return %c0_i32, %c0_i32_0 : i32, i32
  }
  func.func @transform_4(%arg0: i32) -> (i32, i32) {
    %c0_i32 = arith.constant 0 : i32
    %c0_i32_0 = arith.constant 0 : i32
    %c0_i32_1 = arith.constant 0 : i32
    return %c0_i32, %c0_i32_0 : i32, i32
  }
  func.func @transform_5(%arg0: i32) -> (i32, i32) {
    %c0_i32 = arith.constant 0 : i32
    %c0_i32_0 = arith.constant 0 : i32
    %c0_i32_1 = arith.constant 0 : i32
    return %c0_i32, %c0_i32_0 : i32, i32
  }
  func.func @transform_6(%arg0: i32) -> (i32, i32) {
    %c0_i32 = arith.constant 0 : i32
    %c0_i32_0 = arith.constant 0 : i32
    %c0_i32_1 = arith.constant 0 : i32
    return %c0_i32, %c0_i32_0 : i32, i32
  }
  func.func @transform_7(%arg0: i32) -> (i32, i32) {
    %c0_i32 = arith.constant 0 : i32
    %c0_i32_0 = arith.constant 0 : i32
    %c0_i32_1 = arith.constant 0 : i32
    return %c0_i32, %c0_i32_0 : i32, i32
  }
  func.func @transform_8(%arg0: i32) -> (i32, i32) {
    %c0_i32 = arith.constant 0 : i32
    %c0_i32_0 = arith.constant 0 : i32
    %c0_i32_1 = arith.constant 0 : i32
    return %c0_i32, %c0_i32_0 : i32, i32
  }
  func.func @transform_9(%arg0: i32) -> (i32, i32) {
    %c0_i32 = arith.constant 0 : i32
    %c0_i32_0 = arith.constant 0 : i32
    %c0_i32_1 = arith.constant 0 : i32
    return %c0_i32, %c0_i32_0 : i32, i32
  }
  func.func @transform_10(%arg0: i32) -> (i32, i32) {
    %c0_i32 = arith.constant 0 : i32
    %c0_i32_0 = arith.constant 0 : i32
    %c0_i32_1 = arith.constant 0 : i32
    return %c0_i32, %c0_i32_0 : i32, i32
  }
  func.func @transform_11(%arg0: i32) -> (i32, i32) {
    %c0_i32 = arith.constant 0 : i32
    %c0_i32_0 = arith.constant 0 : i32
    %c0_i32_1 = arith.constant 0 : i32
    return %c0_i32, %c0_i32_0 : i32, i32
  }
  func.func @transform_12(%arg0: i32) -> (i32, i32) {
    %c0_i32 = arith.constant 0 : i32
    %c0_i32_0 = arith.constant 0 : i32
    %c0_i32_1 = arith.constant 0 : i32
    return %c0_i32, %c0_i32_0 : i32, i32
  }
  func.func @transform_13(%arg0: i32) -> (i32, i32, i32) {
    %c0_i32 = arith.constant 0 : i32
    %c0_i32_0 = arith.constant 0 : i32
    %c0_i32_1 = arith.constant 0 : i32
    return %arg0, %c0_i32, %c0_i32_0 : i32, i32, i32
  }
}

</mosaic_0001>

<bundles_post_ra>
// kernel: _lambda_.1
= control target key start
LH: loop header
LB: loop body
LE: loop exit
PB: predicated region body
PF: predicated region fallthrough
CT: control target
= control target key end

     0   :  { %vm211_vm0 = vcmask 1041408   ;;  %vm90_vm1 = vcmask 80896   ;;  %vm432_vm2 = vcmask 261120   ;;  %vm472_vm3 = vcmask 257024   ;;  %s6384_s1 = inlined_call_operand.vmem [shape: f32[10,32], index: 1, kind: input, shape index: {}]   ;;  %s6385_s0 = inlined_call_operand.vmem [shape: f32[2,316,10], index: 0, kind: input, shape index: {}]   ;;  %s6386_s2 = inlined_call_operand.vmem [shape: f32[1,32], index: 2, kind: input, shape index: {}]   ;;  %s6387_s3 = inlined_call_operand.vmem [shape: f32[256,32], index: 3, kind: input, shape index: {}]   ;;  %s6388_s4 = inlined_call_operand.vmem [shape: f32[1,32], index: 4, kind: input, shape index: {}]   ;;  %s6389_s5 = inlined_call_operand.vmem [shape: f32[128,32], index: 5, kind: input, shape index: {}]   ;;  %s6390_s6 = inlined_call_operand.vmem [shape: f32[1,32], index: 6, kind: input, shape index: {}]   ;;  %s6391_s7 = inlined_call_operand.vmem [shape: f32[128,32], index: 7, kind: input, shape index: {}]   ;;  %s6392_s8 = inlined_call_operand.vmem [shape: f32[1,32], index: 8, kind: input, shape index: {}]   ;;  %s6393_s9 = inlined_call_operand.vmem [shape: f32[128,32], index: 9, kind: input, shape index: {}]   ;;  %s6394_s10 = inlined_call_operand.vmem [shape: f32[1,32], index: 10, kind: input, shape index: {}]   ;;  %s6395_s11 = inlined_call_operand.vmem [shape: f32[32,32], index: 11, kind: input, shape index: {}]   ;;  %s6396_s12 = inlined_call_operand.vmem [shape: f32[1,32], index: 12, kind: input, shape index: {}]   ;;  %s6397_s13 = inlined_call_operand.vmem [shape: f32[2,1,14], index: 13, kind: output, shape index: {}]  }
   0x1   :  { %v85_v0 = vld [vmem:[%s6384_s1 + $0x8] sm:$0x3]  ;;  %v84_v1 = vld [vmem:[%s6384_s1] sm:$0xff]  ;;  %v46_v4 = vld [vmem:[%s6385_s0 + $0x10] sm:$0xff]  ;;  %vm1384_vm4 = vcmask 259072   ;;  %vm1841_vm5 = vcmask 254976  }
   0x2   :  { %4219 = vmatpush.msk.msra.mxu0 %vm211_vm0, %v85_v0  ;;  %v44_v2 = vld [vmem:[%s6385_s0] sm:$0xff]  ;;  %v45_v3 = vld [vmem:[%s6385_s0 + $0x8] sm:$0xff]  ;;  %v47_v5 = vld [vmem:[%s6385_s0 + $0x18] sm:$0xff]  ;;  %vm2029_vm6 = vcmask 64512  }
   0x3   :  { %v48_v6 = vld [vmem:[%s6385_s0 + $0x20] sm:$0xff]  ;;  %v49_v7 = vld [vmem:[%s6385_s0 + $0x28] sm:$0xff]  ;;  %v50_v8 = vld [vmem:[%s6385_s0 + $0x30] sm:$0xff] }
   0x4   :  { %230 = vmatpush.msra.mxu0 %v84_v1  ;;  %v51_v9 = vld [vmem:[%s6385_s0 + $0x38] sm:$0xff]  ;;  %v52_v10 = vld [vmem:[%s6385_s0 + $0x40] sm:$0xff]  ;;  %v53_v11 = vld [vmem:[%s6385_s0 + $0x48] sm:$0xff] }
   0x5   :  { %4220 = vmatmul.msk.f32.vlgmr.msra.gmra.mxu0 %vm90_vm1, %v44_v2  ;;  %v54_v12 = vld [vmem:[%s6385_s0 + $0x50] sm:$0xff]  ;;  %v55_v13 = vld [vmem:[%s6385_s0 + $0x58] sm:$0xff]  ;;  %v56_v14 = vld [vmem:[%s6385_s0 + $0x60] sm:$0xff] }
   0x6   :  { %v57_v15 = vld [vmem:[%s6385_s0 + $0x68] sm:$0xff]  ;;  %v58_v16 = vld [vmem:[%s6385_s0 + $0x70] sm:$0xff]  ;;  %v59_v17 = vld [vmem:[%s6385_s0 + $0x78] sm:$0xff] }
   0x7   :  { %v4748_v18 = vld [vmem:[%s6386_s2] ss:$0 sm:$0xff]  ;;  %v520_v19 = vld [vmem:[%s6387_s3 + $0x38] sm:$0xff]  ;;  %v519_v25 = vld [vmem:[%s6387_s3 + $0x30] sm:$0xff] }
   0x8   :  { %v496_v20 = vld [vmem:[%s6387_s3 + $0x18] sm:$0xff]  ;;  %v60_v23 = vld [vmem:[%s6385_s0 + $0x80] sm:$0xff]  ;;  %563 = vmatpush.msra.mxu1 %v520_v19  ;;  %v495_v26 = vld [vmem:[%s6387_s3 + $0x10] sm:$0xff] }
   0x9   :  { %v698_v21 = vld [vmem:[%s6387_s3 + $0x58] sm:$0xff]  ;;  %640 = vmatpush.msra.mxu2 %v496_v20  ;;  %v697_v27 = vld [vmem:[%s6387_s3 + $0x50] sm:$0xff]  ;;  %v518_v29 = vld [vmem:[%s6387_s3 + $0x28] sm:$0xff] }
   0xa   :  { %741 = vmatpush.msra.mxu3 %v698_v21  ;;  %564 = vmatpush.msra.mxu1 %v519_v25  ;;  %v494_v30 = vld [vmem:[%s6387_s3 + $0x8] sm:$0xff]  ;;  %v517_v33 = vld [vmem:[%s6387_s3 + $0x20] sm:$0xff]  ;;  %v62_v42 = vld [vmem:[%s6385_s0 + $0x90] sm:$0xff] }
   0xb   :  { %641 = vmatpush.msra.mxu2 %v495_v26  ;;  %v696_v31 = vld [vmem:[%s6387_s3 + $0x48] sm:$0xff]  ;;  %v493_v34 = vld [vmem:[%s6387_s3] sm:$0xff]  ;;  %v63_v47 = vld [vmem:[%s6385_s0 + $0x98] sm:$0xff] }
   0xc   :  { %742 = vmatpush.msra.mxu3 %v697_v27  ;;  %565 = vmatpush.msra.mxu1 %v518_v29  ;;  %v695_v35 = vld [vmem:[%s6387_s3 + $0x40] sm:$0xff]  ;;  %v61_v37 = vld [vmem:[%s6385_s0 + $0x88] sm:$0xff]  ;;  %v66_v1 = vld [vmem:[%s6385_s0 + $0xb0] sm:$0xff] }
   0xd   :  { %4221 = vmatmul.msk.f32.gmra.mxu0 %vm90_vm1, %v45_v3  ;;  %642 = vmatpush.msra.mxu2 %v494_v30  ;;  %v64_v52 = vld [vmem:[%s6385_s0 + $0xa0] sm:$0xff]  ;;  %v65_v60 = vld [vmem:[%s6385_s0 + $0xa8] sm:$0xff]  ;;  %v70_v25 = vld [vmem:[%s6385_s0 + $0xd0] sm:$0xff] }
   0xe   :  { %743 = vmatpush.msra.mxu3 %v696_v31  ;;  %566 = vmatpush.msra.mxu1 %v517_v33  ;;  %v69_v20 = vld [vmem:[%s6385_s0 + $0xc8] sm:$0xff]  ;;  %v71_v30 = vld [vmem:[%s6385_s0 + $0xd8] sm:$0xff] }
   0xf   :  { %643 = vmatpush.msra.mxu2 %v493_v34 }
  0x10   :  { %744 = vmatpush.msra.mxu3 %v695_v35  ;;  %v72_v35 = vld [vmem:[%s6385_s0 + $0xe0] sm:$0xff] }
  0x15   :  { %4222 = vmatmul.msk.f32.gmra.mxu0 %vm90_vm1, %v46_v4 }
  0x1d   :  { %4223 = vmatmul.msk.f32.gmra.mxu0 %vm90_vm1, %v47_v5 }
  0x25   :  { %4224 = vmatmul.msk.f32.gmra.mxu0 %vm90_vm1, %v48_v6  ;;  %v67_v6 = vld [vmem:[%s6385_s0 + $0xb8] sm:$0xff] }
  0x2d   :  { %4225 = vmatmul.msk.f32.gmra.mxu0 %vm90_vm1, %v49_v7 }
  0x35   :  { %4226 = vmatmul.msk.f32.gmra.mxu0 %vm90_vm1, %v50_v8 }
  0x3d   :  { %4227 = vmatmul.msk.f32.gmra.mxu0 %vm90_vm1, %v51_v9 }
  0x45   :  { %4228 = vmatmul.msk.f32.gmra.mxu0 %vm90_vm1, %v52_v10 }
  0x4d   :  { %4229 = vmatmul.msk.f32.gmra.mxu0 %vm90_vm1, %v53_v11  ;;  %v68_v11 = vld [vmem:[%s6385_s0 + $0xc0] sm:$0xff] }
  0x55   :  { %4230 = vmatmul.msk.f32.gmra.mxu0 %vm90_vm1, %v54_v12 }
  0x5d   :  { %4231 = vmatmul.msk.f32.gmra.mxu0 %vm90_vm1, %v55_v13 }
  0x65   :  { %4232 = vmatmul.msk.f32.gmra.mxu0 %vm90_vm1, %v56_v14 }
  0x6d   :  { %4233 = vmatmul.msk.f32.gmra.mxu0 %vm90_vm1, %v57_v15 }
  0x75   :  { %4234 = vmatmul.msk.f32.gmra.mxu0 %vm90_vm1, %v58_v16 }
  0x7d   :  { %4235 = vmatmul.msk.f32.gmra.mxu0 %vm90_vm1, %v59_v17 }
  0x82   :  { %v232_v22 = vpop.f32.mrf.mxu0 }
  0x83   :  { %v233_v24 = vadd.f32 %v4748_v18, %v232_v22 }
  0x85   :  { %v352_v28 = vmul.f32 0.01, %v233_v24  ;;  %4236 = vmatmul.msk.f32.gmra.mxu0 %vm90_vm1, %v60_v23 }
  0x87   :  { %v392_v32 = vmax.f32 %v233_v24, %v352_v28 }
  0x89   :  { %433 = vst.msk [vmem:[#allocation2] sm:$0xff] %vm432_vm2, %v392_v32 }
  0x8a   :  { %v235_v36 = vpop.f32.mrf.mxu0 }
  0x8b   :  { %v236_v38 = vadd.f32 %v4748_v18, %v235_v36 }
  0x8d   :  { %v353_v39 = vmul.f32 0.01, %v236_v38  ;;  %4237 = vmatmul.msk.f32.gmra.mxu0 %vm90_vm1, %v61_v37 }
  0x8f   :  { %v393_v40 = vmax.f32 %v236_v38, %v353_v39 }
  0x91   :  { %434 = vst.msk [vmem:[#allocation2 + $0x8] sm:$0xff] %vm432_vm2, %v393_v40 }
  0x92   :  { %v238_v41 = vpop.f32.mrf.mxu0 }
  0x93   :  { %v239_v43 = vadd.f32 %v4748_v18, %v238_v41 }
  0x95   :  { %v354_v44 = vmul.f32 0.01, %v239_v43  ;;  %4238 = vmatmul.msk.f32.gmra.mxu0 %vm90_vm1, %v62_v42 }
  0x97   :  { %v394_v45 = vmax.f32 %v239_v43, %v354_v44  ;;  %v73_v43 = vld [vmem:[%s6385_s0 + $0xe8] sm:$0xff] }
  0x99   :  { %435 = vst.msk [vmem:[#allocation2 + $0x10] sm:$0xff] %vm432_vm2, %v394_v45 }
  0x9a   :  { %v241_v46 = vpop.f32.mrf.mxu0 }
  0x9b   :  { %v242_v48 = vadd.f32 %v4748_v18, %v241_v46 }
  0x9d   :  { %v355_v49 = vmul.f32 0.01, %v242_v48  ;;  %4239 = vmatmul.msk.f32.gmra.mxu0 %vm90_vm1, %v63_v47 }
  0x9f   :  { %v395_v50 = vmax.f32 %v242_v48, %v355_v49  ;;  %v74_v48 = vld [vmem:[%s6385_s0 + $0xf0] sm:$0xff] }
  0xa1   :  { %436 = vst.msk [vmem:[#allocation2 + $0x18] sm:$0xff] %vm432_vm2, %v395_v50 }
  0xa2   :  { %v244_v51 = vpop.f32.mrf.mxu0 }
  0xa3   :  { %v245_v53 = vadd.f32 %v4748_v18, %v244_v51 }
  0xa5   :  { %v356_v54 = vmul.f32 0.01, %v245_v53  ;;  %4240 = vmatmul.msk.f32.gmra.mxu0 %vm90_vm1, %v64_v52 }
  0xa7   :  { %v396_v55 = vmax.f32 %v245_v53, %v356_v54  ;;  %v75_v53 = vld [vmem:[%s6385_s0 + $0xf8] sm:$0xff] }
  0xa8   :  { %v498_v56 = vld [vmem:[#allocation2 + $0x1] ss:$4 sm:$0xff]  ;;  %v474_v57 = vld [vmem:[#allocation2] ss:$4 sm:$0xff]  ;;  %v676_v58 = vld [vmem:[#allocation2 + $0x2] ss:$4 sm:$0xff] }
  0xa9   :  { %437 = vst.msk [vmem:[#allocation2 + $0x20] sm:$0xff] %vm432_vm2, %v396_v55  ;;  %4260 = vmatmul.msk.f32.vlgmr.msra.gmra.mxu1 %vm432_vm2, %v498_v56  ;;  %4270 = vmatmul.msk.f32.vlgmr.msra.gmra.mxu2 %vm432_vm2, %v474_v57 }
  0xaa   :  { %4280 = vmatmul.msk.f32.vlgmr.msra.gmra.mxu3 %vm432_vm2, %v676_v58  ;;  %v247_v59 = vpop.f32.mrf.mxu0  ;;  %v76_v58 = vld [vmem:[%s6385_s0 + $0x100] sm:$0xff] }
  0xab   :  { %v248_v61 = vadd.f32 %v4748_v18, %v247_v59 }
  0xad   :  { %v357_v62 = vmul.f32 0.01, %v248_v61  ;;  %4241 = vmatmul.msk.f32.gmra.mxu0 %vm90_vm1, %v65_v60 }
  0xaf   :  { %v397_v63 = vmax.f32 %v248_v61, %v357_v62 }
  0xb1   :  { %438 = vst.msk [vmem:[#allocation2 + $0x28] sm:$0xff] %vm432_vm2, %v397_v63 }
  0xb2   :  { %v250_v0 = vpop.f32.mrf.mxu0 }
  0xb3   :  { %v251_v2 = vadd.f32 %v4748_v18, %v250_v0 }
  0xb5   :  { %v358_v3 = vmul.f32 0.01, %v251_v2  ;;  %4242 = vmatmul.msk.f32.gmra.mxu0 %vm90_vm1, %v66_v1 }
  0xb7   :  { %v398_v4 = vmax.f32 %v251_v2, %v358_v3  ;;  %v77_v2 = vld [vmem:[%s6385_s0 + $0x108] sm:$0xff] }
  0xb9   :  { %439 = vst.msk [vmem:[#allocation2 + $0x30] sm:$0xff] %vm432_vm2, %v398_v4 }
  0xba   :  { %v253_v5 = vpop.f32.mrf.mxu0 }
  0xbb   :  { %v254_v7 = vadd.f32 %v4748_v18, %v253_v5 }
  0xbd   :  { %v359_v8 = vmul.f32 0.01, %v254_v7  ;;  %4243 = vmatmul.msk.f32.gmra.mxu0 %vm90_vm1, %v67_v6 }
  0xbf   :  { %v399_v9 = vmax.f32 %v254_v7, %v359_v8  ;;  %v78_v7 = vld [vmem:[%s6385_s0 + $0x110] sm:$0xff] }
  0xc1   :  { %440 = vst.msk [vmem:[#allocation2 + $0x38] sm:$0xff] %vm432_vm2, %v399_v9 }
  0xc2   :  { %v256_v10 = vpop.f32.mrf.mxu0 }
  0xc3   :  { %v257_v12 = vadd.f32 %v4748_v18, %v256_v10 }
  0xc5   :  { %v360_v13 = vmul.f32 0.01, %v257_v12  ;;  %4244 = vmatmul.msk.f32.gmra.mxu0 %vm90_vm1, %v68_v11 }
  0xc7   :  { %v400_v14 = vmax.f32 %v257_v12, %v360_v13  ;;  %v79_v12 = vld [vmem:[%s6385_s0 + $0x118] sm:$0xff] }
  0xc8   :  { %v500_v15 = vld [vmem:[#allocation2 + $0x21] ss:$4 sm:$0xff]  ;;  %v476_v16 = vld [vmem:[#allocation2 + $0x20] ss:$4 sm:$0xff]  ;;  %v678_v17 = vld [vmem:[#allocation2 + $0x22] ss:$4 sm:$0xff] }
  0xc9   :  { %441 = vst.msk [vmem:[#allocation2 + $0x40] sm:$0xff] %vm432_vm2, %v400_v14  ;;  %4261 = vmatmul.msk.f32.gmra.mxu1 %vm432_vm2, %v500_v15  ;;  %4271 = vmatmul.msk.f32.gmra.mxu2 %vm432_vm2, %v476_v16 }
  0xca   :  { %4281 = vmatmul.msk.f32.gmra.mxu3 %vm432_vm2, %v678_v17  ;;  %v259_v19 = vpop.f32.mrf.mxu0  ;;  %v80_v17 = vld [vmem:[%s6385_s0 + $0x120] sm:$0xff] }
  0xcb   :  { %v260_v21 = vadd.f32 %v4748_v18, %v259_v19 }
  0xcd   :  { %v361_v22 = vmul.f32 0.01, %v260_v21  ;;  %4245 = vmatmul.msk.f32.gmra.mxu0 %vm90_vm1, %v69_v20 }
  0xcf   :  { %v401_v23 = vmax.f32 %v260_v21, %v361_v22 }
  0xd1   :  { %442 = vst.msk [vmem:[#allocation2 + $0x48] sm:$0xff] %vm432_vm2, %v401_v23 }
  0xd2   :  { %v262_v24 = vpop.f32.mrf.mxu0 }
  0xd3   :  { %v263_v26 = vadd.f32 %v4748_v18, %v262_v24 }
  0xd5   :  { %v362_v27 = vmul.f32 0.01, %v263_v26  ;;  %4246 = vmatmul.msk.f32.gmra.mxu0 %vm90_vm1, %v70_v25 }
  0xd7   :  { %v402_v28 = vmax.f32 %v263_v26, %v362_v27  ;;  %v81_v26 = vld [vmem:[%s6385_s0 + $0x128] sm:$0xff] }
  0xd9   :  { %443 = vst.msk [vmem:[#allocation2 + $0x50] sm:$0xff] %vm432_vm2, %v402_v28 }
  0xda   :  { %v265_v29 = vpop.f32.mrf.mxu0 }
  0xdb   :  { %v266_v31 = vadd.f32 %v4748_v18, %v265_v29 }
  0xdd   :  { %v363_v32 = vmul.f32 0.01, %v266_v31  ;;  %4247 = vmatmul.msk.f32.gmra.mxu0 %vm90_vm1, %v71_v30 }
  0xdf   :  { %v403_v33 = vmax.f32 %v266_v31, %v363_v32  ;;  %v82_v31 = vld [vmem:[%s6385_s0 + $0x130] sm:$0xff] }
  0xe1   :  { %444 = vst.msk [vmem:[#allocation2 + $0x58] sm:$0xff] %vm432_vm2, %v403_v33 }
  0xe2   :  { %v268_v34 = vpop.f32.mrf.mxu0 }
  0xe3   :  { %v269_v36 = vadd.f32 %v4748_v18, %v268_v34 }
  0xe5   :  { %v364_v37 = vmul.f32 0.01, %v269_v36  ;;  %4248 = vmatmul.msk.f32.gmra.mxu0 %vm90_vm1, %v72_v35 }
  0xe7   :  { %v404_v38 = vmax.f32 %v269_v36, %v364_v37  ;;  %v83_v36 = vld [vmem:[%s6385_s0 + $0x138] sm:$0xf] }
  0xe8   :  { %v502_v39 = vld [vmem:[#allocation2 + $0x41] ss:$4 sm:$0xff]  ;;  %v478_v40 = vld [vmem:[#allocation2 + $0x40] ss:$4 sm:$0xff]  ;;  %v680_v41 = vld [vmem:[#allocation2 + $0x42] ss:$4 sm:$0xff] }
  0xe9   :  { %445 = vst.msk [vmem:[#allocation2 + $0x60] sm:$0xff] %vm432_vm2, %v404_v38  ;;  %4262 = vmatmul.msk.f32.gmra.mxu1 %vm432_vm2, %v502_v39  ;;  %4272 = vmatmul.msk.f32.gmra.mxu2 %vm432_vm2, %v478_v40 }
  0xea   :  { %4282 = vmatmul.msk.f32.gmra.mxu3 %vm432_vm2, %v680_v41  ;;  %v271_v42 = vpop.f32.mrf.mxu0 }
  0xeb   :  { %v272_v44 = vadd.f32 %v4748_v18, %v271_v42 }
  0xed   :  { %v365_v45 = vmul.f32 0.01, %v272_v44  ;;  %4249 = vmatmul.msk.f32.gmra.mxu0 %vm90_vm1, %v73_v43 }
  0xef   :  { %v405_v46 = vmax.f32 %v272_v44, %v365_v45 }
  0xf1   :  { %446 = vst.msk [vmem:[#allocation2 + $0x68] sm:$0xff] %vm432_vm2, %v405_v46 }
  0xf2   :  { %v274_v47 = vpop.f32.mrf.mxu0 }
  0xf3   :  { %v275_v49 = vadd.f32 %v4748_v18, %v274_v47 }
  0xf5   :  { %v366_v50 = vmul.f32 0.01, %v275_v49  ;;  %4250 = vmatmul.msk.f32.gmra.mxu0 %vm90_vm1, %v74_v48 }
  0xf7   :  { %v406_v51 = vmax.f32 %v275_v49, %v366_v50 }
  0xf9   :  { %447 = vst.msk [vmem:[#allocation2 + $0x70] sm:$0xff] %vm432_vm2, %v406_v51 }
  0xfa   :  { %v277_v52 = vpop.f32.mrf.mxu0 }
  0xfb   :  { %v278_v54 = vadd.f32 %v4748_v18, %v277_v52 }
  0xfd   :  { %v367_v55 = vmul.f32 0.01, %v278_v54  ;;  %4251 = vmatmul.msk.f32.gmra.mxu0 %vm90_vm1, %v75_v53 }
  0xff   :  { %v407_v56 = vmax.f32 %v278_v54, %v367_v55  ;;  %v920_v55 = vld [vmem:[%s6387_s3 + $0x98] sm:$0xff] }
 0x100   :  { %963 = vmatpush.msrb.mxu2 %v920_v55 }
 0x101   :  { %448 = vst.msk [vmem:[#allocation2 + $0x78] sm:$0xff] %vm432_vm2, %v407_v56 }
 0x102   :  { %v280_v57 = vpop.f32.mrf.mxu0 }
 0x103   :  { %v281_v59 = vadd.f32 %v4748_v18, %v280_v57 }
 0x105   :  { %v368_v60 = vmul.f32 0.01, %v281_v59  ;;  %4252 = vmatmul.msk.f32.gmra.mxu0 %vm90_vm1, %v76_v58 }
 0x107   :  { %v408_v61 = vmax.f32 %v281_v59, %v368_v60  ;;  %v809_v60 = vld [vmem:[%s6387_s3 + $0x78] sm:$0xff] }
 0x108   :  { %v504_v62 = vld [vmem:[#allocation2 + $0x61] ss:$4 sm:$0xff]  ;;  %v480_v63 = vld [vmem:[#allocation2 + $0x60] ss:$4 sm:$0xff]  ;;  %v682_v0 = vld [vmem:[#allocation2 + $0x62] ss:$4 sm:$0xff]  ;;  %852 = vmatpush.msrb.mxu1 %v809_v60 }
 0x109   :  { %449 = vst.msk [vmem:[#allocation2 + $0x80] sm:$0xff] %vm432_vm2, %v408_v61  ;;  %4263 = vmatmul.msk.f32.gmra.mxu1 %vm432_vm2, %v504_v62  ;;  %4273 = vmatmul.msk.f32.gmra.mxu2 %vm432_vm2, %v480_v63 }
 0x10a   :  { %4283 = vmatmul.msk.f32.gmra.mxu3 %vm432_vm2, %v682_v0  ;;  %v283_v1 = vpop.f32.mrf.mxu0 }
 0x10b   :  { %v284_v3 = vadd.f32 %v4748_v18, %v283_v1 }
 0x10d   :  { %v369_v4 = vmul.f32 0.01, %v284_v3  ;;  %4253 = vmatmul.msk.f32.gmra.mxu0 %vm90_vm1, %v77_v2 }
 0x10f   :  { %v409_v5 = vmax.f32 %v284_v3, %v369_v4 }
 0x111   :  { %450 = vst.msk [vmem:[#allocation2 + $0x88] sm:$0xff] %vm432_vm2, %v409_v5 }
 0x112   :  { %v286_v6 = vpop.f32.mrf.mxu0 }
 0x113   :  { %v287_v8 = vadd.f32 %v4748_v18, %v286_v6 }
 0x115   :  { %v370_v9 = vmul.f32 0.01, %v287_v8  ;;  %4254 = vmatmul.msk.f32.gmra.mxu0 %vm90_vm1, %v78_v7 }
 0x117   :  { %v410_v10 = vmax.f32 %v287_v8, %v370_v9  ;;  %v919_v8 = vld [vmem:[%s6387_s3 + $0x90] sm:$0xff] }
 0x118   :  { %v808_v9 = vld [vmem:[%s6387_s3 + $0x70] sm:$0xff]  ;;  %964 = vmatpush.msrb.mxu2 %v919_v8 }
 0x119   :  { %451 = vst.msk [vmem:[#allocation2 + $0x90] sm:$0xff] %vm432_vm2, %v410_v10  ;;  %853 = vmatpush.msrb.mxu1 %v808_v9  ;;  %v898_v8 = vld [vmem:[#allocation2 + $0x4] ss:$4 sm:$0xff]  ;;  %v1009_v9 = vld [vmem:[#allocation2 + $0x5] ss:$4 sm:$0xff] }
 0x11a   :  { %v289_v11 = vpop.f32.mrf.mxu0 }
 0x11b   :  { %v290_v13 = vadd.f32 %v4748_v18, %v289_v11 }
 0x11d   :  { %v371_v14 = vmul.f32 0.01, %v290_v13  ;;  %4255 = vmatmul.msk.f32.gmra.mxu0 %vm90_vm1, %v79_v12 }
 0x11f   :  { %v411_v15 = vmax.f32 %v290_v13, %v371_v14 }
 0x121   :  { %452 = vst.msk [vmem:[#allocation2 + $0x98] sm:$0xff] %vm432_vm2, %v411_v15 }
 0x122   :  { %v292_v16 = vpop.f32.mrf.mxu0 }
 0x123   :  { %v293_v19 = vadd.f32 %v4748_v18, %v292_v16 }
 0x125   :  { %v372_v20 = vmul.f32 0.01, %v293_v19  ;;  %4256 = vmatmul.msk.f32.gmra.mxu0 %vm90_vm1, %v80_v17 }
 0x127   :  { %v412_v21 = vmax.f32 %v293_v19, %v372_v20  ;;  %v918_v19 = vld [vmem:[%s6387_s3 + $0x88] sm:$0xff] }
 0x128   :  { %v506_v22 = vld [vmem:[#allocation2 + $0x81] ss:$4 sm:$0xff]  ;;  %v482_v23 = vld [vmem:[#allocation2 + $0x80] ss:$4 sm:$0xff]  ;;  %v684_v24 = vld [vmem:[#allocation2 + $0x82] ss:$4 sm:$0xff]  ;;  %965 = vmatpush.msrb.mxu2 %v918_v19 }
 0x129   :  { %453 = vst.msk [vmem:[#allocation2 + $0xa0] sm:$0xff] %vm432_vm2, %v412_v21  ;;  %4264 = vmatmul.msk.f32.gmra.mxu1 %vm432_vm2, %v506_v22  ;;  %4274 = vmatmul.msk.f32.gmra.mxu2 %vm432_vm2, %v482_v23  ;;  %v793_v19 = vld [vmem:[#allocation2 + $0x63] ss:$4 sm:$0xff] }
 0x12a   :  { %4284 = vmatmul.msk.f32.gmra.mxu3 %vm432_vm2, %v684_v24  ;;  %v295_v25 = vpop.f32.mrf.mxu0 }
 0x12b   :  { %v296_v27 = vadd.f32 %v4748_v18, %v295_v25 }
 0x12d   :  { %v373_v28 = vmul.f32 0.01, %v296_v27  ;;  %4257 = vmatmul.msk.f32.gmra.mxu0 %vm90_vm1, %v81_v26 }
 0x12f   :  { %v413_v29 = vmax.f32 %v296_v27, %v373_v28  ;;  %v807_v27 = vld [vmem:[%s6387_s3 + $0x68] sm:$0xff] }
 0x130   :  { %854 = vmatpush.msrb.mxu1 %v807_v27 }
 0x131   :  { %454 = vst.msk [vmem:[#allocation2 + $0xa8] sm:$0xff] %vm432_vm2, %v413_v29 }
 0x132   :  { %v298_v30 = vpop.f32.mrf.mxu0 }
 0x133   :  { %v299_v32 = vadd.f32 %v4748_v18, %v298_v30 }
 0x135   :  { %v374_v33 = vmul.f32 0.01, %v299_v32  ;;  %4258 = vmatmul.msk.f32.gmra.mxu0 %vm90_vm1, %v82_v31 }
 0x137   :  { %v414_v34 = vmax.f32 %v299_v32, %v374_v33 }
 0x139   :  { %455 = vst.msk [vmem:[#allocation2 + $0xb0] sm:$0xff] %vm432_vm2, %v414_v34 }
 0x13a   :  { %v301_v35 = vpop.f32.mrf.mxu0 }
 0x13b   :  { %v302_v37 = vadd.f32 %v4748_v18, %v301_v35 }
 0x13d   :  { %v375_v38 = vmul.f32 0.01, %v302_v37  ;;  %4259 = vmatmul.msk.f32.gmra.mxu0 %vm90_vm1, %v83_v36  ;;  %v917_v36 = vld [vmem:[%s6387_s3 + $0x80] sm:$0xff] }
 0x13e   :  { %966 = vmatpush.msrb.mxu2 %v917_v36 }
 0x13f   :  { %v415_v39 = vmax.f32 %v302_v37, %v375_v38  ;;  %v806_v37 = vld [vmem:[%s6387_s3 + $0x60] sm:$0xff] }
 0x140   :  { %855 = vmatpush.msrb.mxu1 %v806_v37 }
 0x141   :  { %456 = vst.msk [vmem:[#allocation2 + $0xb8] sm:$0xff] %vm432_vm2, %v415_v39 }
 0x142   :  { %v304_v40 = vpop.f32.mrf.mxu0 }
 0x143   :  { %v305_v41 = vadd.f32 %v4748_v18, %v304_v40 }
 0x145   :  { %v376_v42 = vmul.f32 0.01, %v305_v41 }
 0x147   :  { %v416_v43 = vmax.f32 %v305_v41, %v376_v42 }
 0x148   :  { %v508_v44 = vld [vmem:[#allocation2 + $0xa1] ss:$4 sm:$0xff]  ;;  %v484_v45 = vld [vmem:[#allocation2 + $0xa0] ss:$4 sm:$0xff]  ;;  %v686_v46 = vld [vmem:[#allocation2 + $0xa2] ss:$4 sm:$0xff] }
 0x149   :  { %457 = vst.msk [vmem:[#allocation2 + $0xc0] sm:$0xff] %vm432_vm2, %v416_v43  ;;  %4265 = vmatmul.msk.f32.gmra.mxu1 %vm432_vm2, %v508_v44  ;;  %4275 = vmatmul.msk.f32.gmra.mxu2 %vm432_vm2, %v484_v45  ;;  %v1031_v43 = vld [vmem:[%s6387_s3 + $0xb8] sm:$0xff]  ;;  %v1030_v44 = vld [vmem:[%s6387_s3 + $0xb0] sm:$0xff] }
 0x14a   :  { %4285 = vmatmul.msk.f32.gmra.mxu3 %vm432_vm2, %v686_v46  ;;  %v307_v47 = vpop.f32.mrf.mxu0  ;;  %v797_v27 = vld [vmem:[#allocation2 + $0xa3] ss:$4 sm:$0xff] }
 0x14b   :  { %v308_v48 = vadd.f32 %v4748_v18, %v307_v47  ;;  %1074 = vmatpush.msrb.mxu3 %v1031_v43  ;;  %v1029_v47 = vld [vmem:[%s6387_s3 + $0xa8] sm:$0xff] }
 0x14d   :  { %v377_v49 = vmul.f32 0.01, %v308_v48  ;;  %1075 = vmatpush.msrb.mxu3 %v1030_v44 }
 0x14f   :  { %v417_v50 = vmax.f32 %v308_v48, %v377_v49  ;;  %1076 = vmatpush.msrb.mxu3 %v1029_v47  ;;  %v1028_v49 = vld [vmem:[%s6387_s3 + $0xa0] sm:$0xff] }
 0x151   :  { %458 = vst.msk [vmem:[#allocation2 + $0xc8] sm:$0xff] %vm432_vm2, %v417_v50  ;;  %1077 = vmatpush.msrb.mxu3 %v1028_v49 }
 0x152   :  { %v310_v51 = vpop.f32.mrf.mxu0 }
 0x153   :  { %v311_v52 = vadd.f32 %v4748_v18, %v310_v51 }
 0x155   :  { %v378_v53 = vmul.f32 0.01, %v311_v52 }
 0x157   :  { %v418_v54 = vmax.f32 %v311_v52, %v378_v53 }
 0x159   :  { %459 = vst.msk [vmem:[#allocation2 + $0xd0] sm:$0xff] %vm432_vm2, %v418_v54  ;;  %v1253_v54 = vld [vmem:[%s6387_s3 + $0xf8] sm:$0xff] }
 0x15a   :  { %v313_v56 = vpop.f32.mrf.mxu0  ;;  %1296 = vmatpush.msra.mxu2 %v1253_v54 }
 0x15b   :  { %v314_v57 = vadd.f32 %v4748_v18, %v313_v56 }
 0x15d   :  { %v379_v58 = vmul.f32 0.01, %v314_v57 }
 0x15f   :  { %v419_v59 = vmax.f32 %v314_v57, %v379_v58  ;;  %v1142_v58 = vld [vmem:[%s6387_s3 + $0xd8] sm:$0xff] }
 0x160   :  { %1185 = vmatpush.msra.mxu1 %v1142_v58 }
 0x161   :  { %460 = vst.msk [vmem:[#allocation2 + $0xd8] sm:$0xff] %vm432_vm2, %v419_v59 }
 0x162   :  { %v316_v61 = vpop.f32.mrf.mxu0 }
 0x163   :  { %v317_v62 = vadd.f32 %v4748_v18, %v316_v61 }
 0x165   :  { %v380_v63 = vmul.f32 0.01, %v317_v62 }
 0x167   :  { %v420_v0 = vmax.f32 %v317_v62, %v380_v63 }
 0x168   :  { %v510_v1 = vld [vmem:[#allocation2 + $0xc1] ss:$4 sm:$0xff]  ;;  %v486_v2 = vld [vmem:[#allocation2 + $0xc0] ss:$4 sm:$0xff]  ;;  %v688_v3 = vld [vmem:[#allocation2 + $0xc2] ss:$4 sm:$0xff] }
 0x169   :  { %461 = vst.msk [vmem:[#allocation2 + $0xe0] sm:$0xff] %vm432_vm2, %v420_v0  ;;  %4266 = vmatmul.msk.f32.gmra.mxu1 %vm432_vm2, %v510_v1  ;;  %4276 = vmatmul.msk.f32.gmra.mxu2 %vm432_vm2, %v486_v2  ;;  %v1252_v0 = vld [vmem:[%s6387_s3 + $0xf0] sm:$0xff] }
 0x16a   :  { %4286 = vmatmul.msk.f32.gmra.mxu3 %vm432_vm2, %v688_v3  ;;  %v319_v4 = vpop.f32.mrf.mxu0  ;;  %1297 = vmatpush.msra.mxu2 %v1252_v0  ;;  %v1237_v0 = vld [vmem:[#allocation2 + $0x67] ss:$4 sm:$0xff] }
 0x16b   :  { %v320_v5 = vadd.f32 %v4748_v18, %v319_v4 }
 0x16d   :  { %v381_v6 = vmul.f32 0.01, %v320_v5 }
 0x16f   :  { %v421_v7 = vmax.f32 %v320_v5, %v381_v6 }
 0x171   :  { %462 = vst.msk [vmem:[#allocation2 + $0xe8] sm:$0xff] %vm432_vm2, %v421_v7  ;;  %v1141_v7 = vld [vmem:[%s6387_s3 + $0xd0] sm:$0xff] }
 0x172   :  { %v322_v10 = vpop.f32.mrf.mxu0  ;;  %1186 = vmatpush.msra.mxu1 %v1141_v7 }
 0x173   :  { %v323_v11 = vadd.f32 %v4748_v18, %v322_v10  ;;  %v789_v10 = vld [vmem:[#allocation2 + $0x23] ss:$4 sm:$0xff] }
 0x175   :  { %v382_v12 = vmul.f32 0.01, %v323_v11 }
 0x177   :  { %v422_v13 = vmax.f32 %v323_v11, %v382_v12  ;;  %v900_v11 = vld [vmem:[#allocation2 + $0x24] ss:$4 sm:$0xff]  ;;  %v1011_v12 = vld [vmem:[#allocation2 + $0x25] ss:$4 sm:$0xff] }
 0x179   :  { %463 = vst.msk [vmem:[#allocation2 + $0xf0] sm:$0xff] %vm432_vm2, %v422_v13  ;;  %v1251_v13 = vld [vmem:[%s6387_s3 + $0xe8] sm:$0xff] }
 0x17a   :  { %v325_v14 = vpop.f32.mrf.mxu0  ;;  %1298 = vmatpush.msra.mxu2 %v1251_v13  ;;  %v1132_v13 = vld [vmem:[#allocation2 + $0xc6] ss:$4 sm:$0xff] }
 0x17b   :  { %v326_v15 = vadd.f32 %v4748_v18, %v325_v14  ;;  %v1140_v14 = vld [vmem:[%s6387_s3 + $0xc8] sm:$0xff] }
 0x17c   :  { %1187 = vmatpush.msra.mxu1 %v1140_v14  ;;  %v1243_v14 = vld [vmem:[#allocation2 + $0xc7] ss:$4 sm:$0xff] }
 0x17d   :  { %v383_v16 = vmul.f32 0.01, %v326_v15 }
 0x17f   :  { %v423_v17 = vmax.f32 %v326_v15, %v383_v16  ;;  %v791_v15 = vld [vmem:[#allocation2 + $0x43] ss:$4 sm:$0xff]  ;;  %v902_v16 = vld [vmem:[#allocation2 + $0x44] ss:$4 sm:$0xff] }
 0x181   :  { %464 = vst.msk [vmem:[#allocation2 + $0xf8] sm:$0xff] %vm432_vm2, %v423_v17  ;;  %v1013_v17 = vld [vmem:[#allocation2 + $0x45] ss:$4 sm:$0xff] }
 0x182   :  { %v328_v20 = vpop.f32.mrf.mxu0 }
 0x183   :  { %v329_v21 = vadd.f32 %v4748_v18, %v328_v20  ;;  %v904_v20 = vld [vmem:[#allocation2 + $0x64] ss:$4 sm:$0xff] }
 0x185   :  { %v384_v22 = vmul.f32 0.01, %v329_v21 }
 0x187   :  { %v424_v23 = vmax.f32 %v329_v21, %v384_v22  ;;  %v1015_v21 = vld [vmem:[#allocation2 + $0x65] ss:$4 sm:$0xff] }
 0x188   :  { %v512_v24 = vld [vmem:[#allocation2 + $0xe1] ss:$4 sm:$0xff]  ;;  %v488_v25 = vld [vmem:[#allocation2 + $0xe0] ss:$4 sm:$0xff]  ;;  %v690_v26 = vld [vmem:[#allocation2 + $0xe2] ss:$4 sm:$0xff] }
 0x189   :  { %465 = vst.msk [vmem:[#allocation2 + $0x100] sm:$0xff] %vm432_vm2, %v424_v23  ;;  %4267 = vmatmul.msk.f32.gmra.mxu1 %vm432_vm2, %v512_v24  ;;  %4277 = vmatmul.msk.f32.gmra.mxu2 %vm432_vm2, %v488_v25  ;;  %v1250_v22 = vld [vmem:[%s6387_s3 + $0xe0] sm:$0xff] }
 0x18a   :  { %4287 = vmatmul.msk.f32.gmra.mxu3 %vm432_vm2, %v690_v26  ;;  %v331_v28 = vpop.f32.mrf.mxu0  ;;  %1299 = vmatpush.msra.mxu2 %v1250_v22  ;;  %v795_v23 = vld [vmem:[#allocation2 + $0x83] ss:$4 sm:$0xff]  ;;  %v906_v24 = vld [vmem:[#allocation2 + $0x84] ss:$4 sm:$0xff]  ;;  %v1017_v25 = vld [vmem:[#allocation2 + $0x85] ss:$4 sm:$0xff] }
 0x18b   :  { %v332_v29 = vadd.f32 %v4748_v18, %v331_v28  ;;  %v1139_v26 = vld [vmem:[%s6387_s3 + $0xc0] sm:$0xff] }
 0x18c   :  { %1188 = vmatpush.msra.mxu1 %v1139_v26  ;;  %v908_v28 = vld [vmem:[#allocation2 + $0xa4] ss:$4 sm:$0xff]  ;;  %v801_v36 = vld [vmem:[#allocation2 + $0xe3] ss:$4 sm:$0xff] }
 0x18d   :  { %v385_v30 = vmul.f32 0.01, %v332_v29 }
 0x18f   :  { %v425_v31 = vmax.f32 %v332_v29, %v385_v30  ;;  %v1019_v29 = vld [vmem:[#allocation2 + $0xa5] ss:$4 sm:$0xff]  ;;  %v5070_v30 = vpop.f32.mrf.mxu1 }
 0x190   :  { %v912_v37 = vld [vmem:[#allocation2 + $0xe4] ss:$4 sm:$0xff] }
 0x191   :  { %466 = vst.msk [vmem:[#allocation2 + $0x108] sm:$0xff] %vm432_vm2, %v425_v31  ;;  %v799_v31 = vld [vmem:[#allocation2 + $0xc3] ss:$4 sm:$0xff] }
 0x192   :  { %v334_v32 = vpop.f32.mrf.mxu0 }
 0x193   :  { %v335_v33 = vadd.f32 %v4748_v18, %v334_v32  ;;  %v910_v32 = vld [vmem:[#allocation2 + $0xc4] ss:$4 sm:$0xff] }
 0x195   :  { %v386_v34 = vmul.f32 0.01, %v335_v33 }
 0x197   :  { %v426_v35 = vmax.f32 %v335_v33, %v386_v34  ;;  %v1021_v33 = vld [vmem:[#allocation2 + $0xc5] ss:$4 sm:$0xff]  ;;  %v5075_v34 = vpop.f32.mrf.mxu2 }
 0x199   :  { %467 = vst.msk [vmem:[#allocation2 + $0x110] sm:$0xff] %vm432_vm2, %v426_v35  ;;  %v5077_v35 = vpop.f32.mrf.mxu1 }
 0x19a   :  { %v337_v38 = vpop.f32.mrf.mxu0 }
 0x19b   :  { %v338_v39 = vadd.f32 %v4748_v18, %v337_v38  ;;  %v1023_v38 = vld [vmem:[#allocation2 + $0xe5] ss:$4 sm:$0xff] }
 0x19d   :  { %v387_v40 = vmul.f32 0.01, %v338_v39 }
 0x19f   :  { %v427_v41 = vmax.f32 %v338_v39, %v387_v40  ;;  %v5082_v39 = vpop.f32.mrf.mxu2 }
 0x1a1   :  { %468 = vst.msk [vmem:[#allocation2 + $0x118] sm:$0xff] %vm432_vm2, %v427_v41  ;;  %v5084_v40 = vpop.f32.mrf.mxu1 }
 0x1a2   :  { %v340_v42 = vpop.f32.mrf.mxu0 }
 0x1a3   :  { %v341_v45 = vadd.f32 %v4748_v18, %v340_v42 }
 0x1a5   :  { %v388_v46 = vmul.f32 0.01, %v341_v45 }
 0x1a7   :  { %v428_v48 = vmax.f32 %v341_v45, %v388_v46  ;;  %v5089_v44 = vpop.f32.mrf.mxu2 }
 0x1a8   :  { %v514_v50 = vld [vmem:[#allocation2 + $0x101] ss:$4 sm:$0xff]  ;;  %v490_v51 = vld [vmem:[#allocation2 + $0x100] ss:$4 sm:$0xff]  ;;  %v692_v52 = vld [vmem:[#allocation2 + $0x102] ss:$4 sm:$0xff] }
 0x1a9   :  { %469 = vst.msk [vmem:[#allocation2 + $0x120] sm:$0xff] %vm432_vm2, %v428_v48  ;;  %4268 = vmatmul.msk.f32.gmra.mxu1 %vm432_vm2, %v514_v50  ;;  %4278 = vmatmul.msk.f32.gmra.mxu2 %vm432_vm2, %v490_v51  ;;  %v803_v41 = vld [vmem:[#allocation2 + $0x103] ss:$4 sm:$0xff]  ;;  %v5091_v45 = vpop.f32.mrf.mxu1  ;;  %v1120_v51 = vld [vmem:[#allocation2 + $0x6] ss:$4 sm:$0xff] }
 0x1aa   :  { %4288 = vmatmul.msk.f32.gmra.mxu3 %vm432_vm2, %v692_v52  ;;  %v343_v53 = vpop.f32.mrf.mxu0  ;;  %v1231_v52 = vld [vmem:[#allocation2 + $0x7] ss:$4 sm:$0xff] }
 0x1ab   :  { %v344_v55 = vadd.f32 %v4748_v18, %v343_v53 }
 0x1ad   :  { %v389_v56 = vmul.f32 0.01, %v344_v55 }
 0x1af   :  { %v429_v57 = vmax.f32 %v344_v55, %v389_v56  ;;  %v5096_v49 = vpop.f32.mrf.mxu2  ;;  %v1122_v55 = vld [vmem:[#allocation2 + $0x26] ss:$4 sm:$0xff]  ;;  %v1233_v56 = vld [vmem:[#allocation2 + $0x27] ss:$4 sm:$0xff] }
 0x1b0   :  { %v914_v42 = vld [vmem:[#allocation2 + $0x104] ss:$4 sm:$0xff]  ;;  %v1025_v43 = vld [vmem:[#allocation2 + $0x105] ss:$4 sm:$0xff] }
 0x1b1   :  { %470 = vst.msk [vmem:[#allocation2 + $0x128] sm:$0xff] %vm432_vm2, %v429_v57  ;;  %v5098_v50 = vpop.f32.mrf.mxu1 }
 0x1b2   :  { %v346_v59 = vpop.f32.mrf.mxu0 }
 0x1b3   :  { %v347_v60 = vadd.f32 %v4748_v18, %v346_v59  ;;  %v1124_v59 = vld [vmem:[#allocation2 + $0x46] ss:$4 sm:$0xff] }
 0x1b5   :  { %v390_v61 = vmul.f32 0.01, %v347_v60 }
 0x1b7   :  { %v430_v62 = vmax.f32 %v347_v60, %v390_v61  ;;  %v5102_v53 = vpop.f32.mrf.mxu2  ;;  %v1235_v60 = vld [vmem:[#allocation2 + $0x47] ss:$4 sm:$0xff] }
 0x1b9   :  { %471 = vst.msk [vmem:[#allocation2 + $0x130] sm:$0xff] %vm432_vm2, %v430_v62 }
 0x1ba   :  { %v349_v63 = vpop.f32.mrf.mxu0 }
 0x1bb   :  { %v350_v1 = vadd.f32 %v4748_v18, %v349_v63  ;;  %v787_v18 = vld [vmem:[#allocation2 + $0x3] ss:$4 sm:$0xff]  ;;  %v1126_v63 = vld [vmem:[#allocation2 + $0x66] ss:$4 sm:$0xff] }
 0x1bd   :  { %v391_v2 = vmul.f32 0.01, %v350_v1 }
 0x1bf   :  { %v431_v3 = vmax.f32 %v350_v1, %v391_v2  ;;  %v5120_v1 = vpop.f32.mrf.mxu3 }
 0x1c0   :  { %v516_v4 = vld [vmem:[#allocation2 + $0x121] ss:$4 sm:$0x3f]  ;;  %v492_v5 = vld [vmem:[#allocation2 + $0x120] ss:$4 sm:$0x3f] }
 0x1c1   :  { %473 = vst.msk [vmem:[#allocation2 + $0x138] sm:$0xf] %vm472_vm3, %v431_v3  ;;  %4269 = vmatmul.msk.f32.gmra.mxu1 %vm432_vm2, %v516_v4  ;;  %4279 = vmatmul.msk.f32.gmra.mxu2 %vm432_vm2, %v492_v5  ;;  %v694_v6 = vld [vmem:[#allocation2 + $0x122] ss:$4 sm:$0x3f] }
 0x1c2   :  { %4289 = vmatmul.msk.f32.gmra.mxu3 %vm432_vm2, %v694_v6  ;;  %v805_v46 = vld [vmem:[#allocation2 + $0x123] ss:$4 sm:$0x3f]  ;;  %v1128_v4 = vld [vmem:[#allocation2 + $0x86] ss:$4 sm:$0xff] }
 0x1c3   :  { %v1239_v5 = vld [vmem:[#allocation2 + $0x87] ss:$4 sm:$0xff] }
 0x1c6   :  { %v5104_v54 = vpop.f32.mrf.mxu1 }
 0x1c7   :  { %v5128_v6 = vpop.f32.mrf.mxu3 }
 0x1c8   :  { %v916_v47 = vld [vmem:[#allocation2 + $0x124] ss:$4 sm:$0x3f]  ;;  %v1027_v48 = vld [vmem:[#allocation2 + $0x125] ss:$4 sm:$0x3f] }
 0x1c9   :  { %4290 = vmatmul.msk.f32.vlgmr.msrb.gmra.mxu1 %vm432_vm2, %v787_v18  ;;  %4300 = vmatmul.msk.f32.vlgmr.msrb.gmra.mxu2 %vm432_vm2, %v898_v8  ;;  %v1130_v8 = vld [vmem:[#allocation2 + $0xa6] ss:$4 sm:$0xff] }
 0x1ca   :  { %4310 = vmatmul.msk.f32.vlgmr.msrb.gmra.mxu3 %vm432_vm2, %v1009_v9  ;;  %v1241_v9 = vld [vmem:[#allocation2 + $0xa7] ss:$4 sm:$0xff] }
 0x1cc   :  { %v5108_v57 = vpop.f32.mrf.mxu2 }
 0x1d1   :  { %4291 = vmatmul.msk.f32.gmra.mxu1 %vm432_vm2, %v789_v10  ;;  %4301 = vmatmul.msk.f32.gmra.mxu2 %vm432_vm2, %v900_v11  ;;  %v5136_v10 = vpop.f32.mrf.mxu3 }
 0x1d2   :  { %4311 = vmatmul.msk.f32.gmra.mxu3 %vm432_vm2, %v1011_v12 }
 0x1d9   :  { %4292 = vmatmul.msk.f32.gmra.mxu1 %vm432_vm2, %v791_v15  ;;  %4302 = vmatmul.msk.f32.gmra.mxu2 %vm432_vm2, %v902_v16  ;;  %v5142_v15 = vpop.f32.mrf.mxu3 }
 0x1da   :  { %4312 = vmatmul.msk.f32.gmra.mxu3 %vm432_vm2, %v1013_v17 }
 0x1e1   :  { %4293 = vmatmul.msk.f32.gmra.mxu1 %vm432_vm2, %v793_v19  ;;  %4303 = vmatmul.msk.f32.gmra.mxu2 %vm432_vm2, %v904_v20  ;;  %v1134_v19 = vld [vmem:[#allocation2 + $0xe6] ss:$4 sm:$0xff]  ;;  %v1245_v20 = vld [vmem:[#allocation2 + $0xe7] ss:$4 sm:$0xff] }
 0x1e2   :  { %4313 = vmatmul.msk.f32.gmra.mxu3 %vm432_vm2, %v1015_v21  ;;  %v5148_v21 = vpop.f32.mrf.mxu3 }
 0x1e6   :  { %v5110_v58 = vpop.f32.mrf.mxu1 }
 0x1e9   :  { %4294 = vmatmul.msk.f32.gmra.mxu1 %vm432_vm2, %v795_v23  ;;  %4304 = vmatmul.msk.f32.gmra.mxu2 %vm432_vm2, %v906_v24  ;;  %v1136_v24 = vld [vmem:[#allocation2 + $0x106] ss:$4 sm:$0xff] }
 0x1ea   :  { %4314 = vmatmul.msk.f32.gmra.mxu3 %vm432_vm2, %v1017_v25  ;;  %v1247_v25 = vld [vmem:[#allocation2 + $0x107] ss:$4 sm:$0xff]  ;;  %v5156_v26 = vpop.f32.mrf.mxu3 }
 0x1ec   :  { %v5114_v61 = vpop.f32.mrf.mxu2 }
 0x1f1   :  { %4295 = vmatmul.msk.f32.gmra.mxu1 %vm432_vm2, %v797_v27  ;;  %4305 = vmatmul.msk.f32.gmra.mxu2 %vm432_vm2, %v908_v28 }
 0x1f2   :  { %4315 = vmatmul.msk.f32.gmra.mxu3 %vm432_vm2, %v1019_v29  ;;  %v1138_v29 = vld [vmem:[#allocation2 + $0x126] ss:$4 sm:$0x3f] }
 0x1f9   :  { %4296 = vmatmul.msk.f32.gmra.mxu1 %vm432_vm2, %v799_v31  ;;  %4306 = vmatmul.msk.f32.gmra.mxu2 %vm432_vm2, %v910_v32  ;;  %v1249_v31 = vld [vmem:[#allocation2 + $0x127] ss:$4 sm:$0x3f]  ;;  %v5164_v32 = vpop.f32.mrf.mxu3 }
 0x1fa   :  { %4316 = vmatmul.msk.f32.gmra.mxu3 %vm432_vm2, %v1021_v33 }
 0x201   :  { %4297 = vmatmul.msk.f32.gmra.mxu1 %vm432_vm2, %v801_v36  ;;  %4307 = vmatmul.msk.f32.gmra.mxu2 %vm432_vm2, %v912_v37  ;;  %v1407_v37 = vld [vmem:[%s6389_s5 + $0x38] sm:$0xff] }
 0x202   :  { %4317 = vmatmul.msk.f32.gmra.mxu3 %vm432_vm2, %v1023_v38 }
 0x203   :  { %1435 = vmatpush.msra.mxu3 %v1407_v37  ;;  %v5232_v37 = vld [vmem:[%s6388_s4] ss:$0 sm:$0xff] }
 0x206   :  { %v5116_v62 = vpop.f32.mrf.mxu1 }
 0x209   :  { %4298 = vmatmul.msk.f32.gmra.mxu1 %vm432_vm2, %v803_v41  ;;  %4308 = vmatmul.msk.f32.gmra.mxu2 %vm432_vm2, %v914_v42 }
 0x20a   :  { %4318 = vmatmul.msk.f32.gmra.mxu3 %vm432_vm2, %v1025_v43 }
 0x20c   :  { %v5122_v2 = vpop.f32.mrf.mxu2 }
 0x20d   :  { %v5173_v38 = vpop.f32.mrf.mxu3 }
 0x211   :  { %4299 = vmatmul.msk.f32.gmra.mxu1 %vm432_vm2, %v805_v46  ;;  %4309 = vmatmul.msk.f32.gmra.mxu2 %vm432_vm2, %v916_v47 }
 0x212   :  { %4319 = vmatmul.msk.f32.gmra.mxu3 %vm432_vm2, %v1027_v48  ;;  %v1406_v48 = vld [vmem:[%s6389_s5 + $0x30] sm:$0xff] }
 0x213   :  { %1436 = vmatpush.msra.mxu3 %v1406_v48  ;;  %v1573_v48 = vld [vmem:[%s6389_s5 + $0x68] sm:$0xff] }
 0x219   :  { %4320 = vmatmul.msk.f32.vlgmr.msra.gmra.mxu1 %vm432_vm2, %v1120_v51  ;;  %4330 = vmatmul.msk.f32.vlgmr.msra.gmra.mxu2 %vm432_vm2, %v1231_v52 }
 0x221   :  { %4321 = vmatmul.msk.f32.gmra.mxu1 %vm432_vm2, %v1122_v55  ;;  %4331 = vmatmul.msk.f32.gmra.mxu2 %vm432_vm2, %v1233_v56 }
 0x226   :  { %v5124_v3 = vpop.f32.mrf.mxu1 }
 0x229   :  { %4322 = vmatmul.msk.f32.gmra.mxu1 %vm432_vm2, %v1124_v59  ;;  %4332 = vmatmul.msk.f32.gmra.mxu2 %vm432_vm2, %v1235_v60 }
 0x22c   :  { %v5130_v7 = vpop.f32.mrf.mxu2 }
 0x22d   :  { %v5179_v43 = vpop.f32.mrf.mxu3 }
 0x231   :  { %4323 = vmatmul.msk.f32.gmra.mxu1 %vm432_vm2, %v1126_v63  ;;  %4333 = vmatmul.msk.f32.gmra.mxu2 %vm432_vm2, %v1237_v0  ;;  %v646_v0 = vadd.f32 %v5075_v34, %v5070_v30  ;;  %v1575_v30 = vld [vmem:[%s6389_s5 + $0x78] sm:$0xff]  ;;  %v1404_v34 = vld [vmem:[%s6389_s5 + $0x20] sm:$0xff] }
 0x232   :  { %1603 = vmatpush.msrb.mxu2 %v1575_v30 }
 0x239   :  { %4324 = vmatmul.msk.f32.gmra.mxu1 %vm432_vm2, %v1128_v4  ;;  %4334 = vmatmul.msk.f32.gmra.mxu2 %vm432_vm2, %v1239_v5 }
 0x23e   :  { %v5132_v18 = vpop.f32.mrf.mxu1 }
 0x241   :  { %4325 = vmatmul.msk.f32.gmra.mxu1 %vm432_vm2, %v1130_v8  ;;  %4335 = vmatmul.msk.f32.gmra.mxu2 %vm432_vm2, %v1241_v9  ;;  %v776_v8 = vadd.f32 %v5120_v1, %v646_v0 }
 0x244   :  { %v5138_v11 = vpop.f32.mrf.mxu2 }
 0x245   :  { %v5188_v51 = vpop.f32.mrf.mxu3 }
 0x246   :  { %v857_v12 = vpop.f32.mrf.mxu1 }
 0x247   :  { %v887_v9 = vadd.f32 %v857_v12, %v776_v8  ;;  %v1512_v12 = vld [vmem:[%s6389_s5 + $0x58] sm:$0xff] }
 0x248   :  { %1540 = vmatpush.msrb.mxu1 %v1512_v12 }
 0x249   :  { %4326 = vmatmul.msk.f32.gmra.mxu1 %vm432_vm2, %v1132_v13  ;;  %4336 = vmatmul.msk.f32.gmra.mxu2 %vm432_vm2, %v1243_v14  ;;  %v1405_v13 = vld [vmem:[%s6389_s5 + $0x28] sm:$0xff] }
 0x24a   :  { %1437 = vmatpush.msra.mxu3 %v1405_v13  ;;  %v1572_v13 = vld [vmem:[%s6389_s5 + $0x60] sm:$0xff] }
 0x24c   :  { %v968_v16 = vpop.f32.mrf.mxu2  ;;  %1438 = vmatpush.msra.mxu3 %v1404_v34 }
 0x24d   :  { %v1079_v59 = vpop.f32.mrf.mxu3 }
 0x24e   :  { %v5144_v17 = vpop.f32.mrf.mxu1 }
 0x251   :  { %4327 = vmatmul.msk.f32.gmra.mxu1 %vm432_vm2, %v1134_v19  ;;  %4337 = vmatmul.msk.f32.gmra.mxu2 %vm432_vm2, %v1245_v20  ;;  %v649_v19 = vadd.f32 %v5082_v39, %v5077_v35  ;;  %v998_v20 = vadd.f32 %v968_v16, %v887_v9  ;;  %v1511_v39 = vld [vmem:[%s6389_s5 + $0x50] sm:$0xff]  ;;  %v1509_v9 = vld [vmem:[%s6389_s5 + $0x40] sm:$0xff] }
 0x252   :  { %v1574_v16 = vld [vmem:[%s6389_s5 + $0x70] sm:$0xff]  ;;  %1541 = vmatpush.msrb.mxu1 %v1511_v39 }
 0x253   :  { %v1109_v35 = vadd.f32 %v1079_v59, %v998_v20  ;;  %1604 = vmatpush.msrb.mxu2 %v1574_v16 }
 0x254   :  { %v5150_v22 = vpop.f32.mrf.mxu2 }
 0x255   :  { %v1082_v5 = vpop.f32.mrf.mxu3  ;;  %1605 = vmatpush.msrb.mxu2 %v1573_v48 }
 0x256   :  { %v5152_v23 = vpop.f32.mrf.mxu1 }
 0x257   :  { %1606 = vmatpush.msrb.mxu2 %v1572_v13 }
 0x259   :  { %4328 = vmatmul.msk.f32.gmra.mxu1 %vm432_vm2, %v1136_v24  ;;  %4338 = vmatmul.msk.f32.gmra.mxu2 %vm432_vm2, %v1247_v25  ;;  %v777_v24 = vadd.f32 %v5128_v6, %v649_v19  ;;  %v1510_v6 = vld [vmem:[%s6389_s5 + $0x48] sm:$0xff] }
 0x25a   :  { %1542 = vmatpush.msrb.mxu1 %v1510_v6 }
 0x25c   :  { %v5158_v27 = vpop.f32.mrf.mxu2  ;;  %1543 = vmatpush.msrb.mxu1 %v1509_v9 }
 0x25d   :  { %v1085_v25 = vpop.f32.mrf.mxu3 }
 0x25e   :  { %v5160_v28 = vpop.f32.mrf.mxu1 }
 0x261   :  { %4329 = vmatmul.msk.f32.gmra.mxu1 %vm432_vm2, %v1138_v29  ;;  %4339 = vmatmul.msk.f32.gmra.mxu2 %vm432_vm2, %v1249_v31  ;;  %v888_v29 = vadd.f32 %v5144_v17, %v777_v24  ;;  %v652_v17 = vadd.f32 %v5089_v44, %v5084_v40 }
 0x263   :  { %v999_v0 = vadd.f32 %v5150_v22, %v888_v29  ;;  %v778_v30 = vadd.f32 %v5136_v10, %v652_v17 }
 0x264   :  { %v5166_v33 = vpop.f32.mrf.mxu2 }
 0x265   :  { %v1110_v34 = vadd.f32 %v1082_v5, %v999_v0  ;;  %v889_v44 = vadd.f32 %v5152_v23, %v778_v30  ;;  %v1088_v12 = vpop.f32.mrf.mxu3 }
 0x266   :  { %v5168_v36 = vpop.f32.mrf.mxu1 }
 0x267   :  { %v1000_v39 = vadd.f32 %v5158_v27, %v889_v44 }
 0x269   :  { %v1111_v5 = vadd.f32 %v1085_v25, %v1000_v39  ;;  %v664_v39 = vadd.f32 %v5114_v61, %v5110_v58 }
 0x26c   :  { %v5175_v41 = vpop.f32.mrf.mxu2 }
 0x26d   :  { %v1091_v0 = vpop.f32.mrf.mxu3 }
 0x26e   :  { %v5177_v42 = vpop.f32.mrf.mxu1 }
 0x274   :  { %v5181_v46 = vpop.f32.mrf.mxu2 }
 0x275   :  { %v1094_v44 = vpop.f32.mrf.mxu3 }
 0x276   :  { %v5183_v47 = vpop.f32.mrf.mxu1 }
 0x27c   :  { %v5190_v52 = vpop.f32.mrf.mxu2 }
 0x27e   :  { %v5192_v55 = vpop.f32.mrf.mxu1 }
 0x284   :  { %v5194_v56 = vpop.f32.mrf.mxu2 }
 0x286   :  { %v5196_v60 = vpop.f32.mrf.mxu1 }
 0x28c   :  { %v5198_v63 = vpop.f32.mrf.mxu2 }
 0x28e   :  { %v5202_v4 = vpop.f32.mrf.mxu1 }
 0x294   :  { %v5208_v14 = vpop.f32.mrf.mxu2 }
 0x296   :  { %v1190_v1 = vpop.f32.mrf.mxu1 }
 0x297   :  { %v1220_v31 = vadd.f32 %v1190_v1, %v1109_v35  ;;  %v655_v35 = vadd.f32 %v5096_v49, %v5091_v45  ;;  %v658_v45 = vadd.f32 %v5102_v53, %v5098_v50  ;;  %v661_v50 = vadd.f32 %v5108_v57, %v5104_v54 }
 0x299   :  { %v779_v10 = vadd.f32 %v5142_v15, %v655_v35  ;;  %v780_v15 = vadd.f32 %v5148_v21, %v658_v45 }
 0x29b   :  { %v890_v23 = vadd.f32 %v5160_v28, %v779_v10  ;;  %v891_v28 = vadd.f32 %v5168_v36, %v780_v15  ;;  %v781_v36 = vadd.f32 %v5156_v26, %v661_v50  ;;  %v1396_v26 = vld [vmem:[%s6389_s5 + $0x18] sm:$0xff]  ;;  %v782_v10 = vadd.f32 %v5164_v32, %v664_v39  ;;  %v1395_v32 = vld [vmem:[%s6389_s5 + $0x10] sm:$0xff]  ;;  %v1394_v15 = vld [vmem:[%s6389_s5 + $0x8] sm:$0xff] }
 0x29c   :  { %v1301_v59 = vpop.f32.mrf.mxu2  ;;  %1482 = vmatpush.msrb.mxu3 %v1396_v26 }
 0x29d   :  { %v1331_v8 = vadd.f32 %v1301_v59, %v1220_v31  ;;  %v1001_v49 = vadd.f32 %v5166_v33, %v890_v23  ;;  %v1002_v53 = vadd.f32 %v5175_v41, %v891_v28 }
 0x29e   :  { %v1193_v19 = vpop.f32.mrf.mxu1  ;;  %1483 = vmatpush.msrb.mxu3 %v1395_v32 }
 0x29f   :  { %v1345_v20 = vadd.f32 %v5232_v37, %v1331_v8  ;;  %v1221_v1 = vadd.f32 %v1193_v19, %v1110_v34  ;;  %v1112_v25 = vadd.f32 %v1088_v12, %v1001_v49  ;;  %v892_v12 = vadd.f32 %v5177_v42, %v781_v36 }
 0x2a0   :  { %1484 = vmatpush.msrb.mxu3 %v1394_v15  ;;  %v673_v36 = vadd.f32 %v5138_v11, %v5132_v18 }
 0x2a1   :  { %v1355_v40 = vmul.f32 0.01, %v1345_v20 }
 0x2a3   :  { %v1365_v22 = vmax.f32 %v1345_v20, %v1355_v40 }
 0x2a4   :  { %v1304_v24 = vpop.f32.mrf.mxu2 }
 0x2a5   :  { %1375 = vst.msk [vmem:[#allocation2] sm:$0xff] %vm432_vm2, %v1365_v22  ;;  %v1332_v16 = vadd.f32 %v1304_v24, %v1221_v1  ;;  %v1113_v22 = vadd.f32 %v1091_v0, %v1002_v53 }
 0x2a6   :  { %v1196_v29 = vpop.f32.mrf.mxu1 }
 0x2a7   :  { %v1346_v31 = vadd.f32 %v5232_v37, %v1332_v16  ;;  %v1222_v59 = vadd.f32 %v1196_v29, %v1111_v5  ;;  %v1003_v16 = vadd.f32 %v5181_v46, %v892_v12  ;;  %v1097_v46 = vpop.f32.mrf.mxu3  ;;  %v893_v5 = vadd.f32 %v5183_v47, %v782_v10 }
 0x2a9   :  { %v1356_v6 = vmul.f32 0.01, %v1346_v31  ;;  %v1114_v58 = vadd.f32 %v1094_v44, %v1003_v16  ;;  %v1004_v45 = vadd.f32 %v5190_v52, %v893_v5 }
 0x2ab   :  { %v1366_v48 = vmax.f32 %v1346_v31, %v1356_v6 }
 0x2ac   :  { %v1307_v17 = vpop.f32.mrf.mxu2 }
 0x2ad   :  { %1376 = vst.msk [vmem:[#allocation2 + $0x8] sm:$0xff] %vm432_vm2, %v1366_v48  ;;  %v1333_v27 = vadd.f32 %v1307_v17, %v1222_v59  ;;  %v667_v17 = vadd.f32 %v5122_v2, %v5116_v62 }
 0x2ae   :  { %v1199_v8 = vpop.f32.mrf.mxu1 }
 0x2af   :  { %v1347_v9 = vadd.f32 %v5232_v37, %v1333_v27  ;;  %v1223_v20 = vadd.f32 %v1199_v8, %v1112_v25  ;;  %v783_v0 = vadd.f32 %v5173_v38, %v667_v17  ;;  %v1115_v8 = vadd.f32 %v1097_v46, %v1004_v45  ;;  %v1100_v25 = vpop.f32.mrf.mxu3 }
 0x2b1   :  { %v1357_v13 = vmul.f32 0.01, %v1347_v9  ;;  %v894_v62 = vadd.f32 %v5192_v55, %v783_v0  ;;  %v1393_v55 = vld [vmem:[%s6389_s5] sm:$0xff] }
 0x2b2   :  { %1485 = vmatpush.msrb.mxu3 %v1393_v55 }
 0x2b3   :  { %v1367_v19 = vmax.f32 %v1347_v9, %v1357_v13  ;;  %v1005_v38 = vadd.f32 %v5194_v56, %v894_v62 }
 0x2b4   :  { %v1310_v30 = vpop.f32.mrf.mxu2  ;;  %v1397_v34 = vld [vmem:[#allocation2 + $0x1] ss:$2 sm:$0xff] }
 0x2b5   :  { %1377 = vst.msk [vmem:[#allocation2 + $0x10] sm:$0xff] %vm432_vm2, %v1367_v19  ;;  %v1334_v33 = vadd.f32 %v1310_v30, %v1223_v20  ;;  %4340 = vmatmul.msk.f32.vlgmr.msra.gmra.mxu3 %vm432_vm2, %v1397_v34  ;;  %v670_v20 = vadd.f32 %v5130_v7, %v5124_v3  ;;  %v1116_v3 = vadd.f32 %v1100_v25, %v1005_v38 }
 0x2b6   :  { %v1202_v40 = vpop.f32.mrf.mxu1 }
 0x2b7   :  { %v1348_v21 = vadd.f32 %v5232_v37, %v1334_v33  ;;  %v1224_v35 = vadd.f32 %v1202_v40, %v1113_v22  ;;  %v784_v53 = vadd.f32 %v5179_v43, %v670_v20  ;;  %v1103_v12 = vpop.f32.mrf.mxu3  ;;  %v1742_v20 = vld [vmem:[%s6391_s7 + $0x58] sm:$0xff] }
 0x2b8   :  { %1764 = vmatpush.msra.mxu1 %v1742_v20 }
 0x2b9   :  { %v1358_v1 = vmul.f32 0.01, %v1348_v21  ;;  %v895_v56 = vadd.f32 %v5196_v60, %v784_v53  ;;  %v785_v60 = vadd.f32 %v5188_v51, %v673_v36 }
 0x2bb   :  { %v1368_v24 = vmax.f32 %v1348_v21, %v1358_v1  ;;  %v1006_v22 = vadd.f32 %v5198_v63, %v895_v56  ;;  %v1740_v56 = vld [vmem:[%s6391_s7 + $0x48] sm:$0xff] }
 0x2bc   :  { %v1313_v54 = vpop.f32.mrf.mxu2  ;;  %v1502_v57 = vld [vmem:[#allocation2 + $0x2] ss:$2 sm:$0xff]  ;;  %v1565_v41 = vld [vmem:[#allocation2 + $0x3] ss:$2 sm:$0xff] }
 0x2bd   :  { %1378 = vst.msk [vmem:[#allocation2 + $0x18] sm:$0xff] %vm432_vm2, %v1368_v24  ;;  %v1335_v29 = vadd.f32 %v1313_v54, %v1224_v35  ;;  %4350 = vmatmul.msk.f32.vlgmr.msrb.gmra.mxu1 %vm432_vm2, %v1502_v57  ;;  %4355 = vmatmul.msk.f32.vlgmr.msrb.gmra.mxu2 %vm432_vm2, %v1565_v41  ;;  %v1117_v35 = vadd.f32 %v1103_v12, %v1006_v22 }
 0x2be   :  { %v1205_v42 = vpop.f32.mrf.mxu1  ;;  %v896_v57 = vadd.f32 %v5202_v4, %v785_v60 }
 0x2bf   :  { %v1349_v31 = vadd.f32 %v5232_v37, %v1335_v29  ;;  %v1225_v23 = vadd.f32 %v1205_v42, %v1114_v58  ;;  %v1106_v26 = vpop.f32.mrf.mxu3 }
 0x2c0   :  { %v1007_v16 = vadd.f32 %v5208_v14, %v896_v57  ;;  %v1658_v57 = vld [vmem:[%s6391_s7 + $0x18] sm:$0xff] }
 0x2c1   :  { %v1359_v61 = vmul.f32 0.01, %v1349_v31 }
 0x2c3   :  { %v1369_v6 = vmax.f32 %v1349_v31, %v1359_v61  ;;  %v1118_v31 = vadd.f32 %v1106_v26, %v1007_v16 }
 0x2c4   :  { %v1316_v48 = vpop.f32.mrf.mxu2  ;;  %v1399_v59 = vld [vmem:[#allocation2 + $0x11] ss:$2 sm:$0xff]  ;;  %v1388_v32 = vld [vmem:[#allocation2 + $0x10] ss:$2 sm:$0xff] }
 0x2c5   :  { %1379 = vst.msk [vmem:[#allocation2 + $0x20] sm:$0xff] %vm432_vm2, %v1369_v6  ;;  %v1336_v49 = vadd.f32 %v1316_v48, %v1225_v23  ;;  %4341 = vmatmul.msk.f32.gmra.mxu3 %vm432_vm2, %v1399_v59 }
 0x2c6   :  { %v1208_v27 = vpop.f32.mrf.mxu1 }
 0x2c7   :  { %v1350_v47 = vadd.f32 %v5232_v37, %v1336_v49  ;;  %v1226_v52 = vadd.f32 %v1208_v27, %v1115_v8 }
 0x2c9   :  { %v1360_v9 = vmul.f32 0.01, %v1350_v47 }
 0x2cb   :  { %v1370_v2 = vmax.f32 %v1350_v47, %v1360_v9  ;;  %v1665_v9 = vld [vmem:[%s6391_s7 + $0x38] sm:$0xff] }
 0x2cc   :  { %v1319_v13 = vpop.f32.mrf.mxu2  ;;  %v1504_v28 = vld [vmem:[#allocation2 + $0x12] ss:$2 sm:$0xff]  ;;  %v1567_v19 = vld [vmem:[#allocation2 + $0x13] ss:$2 sm:$0xff]  ;;  %1687 = vmatpush.msra.mxu3 %v1665_v9 }
 0x2cd   :  { %1380 = vst.msk [vmem:[#allocation2 + $0x28] sm:$0xff] %vm432_vm2, %v1370_v2  ;;  %v1337_v30 = vadd.f32 %v1319_v13, %v1226_v52  ;;  %4351 = vmatmul.msk.f32.gmra.mxu1 %vm432_vm2, %v1504_v28  ;;  %4356 = vmatmul.msk.f32.gmra.mxu2 %vm432_vm2, %v1567_v19  ;;  %v1664_v52 = vld [vmem:[%s6391_s7 + $0x30] sm:$0xff]  ;;  %v1663_v13 = vld [vmem:[%s6391_s7 + $0x28] sm:$0xff]  ;;  %v1662_v28 = vld [vmem:[%s6391_s7 + $0x20] sm:$0xff] }
 0x2ce   :  { %v1211_v34 = vpop.f32.mrf.mxu1  ;;  %1688 = vmatpush.msra.mxu3 %v1664_v52  ;;  %v1787_v19 = vld [vmem:[%s6391_s7 + $0x78] sm:$0xff] }
 0x2cf   :  { %v1351_v50 = vadd.f32 %v5232_v37, %v1337_v30  ;;  %v1227_v40 = vadd.f32 %v1211_v34, %v1116_v3  ;;  %1809 = vmatpush.msra.mxu2 %v1787_v19  ;;  %v1741_v34 = vld [vmem:[%s6391_s7 + $0x50] sm:$0xff] }
 0x2d0   :  { %1689 = vmatpush.msra.mxu3 %v1663_v13  ;;  %1765 = vmatpush.msra.mxu1 %v1741_v34 }
 0x2d1   :  { %v1361_v7 = vmul.f32 0.01, %v1351_v50 }
 0x2d2   :  { %1690 = vmatpush.msra.mxu3 %v1662_v28  ;;  %1766 = vmatpush.msra.mxu1 %v1740_v56 }
 0x2d3   :  { %v1371_v33 = vmax.f32 %v1351_v50, %v1361_v7  ;;  %v1786_v50 = vld [vmem:[%s6391_s7 + $0x70] sm:$0xff]  ;;  %v5368_v7 = vld [vmem:[%s6390_s6] ss:$0 sm:$0xff] }
 0x2d4   :  { %v1322_v21 = vpop.f32.mrf.mxu2  ;;  %v1400_v44 = vld [vmem:[#allocation2 + $0x21] ss:$2 sm:$0xff]  ;;  %v1389_v27 = vld [vmem:[#allocation2 + $0x20] ss:$2 sm:$0xff]  ;;  %1810 = vmatpush.msra.mxu2 %v1786_v50 }
 0x2d5   :  { %1381 = vst.msk [vmem:[#allocation2 + $0x30] sm:$0xff] %vm432_vm2, %v1371_v33  ;;  %v1338_v1 = vadd.f32 %v1322_v21, %v1227_v40  ;;  %4342 = vmatmul.msk.f32.gmra.mxu3 %vm432_vm2, %v1400_v44  ;;  %v1785_v33 = vld [vmem:[%s6391_s7 + $0x68] sm:$0xff]  ;;  %v1739_v21 = vld [vmem:[%s6391_s7 + $0x40] sm:$0xff] }
 0x2d6   :  { %v1214_v43 = vpop.f32.mrf.mxu1  ;;  %1811 = vmatpush.msra.mxu2 %v1785_v33  ;;  %v1784_v44 = vld [vmem:[%s6391_s7 + $0x60] sm:$0xff]  ;;  %1767 = vmatpush.msra.mxu1 %v1739_v21  ;;  %v1851_v33 = vld [vmem:[%s6393_s9 + $0x30] sm:$0xff]  ;;  %v1901_v21 = vld [vmem:[%s6393_s9 + $0x48] sm:$0xff] }
 0x2d7   :  { %v1352_v24 = vadd.f32 %v5232_v37, %v1338_v1  ;;  %v1228_v39 = vadd.f32 %v1214_v43, %v1117_v35 }
 0x2d8   :  { %1812 = vmatpush.msra.mxu2 %v1784_v44  ;;  %v1850_v44 = vld [vmem:[%s6393_s9 + $0x28] sm:$0xff] }
 0x2d9   :  { %v1362_v54 = vmul.f32 0.01, %v1352_v24 }
 0x2db   :  { %v1372_v41 = vmax.f32 %v1352_v24, %v1362_v54 }
 0x2dc   :  { %v1325_v18 = vpop.f32.mrf.mxu2  ;;  %v1505_v11 = vld [vmem:[#allocation2 + $0x22] ss:$2 sm:$0xff]  ;;  %v1568_v63 = vld [vmem:[#allocation2 + $0x23] ss:$2 sm:$0xff] }
 0x2dd   :  { %1382 = vst.msk [vmem:[#allocation2 + $0x38] sm:$0xff] %vm432_vm2, %v1372_v41  ;;  %v1339_v29 = vadd.f32 %v1325_v18, %v1228_v39  ;;  %4352 = vmatmul.msk.f32.gmra.mxu1 %vm432_vm2, %v1505_v11  ;;  %4357 = vmatmul.msk.f32.gmra.mxu2 %vm432_vm2, %v1568_v63  ;;  %v1657_v41 = vld [vmem:[%s6391_s7 + $0x10] sm:$0xff]  ;;  %v1656_v18 = vld [vmem:[%s6391_s7 + $0x8] sm:$0xff] }
 0x2de   :  { %v1217_v42 = vpop.f32.mrf.mxu1 }
 0x2df   :  { %v1353_v51 = vadd.f32 %v5232_v37, %v1339_v29  ;;  %v1229_v58 = vadd.f32 %v1217_v42, %v1118_v31 }
 0x2e1   :  { %v1363_v4 = vmul.f32 0.01, %v1353_v51 }
 0x2e3   :  { %v1373_v10 = vmax.f32 %v1353_v51, %v1363_v4  ;;  %v1655_v4 = vld [vmem:[%s6391_s7] sm:$0xff] }
 0x2e4   :  { %v1328_v61 = vpop.f32.mrf.mxu2  ;;  %v1402_v46 = vld [vmem:[#allocation2 + $0x31] ss:$2 sm:$0xff]  ;;  %v1391_v47 = vld [vmem:[#allocation2 + $0x30] ss:$2 sm:$0xff] }
 0x2e5   :  { %1383 = vst.msk [vmem:[#allocation2 + $0x40] sm:$0xff] %vm432_vm2, %v1373_v10  ;;  %v1340_v14 = vadd.f32 %v1328_v61, %v1229_v58  ;;  %4343 = vmatmul.msk.f32.gmra.mxu3 %vm432_vm2, %v1402_v46 }
 0x2e7   :  { %v1354_v5 = vadd.f32 %v5232_v37, %v1340_v14  ;;  %v1386_v37 = vld [vmem:[#allocation2] ss:$2 sm:$0xff] }
 0x2e9   :  { %v1364_v6 = vmul.f32 0.01, %v1354_v5 }
 0x2eb   :  { %v1374_v23 = vmax.f32 %v1354_v5, %v1364_v6 }
 0x2ec   :  { %v1507_v48 = vld [vmem:[#allocation2 + $0x32] ss:$2 sm:$0xff]  ;;  %v1570_v59 = vld [vmem:[#allocation2 + $0x33] ss:$2 sm:$0xff] }
 0x2ed   :  { %4353 = vmatmul.msk.f32.gmra.mxu1 %vm432_vm2, %v1507_v48  ;;  %4358 = vmatmul.msk.f32.gmra.mxu2 %vm432_vm2, %v1570_v59  ;;  %1385 = vst.msk [vmem:[#allocation2 + $0x48] sm:$0x3f] %vm1384_vm4, %v1374_v23 }
 0x2f4   :  { %v1403_v17 = vld [vmem:[#allocation2 + $0x41] ss:$2 sm:$0x3f]  ;;  %v1508_v45 = vld [vmem:[#allocation2 + $0x42] ss:$2 sm:$0x3f] }
 0x2f5   :  { %4344 = vmatmul.msk.f32.gmra.mxu3 %vm432_vm2, %v1403_v17  ;;  %4354 = vmatmul.msk.f32.gmra.mxu1 %vm432_vm2, %v1508_v45  ;;  %v1571_v49 = vld [vmem:[#allocation2 + $0x43] ss:$2 sm:$0x3f]  ;;  %v1392_v0 = vld [vmem:[#allocation2 + $0x40] ss:$2 sm:$0x3f] }
 0x2f6   :  { %4359 = vmatmul.msk.f32.gmra.mxu2 %vm432_vm2, %v1571_v49 }
 0x2fd   :  { %4345 = vmatmul.msk.f32.vlgmr.msrb.gmra.mxu3 %vm432_vm2, %v1386_v37 }
 0x2fe   :  { %1722 = vmatpush.msrb.mxu3 %v1658_v57  ;;  %v1930_v57 = vld [vmem:[%s6393_s9 + $0x68] sm:$0xff] }
 0x300   :  { %1723 = vmatpush.msrb.mxu3 %v1657_v41 }
 0x302   :  { %1724 = vmatpush.msrb.mxu3 %v1656_v18  ;;  %v1844_v18 = vld [vmem:[%s6393_s9] sm:$0xff] }
 0x304   :  { %1725 = vmatpush.msrb.mxu3 %v1655_v4 }
 0x305   :  { %4346 = vmatmul.msk.f32.gmra.mxu3 %vm432_vm2, %v1388_v32 }
 0x30d   :  { %4347 = vmatmul.msk.f32.gmra.mxu3 %vm432_vm2, %v1389_v27 }
 0x315   :  { %4348 = vmatmul.msk.f32.gmra.mxu3 %vm432_vm2, %v1391_v47 }
 0x31d   :  { %4349 = vmatmul.msk.f32.gmra.mxu3 %vm432_vm2, %v1392_v0 }
 0x338   :  { %v1440_v8 = vpop.f32.mrf.mxu3 }
 0x33a   :  { %v1545_v38 = vpop.f32.mrf.mxu1 }
 0x340   :  { %v1608_v53 = vpop.f32.mrf.mxu2 }
 0x348   :  { %v1443_v62 = vpop.f32.mrf.mxu3 }
 0x34a   :  { %v1548_v22 = vpop.f32.mrf.mxu1 }
 0x350   :  { %v1611_v24 = vpop.f32.mrf.mxu2 }
 0x358   :  { %v1446_v2 = vpop.f32.mrf.mxu3 }
 0x35a   :  { %v1551_v11 = vpop.f32.mrf.mxu1 }
 0x360   :  { %v1614_v51 = vpop.f32.mrf.mxu2 }
 0x368   :  { %v1449_v15 = vpop.f32.mrf.mxu3 }
 0x36a   :  { %v1554_v58 = vpop.f32.mrf.mxu1 }
 0x370   :  { %v1617_v5 = vpop.f32.mrf.mxu2 }
 0x372   :  { %v1557_v32 = vpop.f32.mrf.mxu1 }
 0x378   :  { %v5345_v25 = vpop.f32.mrf.mxu3 }
 0x379   :  { %v1620_v0 = vpop.f32.mrf.mxu2 }
 0x380   :  { %v1487_v30 = vpop.f32.mrf.mxu3 }
 0x381   :  { %v1488_v55 = vadd.f32 %v1487_v30, %v1440_v8 }
 0x383   :  { %v1560_v3 = vadd.f32 %v1545_v38, %v1488_v55 }
 0x385   :  { %v1623_v40 = vadd.f32 %v1608_v53, %v1560_v3  ;;  %v1903_v3 = vld [vmem:[%s6393_s9 + $0x58] sm:$0xff] }
 0x386   :  { %1919 = vmatpush.msrb.mxu1 %v1903_v3  ;;  %v1965_v3 = vld [vmem:[%s6395_s11 + $0x18] sm:$0xff] }
 0x387   :  { %v1632_v36 = vadd.f32 %v5368_v7, %v1623_v40  ;;  %v1902_v40 = vld [vmem:[%s6393_s9 + $0x50] sm:$0xff] }
 0x388   :  { %v1490_v1 = vpop.f32.mrf.mxu3  ;;  %1920 = vmatpush.msrb.mxu1 %v1902_v40  ;;  %v4390_v40 = vld [vmem:[%s6385_s0 + $0x1a8] sm:$0xff] }
 0x389   :  { %v1637_v12 = vmul.f32 0.01, %v1632_v36  ;;  %v1491_v43 = vadd.f32 %v1490_v1, %v1443_v62  ;;  %v1932_v1 = vld [vmem:[%s6393_s9 + $0x78] sm:$0xff] }
 0x38a   :  { %1921 = vmatpush.msrb.mxu1 %v1901_v21  ;;  %1948 = vmatpush.msrb.mxu2 %v1932_v1  ;;  %v2783_v21 = vld [vmem:[%s6387_s3 + $0x58] sm:$0xff] }
 0x38b   :  { %v1642_v60 = vmax.f32 %v1632_v36, %v1637_v12  ;;  %v1561_v35 = vadd.f32 %v1548_v22, %v1491_v43  ;;  %v1849_v36 = vld [vmem:[%s6393_s9 + $0x20] sm:$0xff]  ;;  %v1847_v22 = vld [vmem:[%s6393_s9 + $0x18] sm:$0xff]  ;;  %v1846_v43 = vld [vmem:[%s6393_s9 + $0x10] sm:$0xff]  ;;  %2826 = vmatpush.msrb.mxu0 %v2783_v21 }
 0x38c   :  { %v1900_v12 = vld [vmem:[%s6393_s9 + $0x40] sm:$0xff]  ;;  %v4392_v1 = vld [vmem:[%s6385_s0 + $0x1b8] sm:$0xff] }
 0x38d   :  { %1647 = vst.msk [vmem:[#allocation2] sm:$0xff] %vm432_vm2, %v1642_v60  ;;  %v1624_v54 = vadd.f32 %v1611_v24, %v1561_v35  ;;  %v1931_v24 = vld [vmem:[%s6393_s9 + $0x70] sm:$0xff]  ;;  %1922 = vmatpush.msrb.mxu1 %v1900_v12  ;;  %v5564_v12 = vld [vmem:[%s6386_s2] ss:$0 sm:$0xff] }
 0x38e   :  { %1949 = vmatpush.msrb.mxu2 %v1931_v24 }
 0x38f   :  { %v1633_v39 = vadd.f32 %v5368_v7, %v1624_v54  ;;  %v1845_v54 = vld [vmem:[%s6393_s9 + $0x8] sm:$0xff] }
 0x390   :  { %v1493_v63 = vpop.f32.mrf.mxu3  ;;  %1950 = vmatpush.msrb.mxu2 %v1930_v57  ;;  %v4582_v57 = vld [vmem:[%s6394_s10] ss:$0 sm:$0xff] }
 0x391   :  { %v1638_v16 = vmul.f32 0.01, %v1633_v39  ;;  %v1494_v29 = vadd.f32 %v1493_v63, %v1446_v2 }
 0x393   :  { %v1643_v26 = vmax.f32 %v1633_v39, %v1638_v16  ;;  %v1562_v42 = vadd.f32 %v1551_v11, %v1494_v29  ;;  %v1929_v11 = vld [vmem:[%s6393_s9 + $0x60] sm:$0xff] }
 0x394   :  { %v4581_v16 = vld [vmem:[%s6392_s8] ss:$0 sm:$0xff]  ;;  %1951 = vmatpush.msrb.mxu2 %v1929_v11 }
 0x395   :  { %1648 = vst.msk [vmem:[#allocation2 + $0x8] sm:$0xff] %vm432_vm2, %v1643_v26  ;;  %v1625_v31 = vadd.f32 %v1614_v51, %v1562_v42  ;;  %v2173_v51 = vld [vmem:[%s6384_s1 + $0x8] sm:$0x3]  ;;  %v2172_v26 = vld [vmem:[%s6384_s1] sm:$0xff] }
 0x397   :  { %v1634_v10 = vadd.f32 %v5368_v7, %v1625_v31 }
 0x398   :  { %v1496_v61 = vpop.f32.mrf.mxu3 }
 0x399   :  { %v1639_v46 = vmul.f32 0.01, %v1634_v10  ;;  %v1497_v14 = vadd.f32 %v1496_v61, %v1449_v15 }
 0x39b   :  { %v1644_v6 = vmax.f32 %v1634_v10, %v1639_v46  ;;  %v1563_v23 = vadd.f32 %v1554_v58, %v1497_v14 }
 0x39c   :  { %v1659_v48 = vld [vmem:[#allocation2 + $0x1] ss:$2 sm:$0xff]  ;;  %v1652_v20 = vld [vmem:[#allocation2] ss:$2 sm:$0xff] }
 0x39d   :  { %1649 = vst.msk [vmem:[#allocation2 + $0x10] sm:$0xff] %vm432_vm2, %v1644_v6  ;;  %v1626_v59 = vadd.f32 %v1617_v5, %v1563_v23  ;;  %4360 = vmatmul.msk.f32.vlgmr.msra.gmra.mxu3 %vm432_vm2, %v1659_v48 }
 0x39f   :  { %v1635_v17 = vadd.f32 %v5368_v7, %v1626_v59 }
 0x3a0   :  { %v1499_v45 = vpop.f32.mrf.mxu3 }
 0x3a1   :  { %v1640_v49 = vmul.f32 0.01, %v1635_v17  ;;  %v1500_v37 = vadd.f32 %v1499_v45, %v5345_v25 }
 0x3a3   :  { %v1645_v27 = vmax.f32 %v1635_v17, %v1640_v49  ;;  %v1564_v47 = vadd.f32 %v1557_v32, %v1500_v37 }
 0x3a4   :  { %v1736_v8 = vld [vmem:[#allocation2 + $0x2] ss:$2 sm:$0xff]  ;;  %v1781_v9 = vld [vmem:[#allocation2 + $0x3] ss:$2 sm:$0xff] }
 0x3a5   :  { %1650 = vst.msk [vmem:[#allocation2 + $0x18] sm:$0xff] %vm432_vm2, %v1645_v27  ;;  %v1627_v62 = vadd.f32 %v1620_v0, %v1564_v47  ;;  %4366 = vmatmul.msk.f32.vlgmr.msra.gmra.mxu1 %vm432_vm2, %v1736_v8  ;;  %4369 = vmatmul.msk.f32.vlgmr.msra.gmra.mxu2 %vm432_vm2, %v1781_v9 }
 0x3a6   :  { %4417 = vmatpush.msk.msra.mxu1 %vm211_vm0, %v2173_v51  ;;  %v2580_v51 = vld [vmem:[%s6387_s3 + $0x10] sm:$0xff] }
 0x3a7   :  { %v1636_v2 = vadd.f32 %v5368_v7, %v1627_v62  ;;  %v1852_v7 = vld [vmem:[%s6393_s9 + $0x38] sm:$0xff] }
 0x3a8   :  { %1868 = vmatpush.msra.mxu3 %v1852_v7  ;;  %2316 = vmatpush.msra.mxu1 %v2172_v26  ;;  %v1964_v7 = vld [vmem:[%s6395_s11 + $0x10] sm:$0xff] }
 0x3a9   :  { %v1641_v52 = vmul.f32 0.01, %v1636_v2  ;;  %v2782_v26 = vld [vmem:[%s6387_s3 + $0x50] sm:$0xff] }
 0x3aa   :  { %1869 = vmatpush.msra.mxu3 %v1851_v33  ;;  %v1962_v33 = vld [vmem:[%s6395_s11] sm:$0xff]  ;;  %2827 = vmatpush.msrb.mxu0 %v2782_v26 }
 0x3ab   :  { %v1646_v15 = vmax.f32 %v1636_v2, %v1641_v52  ;;  %v4377_v52 = vld [vmem:[%s6385_s0 + $0x140] sm:$0xff] }
 0x3ac   :  { %v1660_v13 = vld [vmem:[#allocation2 + $0x11] ss:$2 sm:$0xff]  ;;  %v1653_v55 = vld [vmem:[#allocation2 + $0x10] ss:$2 sm:$0xff]  ;;  %1870 = vmatpush.msra.mxu3 %v1850_v44 }
 0x3ad   :  { %1651 = vst.msk [vmem:[#allocation2 + $0x20] sm:$0x3f] %vm1384_vm4, %v1646_v15  ;;  %4361 = vmatmul.msk.f32.gmra.mxu3 %vm432_vm2, %v1660_v13  ;;  %v4378_v15 = vld [vmem:[%s6385_s0 + $0x148] sm:$0xff]  ;;  %v4379_v13 = vld [vmem:[%s6385_s0 + $0x150] sm:$0xff] }
 0x3ae   :  { %1871 = vmatpush.msra.mxu3 %v1849_v36  ;;  %v4391_v44 = vld [vmem:[%s6385_s0 + $0x1b0] sm:$0xff] }
 0x3b4   :  { %v1661_v25 = vld [vmem:[#allocation2 + $0x21] ss:$2 sm:$0x3]  ;;  %v1737_v28 = vld [vmem:[#allocation2 + $0x12] ss:$2 sm:$0xff] }
 0x3b5   :  { %4362 = vmatmul.msk.f32.gmra.mxu3 %vm432_vm2, %v1661_v25  ;;  %4367 = vmatmul.msk.f32.gmra.mxu1 %vm432_vm2, %v1737_v28  ;;  %v1782_v19 = vld [vmem:[#allocation2 + $0x13] ss:$2 sm:$0xff]  ;;  %v1738_v38 = vld [vmem:[#allocation2 + $0x22] ss:$2 sm:$0x3] }
 0x3b6   :  { %4370 = vmatmul.msk.f32.gmra.mxu2 %vm432_vm2, %v1782_v19  ;;  %v1783_v30 = vld [vmem:[#allocation2 + $0x23] ss:$2 sm:$0x3]  ;;  %v1654_v34 = vld [vmem:[#allocation2 + $0x20] ss:$2 sm:$0x3] }
 0x3b7   :  { %v4380_v25 = vld [vmem:[%s6385_s0 + $0x158] sm:$0xff]  ;;  %v4381_v28 = vld [vmem:[%s6385_s0 + $0x160] sm:$0xff]  ;;  %v4382_v19 = vld [vmem:[%s6385_s0 + $0x168] sm:$0xff] }
 0x3bd   :  { %4363 = vmatmul.msk.f32.vlgmr.msrb.gmra.mxu3 %vm432_vm2, %v1652_v20  ;;  %4368 = vmatmul.msk.f32.gmra.mxu1 %vm432_vm2, %v1738_v38  ;;  %v4383_v20 = vld [vmem:[%s6385_s0 + $0x170] sm:$0xff]  ;;  %v4384_v38 = vld [vmem:[%s6385_s0 + $0x178] sm:$0xff] }
 0x3be   :  { %4371 = vmatmul.msk.f32.gmra.mxu2 %vm432_vm2, %v1783_v30  ;;  %1891 = vmatpush.msrb.mxu3 %v1847_v22  ;;  %v4385_v30 = vld [vmem:[%s6385_s0 + $0x180] sm:$0xff] }
 0x3c0   :  { %1892 = vmatpush.msrb.mxu3 %v1846_v43 }
 0x3c2   :  { %1893 = vmatpush.msrb.mxu3 %v1845_v54 }
 0x3c4   :  { %1894 = vmatpush.msrb.mxu3 %v1844_v18  ;;  %v2581_v18 = vld [vmem:[%s6387_s3 + $0x18] sm:$0xff] }
 0x3c5   :  { %4364 = vmatmul.msk.f32.gmra.mxu3 %vm432_vm2, %v1653_v55  ;;  %v4386_v55 = vld [vmem:[%s6385_s0 + $0x188] sm:$0xff] }
 0x3cd   :  { %4365 = vmatmul.msk.f32.gmra.mxu3 %vm432_vm2, %v1654_v34  ;;  %v4387_v34 = vld [vmem:[%s6385_s0 + $0x190] sm:$0xff] }
 0x420   :  { %v1692_v50 = vpop.f32.mrf.mxu3 }
 0x422   :  { %v1769_v60 = vpop.f32.mrf.mxu1 }
 0x428   :  { %v1814_v39 = vpop.f32.mrf.mxu2 }
 0x430   :  { %v1695_v53 = vpop.f32.mrf.mxu3 }
 0x432   :  { %v1772_v31 = vpop.f32.mrf.mxu1 }
 0x438   :  { %v1698_v56 = vpop.f32.mrf.mxu3 }
 0x439   :  { %v1817_v61 = vpop.f32.mrf.mxu2 }
 0x43a   :  { %v1775_v17 = vpop.f32.mrf.mxu1 }
 0x440   :  { %v1727_v35 = vpop.f32.mrf.mxu3 }
 0x441   :  { %v1728_v41 = vadd.f32 %v1727_v35, %v1692_v50  ;;  %v1820_v37 = vpop.f32.mrf.mxu2  ;;  %v4388_v50 = vld [vmem:[%s6385_s0 + $0x198] sm:$0xff]  ;;  %v4393_v35 = vld [vmem:[%s6385_s0 + $0x1c0] sm:$0xff] }
 0x443   :  { %v1778_v63 = vadd.f32 %v1769_v60, %v1728_v41 }
 0x445   :  { %v1823_v29 = vadd.f32 %v1814_v39, %v1778_v63  ;;  %v2605_v39 = vld [vmem:[%s6387_s3 + $0x38] sm:$0xff] }
 0x446   :  { %2648 = vmatpush.msra.mxu2 %v2605_v39  ;;  %v4402_v39 = vld [vmem:[%s6385_s0 + $0x208] sm:$0xff] }
 0x447   :  { %v1830_v42 = vadd.f32 %v4581_v16, %v1823_v29  ;;  %v2604_v29 = vld [vmem:[%s6387_s3 + $0x30] sm:$0xff] }
 0x448   :  { %v1730_v4 = vpop.f32.mrf.mxu3  ;;  %2649 = vmatpush.msra.mxu2 %v2604_v29  ;;  %v4403_v29 = vld [vmem:[%s6385_s0 + $0x210] sm:$0xff] }
 0x449   :  { %v1833_v10 = vmul.f32 0.01, %v1830_v42  ;;  %v1731_v58 = vadd.f32 %v1730_v4, %v1695_v53  ;;  %v4389_v53 = vld [vmem:[%s6385_s0 + $0x1a0] sm:$0xff]  ;;  %v2603_v4 = vld [vmem:[%s6387_s3 + $0x28] sm:$0xff] }
 0x44a   :  { %2650 = vmatpush.msra.mxu2 %v2603_v4  ;;  %v4404_v4 = vld [vmem:[%s6385_s0 + $0x218] sm:$0xff] }
 0x44b   :  { %v1836_v46 = vmax.f32 %v1830_v42, %v1833_v10  ;;  %v1779_v14 = vadd.f32 %v1772_v31, %v1731_v58  ;;  %v2579_v10 = vld [vmem:[%s6387_s3 + $0x8] sm:$0xff] }
 0x44c   :  { %v2781_v58 = vld [vmem:[%s6387_s3 + $0x48] sm:$0xff] }
 0x44d   :  { %1839 = vst.msk [vmem:[#allocation2] sm:$0xff] %vm432_vm2, %v1836_v46  ;;  %v1824_v5 = vadd.f32 %v1817_v61, %v1779_v14  ;;  %2828 = vmatpush.msrb.mxu0 %v2781_v58  ;;  %v2602_v61 = vld [vmem:[%s6387_s3 + $0x20] sm:$0xff] }
 0x44e   :  { %v2578_v46 = vld [vmem:[%s6387_s3] sm:$0xff]  ;;  %2651 = vmatpush.msra.mxu2 %v2602_v61 }
 0x44f   :  { %v1831_v6 = vadd.f32 %v4581_v16, %v1824_v5  ;;  %v2780_v14 = vld [vmem:[%s6387_s3 + $0x40] sm:$0xff] }
 0x450   :  { %v1733_v23 = vpop.f32.mrf.mxu3  ;;  %2829 = vmatpush.msrb.mxu0 %v2780_v14  ;;  %v4405_v14 = vld [vmem:[%s6385_s0 + $0x220] sm:$0xff] }
 0x451   :  { %v1834_v48 = vmul.f32 0.01, %v1831_v6  ;;  %v1734_v59 = vadd.f32 %v1733_v23, %v1698_v56  ;;  %v1963_v56 = vld [vmem:[%s6395_s11 + $0x8] sm:$0xff] }
 0x453   :  { %v1837_v45 = vmax.f32 %v1831_v6, %v1834_v48  ;;  %v1780_v49 = vadd.f32 %v1775_v17, %v1734_v59  ;;  %v4394_v6 = vld [vmem:[%s6385_s0 + $0x1c8] sm:$0xff] }
 0x455   :  { %1840 = vst.msk [vmem:[#allocation2 + $0x8] sm:$0xff] %vm432_vm2, %v1837_v45  ;;  %v1825_v32 = vadd.f32 %v1820_v37, %v1780_v49  ;;  %v4395_v45 = vld [vmem:[%s6385_s0 + $0x1d0] sm:$0xff] }
 0x457   :  { %v1832_v27 = vadd.f32 %v4581_v16, %v1825_v32 }
 0x459   :  { %v1835_v47 = vmul.f32 0.01, %v1832_v27 }
 0x45b   :  { %v1838_v0 = vmax.f32 %v1832_v27, %v1835_v47  ;;  %v4396_v47 = vld [vmem:[%s6385_s0 + $0x1d8] sm:$0xff] }
 0x45c   :  { %v1848_v8 = vld [vmem:[#allocation2 + $0x1] ss:$2 sm:$0xff]  ;;  %v1843_v9 = vld [vmem:[#allocation2] ss:$2 sm:$0xff] }
 0x45d   :  { %4372 = vmatmul.msk.f32.vlgmr.msra.gmra.mxu3 %vm432_vm2, %v1848_v8  ;;  %1842 = vst.msk [vmem:[#allocation2 + $0x10] sm:$0x3] %vm1841_vm5, %v1838_v0 }
 0x45e   :  { %1985 = vmatpush.msra.mxu3 %v1965_v3 }
 0x460   :  { %1986 = vmatpush.msra.mxu3 %v1964_v7 }
 0x462   :  { %1987 = vmatpush.msra.mxu3 %v1963_v56 }
 0x464   :  { %v1899_v62 = vld [vmem:[#allocation2 + $0x2] ss:$2 sm:$0xff]  ;;  %v1928_v2 = vld [vmem:[#allocation2 + $0x3] ss:$2 sm:$0xff]  ;;  %1988 = vmatpush.msra.mxu3 %v1962_v33 }
 0x465   :  { %4373 = vmatmul.msk.f32.vlgmr.msrb.gmra.mxu3 %vm432_vm2, %v1843_v9  ;;  %4374 = vmatmul.msk.f32.vlgmr.msrb.gmra.mxu1 %vm432_vm2, %v1899_v62 }
 0x466   :  { %4375 = vmatmul.msk.f32.vlgmr.msrb.gmra.mxu2 %vm432_vm2, %v1928_v2  ;;  %2725 = vmatpush.msrb.mxu3 %v2581_v18  ;;  %v4397_v2 = vld [vmem:[%s6385_s0 + $0x1e0] sm:$0xff] }
 0x468   :  { %2726 = vmatpush.msrb.mxu3 %v2580_v51 }
 0x46a   :  { %2727 = vmatpush.msrb.mxu3 %v2579_v10 }
 0x46c   :  { %2728 = vmatpush.msrb.mxu3 %v2578_v46 }
 0x46d   :  { %4418 = vmatmul.msk.f32.vlgmr.msra.gmra.mxu1 %vm90_vm1, %v4377_v52 }
 0x475   :  { %4419 = vmatmul.msk.f32.gmra.mxu1 %vm90_vm1, %v4378_v15 }
 0x47d   :  { %4420 = vmatmul.msk.f32.gmra.mxu1 %vm90_vm1, %v4379_v13 }
 0x485   :  { %4421 = vmatmul.msk.f32.gmra.mxu1 %vm90_vm1, %v4380_v25 }
 0x48d   :  { %4422 = vmatmul.msk.f32.gmra.mxu1 %vm90_vm1, %v4381_v28 }
 0x495   :  { %4423 = vmatmul.msk.f32.gmra.mxu1 %vm90_vm1, %v4382_v19 }
 0x49d   :  { %4424 = vmatmul.msk.f32.gmra.mxu1 %vm90_vm1, %v4383_v20 }
 0x4a5   :  { %4425 = vmatmul.msk.f32.gmra.mxu1 %vm90_vm1, %v4384_v38  ;;  %v4398_v38 = vld [vmem:[%s6385_s0 + $0x1e8] sm:$0xff] }
 0x4ad   :  { %4426 = vmatmul.msk.f32.gmra.mxu1 %vm90_vm1, %v4385_v30 }
 0x4b5   :  { %4427 = vmatmul.msk.f32.gmra.mxu1 %vm90_vm1, %v4386_v55 }
 0x4bd   :  { %4428 = vmatmul.msk.f32.gmra.mxu1 %vm90_vm1, %v4387_v34 }
 0x4c5   :  { %4429 = vmatmul.msk.f32.gmra.mxu1 %vm90_vm1, %v4388_v50 }
 0x4cd   :  { %4430 = vmatmul.msk.f32.gmra.mxu1 %vm90_vm1, %v4389_v53  ;;  %v4399_v53 = vld [vmem:[%s6385_s0 + $0x1f0] sm:$0xff] }
 0x4d5   :  { %4431 = vmatmul.msk.f32.gmra.mxu1 %vm90_vm1, %v4390_v40  ;;  %v4400_v40 = vld [vmem:[%s6385_s0 + $0x1f8] sm:$0xff] }
 0x4dd   :  { %4432 = vmatmul.msk.f32.gmra.mxu1 %vm90_vm1, %v4391_v44 }
 0x4e0   :  { %v1873_v36 = vpop.f32.mrf.mxu3 }
 0x4e2   :  { %v1924_v22 = vpop.f32.mrf.mxu1 }
 0x4e5   :  { %4433 = vmatmul.msk.f32.gmra.mxu1 %vm90_vm1, %v4392_v1  ;;  %v4401_v1 = vld [vmem:[%s6385_s0 + $0x200] sm:$0xff] }
 0x4e8   :  { %v1896_v43 = vpop.f32.mrf.mxu3 }
 0x4e9   :  { %v1897_v24 = vadd.f32 %v1896_v43, %v1873_v36  ;;  %v1953_v11 = vpop.f32.mrf.mxu2 }
 0x4ea   :  { %v2318_v60 = vpop.f32.mrf.mxu1 }
 0x4eb   :  { %v1927_v54 = vadd.f32 %v1924_v22, %v1897_v24  ;;  %v2319_v41 = vadd.f32 %v5564_v12, %v2318_v60 }
 0x4ed   :  { %v1956_v63 = vadd.f32 %v1953_v11, %v1927_v54  ;;  %v2438_v16 = vmul.f32 0.01, %v2319_v41  ;;  %4434 = vmatmul.msk.f32.gmra.mxu1 %vm90_vm1, %v4393_v35 }
 0x4ef   :  { %v1961_v42 = vadd.f32 %v4582_v57, %v1956_v63  ;;  %v2478_v31 = vmax.f32 %v2319_v41, %v2438_v16 }
 0x4f1   :  { %2518 = vst.msk [vmem:[#allocation2 + $0x140] sm:$0xff] %vm432_vm2, %v2478_v31  ;;  %4376 = vmatmul.msk.f32.vlgmr.msra.gmra.mxu3 %vm432_vm2, %v1961_v42 }
 0x4f2   :  { %v2321_v5 = vpop.f32.mrf.mxu1 }
 0x4f3   :  { %v2322_v23 = vadd.f32 %v5564_v12, %v2321_v5 }
 0x4f5   :  { %v2439_v48 = vmul.f32 0.01, %v2322_v23  ;;  %4435 = vmatmul.msk.f32.gmra.mxu1 %vm90_vm1, %v4394_v6 }
 0x4f7   :  { %v2479_v59 = vmax.f32 %v2322_v23, %v2439_v48 }
 0x4f9   :  { %2519 = vst.msk [vmem:[#allocation2 + $0x148] sm:$0xff] %vm432_vm2, %v2479_v59 }
 0x4fa   :  { %v2324_v17 = vpop.f32.mrf.mxu1 }
 0x4fb   :  { %v2325_v49 = vadd.f32 %v5564_v12, %v2324_v17 }
 0x4fd   :  { %v2440_v37 = vmul.f32 0.01, %v2325_v49  ;;  %4436 = vmatmul.msk.f32.gmra.mxu1 %vm90_vm1, %v4395_v45 }
 0x4ff   :  { %v2480_v32 = vmax.f32 %v2325_v49, %v2440_v37  ;;  %v4406_v49 = vld [vmem:[%s6385_s0 + $0x228] sm:$0xff] }
 0x501   :  { %2520 = vst.msk [vmem:[#allocation2 + $0x150] sm:$0xff] %vm432_vm2, %v2480_v32 }
 0x502   :  { %v2327_v27 = vpop.f32.mrf.mxu1 }
 0x503   :  { %v2328_v0 = vadd.f32 %v5564_v12, %v2327_v27 }
 0x505   :  { %v2441_v8 = vmul.f32 0.01, %v2328_v0  ;;  %4437 = vmatmul.msk.f32.gmra.mxu1 %vm90_vm1, %v4396_v47 }
 0x507   :  { %v2481_v9 = vmax.f32 %v2328_v0, %v2441_v8  ;;  %v4407_v0 = vld [vmem:[%s6385_s0 + $0x230] sm:$0xff] }
 0x509   :  { %2521 = vst.msk [vmem:[#allocation2 + $0x158] sm:$0xff] %vm432_vm2, %v2481_v9 }
 0x50a   :  { %v2330_v62 = vpop.f32.mrf.mxu1 }
 0x50b   :  { %v2331_v52 = vadd.f32 %v5564_v12, %v2330_v62 }
 0x50d   :  { %v2442_v15 = vmul.f32 0.01, %v2331_v52  ;;  %4438 = vmatmul.msk.f32.gmra.mxu1 %vm90_vm1, %v4397_v2 }
 0x50f   :  { %v2482_v13 = vmax.f32 %v2331_v52, %v2442_v15  ;;  %v4408_v52 = vld [vmem:[%s6385_s0 + $0x238] sm:$0xff] }
 0x510   :  { %v2583_v25 = vld [vmem:[#allocation2 + $0x141] ss:$4 sm:$0xff]  ;;  %v2559_v28 = vld [vmem:[#allocation2 + $0x140] ss:$4 sm:$0xff]  ;;  %v2761_v19 = vld [vmem:[#allocation2 + $0x142] ss:$4 sm:$0xff] }
 0x511   :  { %2522 = vst.msk [vmem:[#allocation2 + $0x160] sm:$0xff] %vm432_vm2, %v2482_v13  ;;  %4458 = vmatmul.msk.f32.vlgmr.msra.gmra.mxu2 %vm432_vm2, %v2583_v25  ;;  %4468 = vmatmul.msk.f32.vlgmr.msrb.gmra.mxu3 %vm432_vm2, %v2559_v28 }
 0x512   :  { %4478 = vmatmul.msk.f32.vlgmr.msrb.gmra.mxu0 %vm432_vm2, %v2761_v19  ;;  %v2333_v20 = vpop.f32.mrf.mxu1  ;;  %v4409_v19 = vld [vmem:[%s6385_s0 + $0x240] sm:$0xff] }
 0x513   :  { %v2334_v30 = vadd.f32 %v5564_v12, %v2333_v20 }
 0x515   :  { %v2443_v55 = vmul.f32 0.01, %v2334_v30  ;;  %4439 = vmatmul.msk.f32.gmra.mxu1 %vm90_vm1, %v4398_v38 }
 0x517   :  { %v2483_v34 = vmax.f32 %v2334_v30, %v2443_v55 }
 0x519   :  { %2523 = vst.msk [vmem:[#allocation2 + $0x168] sm:$0xff] %vm432_vm2, %v2483_v34 }
 0x51a   :  { %v2336_v50 = vpop.f32.mrf.mxu1 }
 0x51b   :  { %v2337_v3 = vadd.f32 %v5564_v12, %v2336_v50 }
 0x51d   :  { %v2444_v7 = vmul.f32 0.01, %v2337_v3  ;;  %4440 = vmatmul.msk.f32.gmra.mxu1 %vm90_vm1, %v4399_v53  ;;  %v4584_v53 = vld [vmem:[%s6396_s12] ss:$0 sm:$0xff] }
 0x51f   :  { %v2484_v56 = vmax.f32 %v2337_v3, %v2444_v7  ;;  %v4410_v7 = vld [vmem:[%s6385_s0 + $0x248] sm:$0xff] }
 0x521   :  { %2524 = vst.msk [vmem:[#allocation2 + $0x170] sm:$0xff] %vm432_vm2, %v2484_v56 }
 0x522   :  { %v2339_v33 = vpop.f32.mrf.mxu1 }
 0x523   :  { %v2340_v21 = vadd.f32 %v5564_v12, %v2339_v33 }
 0x525   :  { %v2445_v44 = vmul.f32 0.01, %v2340_v21  ;;  %4441 = vmatmul.msk.f32.gmra.mxu1 %vm90_vm1, %v4400_v40 }
 0x527   :  { %v2485_v36 = vmax.f32 %v2340_v21, %v2445_v44 }
 0x529   :  { %2525 = vst.msk [vmem:[#allocation2 + $0x178] sm:$0xff] %vm432_vm2, %v2485_v36 }
 0x52a   :  { %v2342_v22 = vpop.f32.mrf.mxu1 }
 0x52b   :  { %v2343_v43 = vadd.f32 %v5564_v12, %v2342_v22  ;;  %v4411_v22 = vld [vmem:[%s6385_s0 + $0x250] sm:$0xff] }
 0x52d   :  { %v2446_v24 = vmul.f32 0.01, %v2343_v43  ;;  %4442 = vmatmul.msk.f32.gmra.mxu1 %vm90_vm1, %v4401_v1 }
 0x52f   :  { %v2486_v60 = vmax.f32 %v2343_v43, %v2446_v24 }
 0x530   :  { %v2585_v35 = vld [vmem:[#allocation2 + $0x161] ss:$4 sm:$0xff]  ;;  %v2561_v54 = vld [vmem:[#allocation2 + $0x160] ss:$4 sm:$0xff]  ;;  %v2763_v57 = vld [vmem:[#allocation2 + $0x162] ss:$4 sm:$0xff] }
 0x531   :  { %2526 = vst.msk [vmem:[#allocation2 + $0x180] sm:$0xff] %vm432_vm2, %v2486_v60  ;;  %4459 = vmatmul.msk.f32.gmra.mxu2 %vm432_vm2, %v2585_v35  ;;  %4469 = vmatmul.msk.f32.gmra.mxu3 %vm432_vm2, %v2561_v54  ;;  %v4412_v35 = vld [vmem:[%s6385_s0 + $0x258] sm:$0xff] }
 0x532   :  { %4479 = vmatmul.msk.f32.gmra.mxu0 %vm432_vm2, %v2763_v57  ;;  %v2345_v41 = vpop.f32.mrf.mxu1 }
 0x533   :  { %v2346_v18 = vadd.f32 %v5564_v12, %v2345_v41 }
 0x535   :  { %v2447_v11 = vmul.f32 0.01, %v2346_v18  ;;  %4443 = vmatmul.msk.f32.gmra.mxu1 %vm90_vm1, %v4402_v39 }
 0x537   :  { %v2487_v63 = vmax.f32 %v2346_v18, %v2447_v11  ;;  %v4413_v18 = vld [vmem:[%s6385_s0 + $0x260] sm:$0xff] }
 0x539   :  { %2527 = vst.msk [vmem:[#allocation2 + $0x188] sm:$0xff] %vm432_vm2, %v2487_v63 }
 0x53a   :  { %v2348_v16 = vpop.f32.mrf.mxu1 }
 0x53b   :  { %v2349_v51 = vadd.f32 %v5564_v12, %v2348_v16 }
 0x53d   :  { %v2448_v26 = vmul.f32 0.01, %v2349_v51  ;;  %4444 = vmatmul.msk.f32.gmra.mxu1 %vm90_vm1, %v4403_v29 }
 0x53f   :  { %v2488_v42 = vmax.f32 %v2349_v51, %v2448_v26 }
 0x541   :  { %2528 = vst.msk [vmem:[#allocation2 + $0x190] sm:$0xff] %vm432_vm2, %v2488_v42 }
 0x542   :  { %v2351_v31 = vpop.f32.mrf.mxu1 }
 0x543   :  { %v2352_v10 = vadd.f32 %v5564_v12, %v2351_v31  ;;  %v4414_v31 = vld [vmem:[%s6385_s0 + $0x268] sm:$0xff] }
 0x545   :  { %v2449_v58 = vmul.f32 0.01, %v2352_v10  ;;  %4445 = vmatmul.msk.f32.gmra.mxu1 %vm90_vm1, %v4404_v4 }
 0x547   :  { %v2489_v61 = vmax.f32 %v2352_v10, %v2449_v58 }
 0x549   :  { %2529 = vst.msk [vmem:[#allocation2 + $0x198] sm:$0xff] %vm432_vm2, %v2489_v61 }
 0x54a   :  { %v2354_v46 = vpop.f32.mrf.mxu1 }
 0x54b   :  { %v2355_v5 = vadd.f32 %v5564_v12, %v2354_v46  ;;  %v4415_v46 = vld [vmem:[%s6385_s0 + $0x270] sm:$0xff] }
 0x54d   :  { %v2450_v6 = vmul.f32 0.01, %v2355_v5  ;;  %4446 = vmatmul.msk.f32.gmra.mxu1 %vm90_vm1, %v4405_v14 }
 0x54f   :  { %v2490_v23 = vmax.f32 %v2355_v5, %v2450_v6 }
 0x550   :  { %v2587_v48 = vld [vmem:[#allocation2 + $0x181] ss:$4 sm:$0xff]  ;;  %v2563_v59 = vld [vmem:[#allocation2 + $0x180] ss:$4 sm:$0xff]  ;;  %v2765_v17 = vld [vmem:[#allocation2 + $0x182] ss:$4 sm:$0xff] }
 0x551   :  { %2530 = vst.msk [vmem:[#allocation2 + $0x1a0] sm:$0xff] %vm432_vm2, %v2490_v23  ;;  %4460 = vmatmul.msk.f32.gmra.mxu2 %vm432_vm2, %v2587_v48  ;;  %4470 = vmatmul.msk.f32.gmra.mxu3 %vm432_vm2, %v2563_v59  ;;  %v4416_v48 = vld [vmem:[%s6385_s0 + $0x278] sm:$0xf] }
 0x552   :  { %4480 = vmatmul.msk.f32.gmra.mxu0 %vm432_vm2, %v2765_v17  ;;  %v2357_v45 = vpop.f32.mrf.mxu1 }
 0x553   :  { %v2358_v37 = vadd.f32 %v5564_v12, %v2357_v45 }
 0x555   :  { %v2451_v32 = vmul.f32 0.01, %v2358_v37  ;;  %4447 = vmatmul.msk.f32.gmra.mxu1 %vm90_vm1, %v4406_v49 }
 0x557   :  { %v2491_v27 = vmax.f32 %v2358_v37, %v2451_v32 }
 0x559   :  { %2531 = vst.msk [vmem:[#allocation2 + $0x1a8] sm:$0xff] %vm432_vm2, %v2491_v27 }
 0x55a   :  { %v2360_v47 = vpop.f32.mrf.mxu1 }
 0x55b   :  { %v2361_v8 = vadd.f32 %v5564_v12, %v2360_v47 }
 0x55d   :  { %v2452_v9 = vmul.f32 0.01, %v2361_v8  ;;  %4448 = vmatmul.msk.f32.gmra.mxu1 %vm90_vm1, %v4407_v0 }
 0x55f   :  { %v2492_v62 = vmax.f32 %v2361_v8, %v2452_v9 }
 0x561   :  { %2532 = vst.msk [vmem:[#allocation2 + $0x1b0] sm:$0xff] %vm432_vm2, %v2492_v62 }
 0x562   :  { %v2363_v2 = vpop.f32.mrf.mxu1 }
 0x563   :  { %v2364_v15 = vadd.f32 %v5564_v12, %v2363_v2 }
 0x565   :  { %v2453_v13 = vmul.f32 0.01, %v2364_v15  ;;  %4449 = vmatmul.msk.f32.gmra.mxu1 %vm90_vm1, %v4408_v52 }
 0x567   :  { %v2493_v25 = vmax.f32 %v2364_v15, %v2453_v13 }
 0x569   :  { %2533 = vst.msk [vmem:[#allocation2 + $0x1b8] sm:$0xff] %vm432_vm2, %v2493_v25 }
 0x56a   :  { %v2366_v28 = vpop.f32.mrf.mxu1 }
 0x56b   :  { %v2367_v20 = vadd.f32 %v5564_v12, %v2366_v28 }
 0x56d   :  { %v2454_v38 = vmul.f32 0.01, %v2367_v20  ;;  %4450 = vmatmul.msk.f32.gmra.mxu1 %vm90_vm1, %v4409_v19  ;;  %v2894_v19 = vld [vmem:[%s6387_s3 + $0x78] sm:$0xff] }
 0x56e   :  { %2937 = vmatpush.msrb.mxu2 %v2894_v19  ;;  %v3338_v19 = vld [vmem:[%s6387_s3 + $0xf8] sm:$0xff] }
 0x56f   :  { %v2494_v30 = vmax.f32 %v2367_v20, %v2454_v38 }
 0x570   :  { %v2589_v55 = vld [vmem:[#allocation2 + $0x1a1] ss:$4 sm:$0xff]  ;;  %v2565_v34 = vld [vmem:[#allocation2 + $0x1a0] ss:$4 sm:$0xff]  ;;  %v2767_v50 = vld [vmem:[#allocation2 + $0x1a2] ss:$4 sm:$0xff] }
 0x571   :  { %2534 = vst.msk [vmem:[#allocation2 + $0x1c0] sm:$0xff] %vm432_vm2, %v2494_v30  ;;  %4461 = vmatmul.msk.f32.gmra.mxu2 %vm432_vm2, %v2589_v55  ;;  %4471 = vmatmul.msk.f32.gmra.mxu3 %vm432_vm2, %v2565_v34  ;;  %v3005_v34 = vld [vmem:[%s6387_s3 + $0x98] sm:$0xff] }
 0x572   :  { %4481 = vmatmul.msk.f32.gmra.mxu0 %vm432_vm2, %v2767_v50  ;;  %v2369_v3 = vpop.f32.mrf.mxu1  ;;  %3048 = vmatpush.msra.mxu3 %v3005_v34 }
 0x573   :  { %v2370_v56 = vadd.f32 %v5564_v12, %v2369_v3 }
 0x574   :  { %v1990_v33 = vpop.f32.mrf.mxu3 }
 0x575   :  { %v2455_v40 = vmul.f32 0.01, %v2370_v56  ;;  %4451 = vmatmul.msk.f32.gmra.mxu1 %vm90_vm1, %v4410_v7  ;;  %v1991_v21 = vadd.f32 %v4584_v53, %v1990_v33 }
 0x577   :  { %v2495_v44 = vmax.f32 %v2370_v56, %v2455_v40  ;;  %1993 = vxpose.xlu0.b32.start.end [1/1] (short) (narrow) %v1991_v21, 32 }
 0x579   :  { %2535 = vst.msk [vmem:[#allocation2 + $0x1c8] sm:$0xff] %vm432_vm2, %v2495_v44 }
 0x57a   :  { %v2372_v36 = vpop.f32.mrf.mxu1 }
 0x57b   :  { %v2373_v1 = vadd.f32 %v5564_v12, %v2372_v36 }
 0x57d   :  { %v2456_v43 = vmul.f32 0.01, %v2373_v1  ;;  %4452 = vmatmul.msk.f32.gmra.mxu1 %vm90_vm1, %v4411_v22 }
 0x57f   :  { %v2496_v24 = vmax.f32 %v2373_v1, %v2456_v43  ;;  %v2893_v1 = vld [vmem:[%s6387_s3 + $0x70] sm:$0xff] }
 0x580   :  { %v3004_v43 = vld [vmem:[%s6387_s3 + $0x90] sm:$0xff]  ;;  %2938 = vmatpush.msrb.mxu2 %v2893_v1 }
 0x581   :  { %2536 = vst.msk [vmem:[#allocation2 + $0x1d0] sm:$0xff] %vm432_vm2, %v2496_v24  ;;  %3049 = vmatpush.msra.mxu3 %v3004_v43  ;;  %v2872_v1 = vld [vmem:[#allocation2 + $0x143] ss:$4 sm:$0xff]  ;;  %v2983_v43 = vld [vmem:[#allocation2 + $0x144] ss:$4 sm:$0xff] }
 0x582   :  { %v2375_v60 = vpop.f32.mrf.mxu1 }
 0x583   :  { %v2376_v54 = vadd.f32 %v5564_v12, %v2375_v60 }
 0x585   :  { %v2457_v57 = vmul.f32 0.01, %v2376_v54  ;;  %4453 = vmatmul.msk.f32.gmra.mxu1 %vm90_vm1, %v4412_v35 }
 0x587   :  { %v2497_v41 = vmax.f32 %v2376_v54, %v2457_v57 }
 0x589   :  { %2537 = vst.msk [vmem:[#allocation2 + $0x1d8] sm:$0xff] %vm432_vm2, %v2497_v41 }
 0x58a   :  { %v2378_v39 = vpop.f32.mrf.mxu1 }
 0x58b   :  { %v2379_v11 = vadd.f32 %v5564_v12, %v2378_v39 }
 0x58d   :  { %v2458_v63 = vmul.f32 0.01, %v2379_v11  ;;  %4454 = vmatmul.msk.f32.gmra.mxu1 %vm90_vm1, %v4413_v18 }
 0x58f   :  { %v2498_v16 = vmax.f32 %v2379_v11, %v2458_v63  ;;  %v2892_v11 = vld [vmem:[%s6387_s3 + $0x68] sm:$0xff] }
 0x590   :  { %v2591_v29 = vld [vmem:[#allocation2 + $0x1c1] ss:$4 sm:$0xff]  ;;  %v2567_v51 = vld [vmem:[#allocation2 + $0x1c0] ss:$4 sm:$0xff]  ;;  %v2769_v26 = vld [vmem:[#allocation2 + $0x1c2] ss:$4 sm:$0xff]  ;;  %2939 = vmatpush.msrb.mxu2 %v2892_v11 }
 0x591   :  { %2538 = vst.msk [vmem:[#allocation2 + $0x1e0] sm:$0xff] %vm432_vm2, %v2498_v16  ;;  %4462 = vmatmul.msk.f32.gmra.mxu2 %vm432_vm2, %v2591_v29  ;;  %4472 = vmatmul.msk.f32.gmra.mxu3 %vm432_vm2, %v2567_v51  ;;  %v2878_v11 = vld [vmem:[#allocation2 + $0x1a3] ss:$4 sm:$0xff] }
 0x592   :  { %4482 = vmatmul.msk.f32.gmra.mxu0 %vm432_vm2, %v2769_v26  ;;  %v2381_v42 = vpop.f32.mrf.mxu1 }
 0x593   :  { %v2382_v4 = vadd.f32 %v5564_v12, %v2381_v42 }
 0x595   :  { %v2459_v10 = vmul.f32 0.01, %v2382_v4  ;;  %4455 = vmatmul.msk.f32.gmra.mxu1 %vm90_vm1, %v4414_v31 }
 0x597   :  { %v2499_v58 = vmax.f32 %v2382_v4, %v2459_v10  ;;  %v3003_v4 = vld [vmem:[%s6387_s3 + $0x88] sm:$0xff] }
 0x598   :  { %3050 = vmatpush.msra.mxu3 %v3003_v4 }
 0x599   :  { %2539 = vst.msk [vmem:[#allocation2 + $0x1e8] sm:$0xff] %vm432_vm2, %v2499_v58 }
 0x59a   :  { %v2384_v61 = vpop.f32.mrf.mxu1 }
 0x59b   :  { %v2385_v14 = vadd.f32 %v5564_v12, %v2384_v61 }
 0x59d   :  { %v2460_v5 = vmul.f32 0.01, %v2385_v14  ;;  %4456 = vmatmul.msk.f32.gmra.mxu1 %vm90_vm1, %v4415_v46 }
 0x59f   :  { %v2500_v6 = vmax.f32 %v2385_v14, %v2460_v5 }
 0x5a1   :  { %2540 = vst.msk [vmem:[#allocation2 + $0x1f0] sm:$0xff] %vm432_vm2, %v2500_v6 }
 0x5a2   :  { %v2387_v23 = vpop.f32.mrf.mxu1 }
 0x5a3   :  { %v2388_v59 = vadd.f32 %v5564_v12, %v2387_v23 }
 0x5a5   :  { %v2461_v17 = vmul.f32 0.01, %v2388_v59  ;;  %4457 = vmatmul.msk.f32.gmra.mxu1 %vm90_vm1, %v4416_v48  ;;  %v2891_v48 = vld [vmem:[%s6387_s3 + $0x60] sm:$0xff] }
 0x5a6   :  { %2940 = vmatpush.msrb.mxu2 %v2891_v48 }
 0x5a7   :  { %v2501_v45 = vmax.f32 %v2388_v59, %v2461_v17  ;;  %v3002_v59 = vld [vmem:[%s6387_s3 + $0x80] sm:$0xff] }
 0x5a8   :  { %3051 = vmatpush.msra.mxu3 %v3002_v59 }
 0x5a9   :  { %2541 = vst.msk [vmem:[#allocation2 + $0x1f8] sm:$0xff] %vm432_vm2, %v2501_v45 }
 0x5aa   :  { %v2390_v49 = vpop.f32.mrf.mxu1  ;;  %3381 = vmatpush.msrb.mxu3 %v3338_v19  ;;  %v3318_v19 = vld [vmem:[#allocation2 + $0x167] ss:$4 sm:$0xff] }
 0x5ab   :  { %v2391_v37 = vadd.f32 %v5564_v12, %v2390_v49 }
 0x5ad   :  { %v2462_v32 = vmul.f32 0.01, %v2391_v37 }
 0x5af   :  { %v2502_v27 = vmax.f32 %v2391_v37, %v2462_v32 }
 0x5b0   :  { %v2593_v47 = vld [vmem:[#allocation2 + $0x1e1] ss:$4 sm:$0xff]  ;;  %v2569_v0 = vld [vmem:[#allocation2 + $0x1e0] ss:$4 sm:$0xff]  ;;  %v2771_v8 = vld [vmem:[#allocation2 + $0x1e2] ss:$4 sm:$0xff] }
 0x5b1   :  { %2542 = vst.msk [vmem:[#allocation2 + $0x200] sm:$0xff] %vm432_vm2, %v2502_v27  ;;  %4463 = vmatmul.msk.f32.gmra.mxu2 %vm432_vm2, %v2593_v47  ;;  %4473 = vmatmul.msk.f32.gmra.mxu3 %vm432_vm2, %v2569_v0  ;;  %v3116_v27 = vld [vmem:[%s6387_s3 + $0xb8] sm:$0xff]  ;;  %v3115_v47 = vld [vmem:[%s6387_s3 + $0xb0] sm:$0xff] }
 0x5b2   :  { %4483 = vmatmul.msk.f32.gmra.mxu0 %vm432_vm2, %v2771_v8  ;;  %v2393_v9 = vpop.f32.mrf.mxu1  ;;  %v2882_v4 = vld [vmem:[#allocation2 + $0x1e3] ss:$4 sm:$0xff] }
 0x5b3   :  { %v2394_v62 = vadd.f32 %v5564_v12, %v2393_v9  ;;  %3159 = vmatpush.msra.mxu0 %v3116_v27 }
 0x5b5   :  { %v2463_v2 = vmul.f32 0.01, %v2394_v62  ;;  %3160 = vmatpush.msra.mxu0 %v3115_v47 }
 0x5b7   :  { %v2503_v52 = vmax.f32 %v2394_v62, %v2463_v2  ;;  %v3114_v62 = vld [vmem:[%s6387_s3 + $0xa8] sm:$0xff]  ;;  %v3113_v2 = vld [vmem:[%s6387_s3 + $0xa0] sm:$0xff] }
 0x5b8   :  { %3161 = vmatpush.msra.mxu0 %v3114_v62 }
 0x5b9   :  { %2543 = vst.msk [vmem:[#allocation2 + $0x208] sm:$0xff] %vm432_vm2, %v2503_v52 }
 0x5ba   :  { %v2396_v15 = vpop.f32.mrf.mxu1  ;;  %3162 = vmatpush.msra.mxu0 %v3113_v2 }
 0x5bb   :  { %v2397_v13 = vadd.f32 %v5564_v12, %v2396_v15 }
 0x5bd   :  { %v2464_v25 = vmul.f32 0.01, %v2397_v13 }
 0x5bf   :  { %v2504_v28 = vmax.f32 %v2397_v13, %v2464_v25 }
 0x5c1   :  { %2544 = vst.msk [vmem:[#allocation2 + $0x210] sm:$0xff] %vm432_vm2, %v2504_v28  ;;  %v3227_v28 = vld [vmem:[%s6387_s3 + $0xd8] sm:$0xff] }
 0x5c2   :  { %v2399_v20 = vpop.f32.mrf.mxu1  ;;  %3270 = vmatpush.msra.mxu2 %v3227_v28  ;;  %v3207_v28 = vld [vmem:[#allocation2 + $0x166] ss:$4 sm:$0xff] }
 0x5c3   :  { %v2400_v38 = vadd.f32 %v5564_v12, %v2399_v20 }
 0x5c5   :  { %v2465_v30 = vmul.f32 0.01, %v2400_v38 }
 0x5c7   :  { %v2505_v55 = vmax.f32 %v2400_v38, %v2465_v30 }
 0x5c9   :  { %2545 = vst.msk [vmem:[#allocation2 + $0x218] sm:$0xff] %vm432_vm2, %v2505_v55 }
 0x5ca   :  { %v2402_v50 = vpop.f32.mrf.mxu1 }
 0x5cb   :  { %v2403_v53 = vadd.f32 %v5564_v12, %v2402_v50 }
 0x5cd   :  { %v2466_v3 = vmul.f32 0.01, %v2403_v53 }
 0x5cf   :  { %v2506_v7 = vmax.f32 %v2403_v53, %v2466_v3 }
 0x5d0   :  { %v2595_v56 = vld [vmem:[#allocation2 + $0x201] ss:$4 sm:$0xff]  ;;  %v2571_v33 = vld [vmem:[#allocation2 + $0x200] ss:$4 sm:$0xff]  ;;  %v2773_v40 = vld [vmem:[#allocation2 + $0x202] ss:$4 sm:$0xff] }
 0x5d1   :  { %2546 = vst.msk [vmem:[#allocation2 + $0x220] sm:$0xff] %vm432_vm2, %v2506_v7  ;;  %4464 = vmatmul.msk.f32.gmra.mxu2 %vm432_vm2, %v2595_v56  ;;  %4474 = vmatmul.msk.f32.gmra.mxu3 %vm432_vm2, %v2571_v33  ;;  %v3226_v7 = vld [vmem:[%s6387_s3 + $0xd0] sm:$0xff] }
 0x5d2   :  { %4484 = vmatmul.msk.f32.gmra.mxu0 %vm432_vm2, %v2773_v40  ;;  %v2405_v21 = vpop.f32.mrf.mxu1  ;;  %v3337_v56 = vld [vmem:[%s6387_s3 + $0xf0] sm:$0xff]  ;;  %3271 = vmatpush.msra.mxu2 %v3226_v7 }
 0x5d3   :  { %v2406_v44 = vadd.f32 %v5564_v12, %v2405_v21  ;;  %3382 = vmatpush.msrb.mxu3 %v3337_v56 }
 0x5d5   :  { %v2467_v36 = vmul.f32 0.01, %v2406_v44 }
 0x5d7   :  { %v2507_v22 = vmax.f32 %v2406_v44, %v2467_v36 }
 0x5d9   :  { %2547 = vst.msk [vmem:[#allocation2 + $0x228] sm:$0xff] %vm432_vm2, %v2507_v22 }
 0x5da   :  { %v2408_v24 = vpop.f32.mrf.mxu1 }
 0x5db   :  { %v2409_v60 = vadd.f32 %v5564_v12, %v2408_v24  ;;  %v3094_v24 = vld [vmem:[#allocation2 + $0x145] ss:$4 sm:$0xff] }
 0x5dd   :  { %v2468_v35 = vmul.f32 0.01, %v2409_v60 }
 0x5df   :  { %v2508_v54 = vmax.f32 %v2409_v60, %v2468_v35  ;;  %v2985_v60 = vld [vmem:[#allocation2 + $0x164] ss:$4 sm:$0xff]  ;;  %v3096_v35 = vld [vmem:[#allocation2 + $0x165] ss:$4 sm:$0xff] }
 0x5e1   :  { %2548 = vst.msk [vmem:[#allocation2 + $0x230] sm:$0xff] %vm432_vm2, %v2508_v54  ;;  %v3225_v54 = vld [vmem:[%s6387_s3 + $0xc8] sm:$0xff] }
 0x5e2   :  { %v2411_v57 = vpop.f32.mrf.mxu1  ;;  %3272 = vmatpush.msra.mxu2 %v3225_v54  ;;  %v3328_v54 = vld [vmem:[#allocation2 + $0x207] ss:$4 sm:$0xff] }
 0x5e3   :  { %v2412_v41 = vadd.f32 %v5564_v12, %v2411_v57  ;;  %v3336_v57 = vld [vmem:[%s6387_s3 + $0xe8] sm:$0xff] }
 0x5e4   :  { %3383 = vmatpush.msrb.mxu3 %v3336_v57 }
 0x5e5   :  { %v2469_v39 = vmul.f32 0.01, %v2412_v41 }
 0x5e7   :  { %v2509_v18 = vmax.f32 %v2412_v41, %v2469_v39  ;;  %v2876_v41 = vld [vmem:[#allocation2 + $0x183] ss:$4 sm:$0xff]  ;;  %v2987_v39 = vld [vmem:[#allocation2 + $0x184] ss:$4 sm:$0xff] }
 0x5e9   :  { %2549 = vst.msk [vmem:[#allocation2 + $0x238] sm:$0xff] %vm432_vm2, %v2509_v18  ;;  %v3098_v18 = vld [vmem:[#allocation2 + $0x185] ss:$4 sm:$0xff] }
 0x5ea   :  { %v2414_v63 = vpop.f32.mrf.mxu1 }
 0x5eb   :  { %v2415_v16 = vadd.f32 %v5564_v12, %v2414_v63  ;;  %v2989_v63 = vld [vmem:[#allocation2 + $0x1a4] ss:$4 sm:$0xff] }
 0x5ed   :  { %v2470_v29 = vmul.f32 0.01, %v2415_v16 }
 0x5ef   :  { %v2510_v51 = vmax.f32 %v2415_v16, %v2470_v29  ;;  %v3100_v16 = vld [vmem:[#allocation2 + $0x1a5] ss:$4 sm:$0xff] }
 0x5f0   :  { %v2597_v26 = vld [vmem:[#allocation2 + $0x221] ss:$4 sm:$0xff]  ;;  %v2573_v42 = vld [vmem:[#allocation2 + $0x220] ss:$4 sm:$0xff]  ;;  %v2775_v31 = vld [vmem:[#allocation2 + $0x222] ss:$4 sm:$0xff] }
 0x5f1   :  { %2550 = vst.msk [vmem:[#allocation2 + $0x240] sm:$0xff] %vm432_vm2, %v2510_v51  ;;  %4465 = vmatmul.msk.f32.gmra.mxu2 %vm432_vm2, %v2597_v26  ;;  %4475 = vmatmul.msk.f32.gmra.mxu3 %vm432_vm2, %v2573_v42  ;;  %v3224_v29 = vld [vmem:[%s6387_s3 + $0xc0] sm:$0xff] }
 0x5f2   :  { %4485 = vmatmul.msk.f32.gmra.mxu0 %vm432_vm2, %v2775_v31  ;;  %v2417_v10 = vpop.f32.mrf.mxu1  ;;  %3273 = vmatpush.msra.mxu2 %v3224_v29  ;;  %v3335_v51 = vld [vmem:[%s6387_s3 + $0xe0] sm:$0xff] }
 0x5f3   :  { %v2418_v58 = vadd.f32 %v5564_v12, %v2417_v10  ;;  %v2880_v26 = vld [vmem:[#allocation2 + $0x1c3] ss:$4 sm:$0xff]  ;;  %v2991_v42 = vld [vmem:[#allocation2 + $0x1c4] ss:$4 sm:$0xff]  ;;  %3384 = vmatpush.msrb.mxu3 %v3335_v51  ;;  %v3102_v31 = vld [vmem:[#allocation2 + $0x1c5] ss:$4 sm:$0xff] }
 0x5f4   :  { %v2993_v10 = vld [vmem:[#allocation2 + $0x1e4] ss:$4 sm:$0xff] }
 0x5f5   :  { %v2471_v61 = vmul.f32 0.01, %v2418_v58 }
 0x5f7   :  { %v2511_v46 = vmax.f32 %v2418_v58, %v2471_v61  ;;  %v3104_v58 = vld [vmem:[#allocation2 + $0x1e5] ss:$4 sm:$0xff]  ;;  %v2884_v61 = vld [vmem:[#allocation2 + $0x203] ss:$4 sm:$0xff] }
 0x5f8   :  { %v2997_v48 = vld [vmem:[#allocation2 + $0x224] ss:$4 sm:$0xff]  ;;  %v3108_v59 = vld [vmem:[#allocation2 + $0x225] ss:$4 sm:$0xff] }
 0x5f9   :  { %2551 = vst.msk [vmem:[#allocation2 + $0x248] sm:$0xff] %vm432_vm2, %v2511_v46  ;;  %v2995_v46 = vld [vmem:[#allocation2 + $0x204] ss:$4 sm:$0xff] }
 0x5fa   :  { %v2420_v14 = vpop.f32.mrf.mxu1 }
 0x5fb   :  { %v2421_v5 = vadd.f32 %v5564_v12, %v2420_v14  ;;  %v3106_v14 = vld [vmem:[#allocation2 + $0x205] ss:$4 sm:$0xff] }
 0x5fd   :  { %v2472_v6 = vmul.f32 0.01, %v2421_v5 }
 0x5ff   :  { %v2512_v23 = vmax.f32 %v2421_v5, %v2472_v6  ;;  %v5893_v5 = vpop.f32.mrf.mxu2  ;;  %v5895_v6 = vpop.f32.mrf.mxu3 }
 0x601   :  { %2552 = vst.msk [vmem:[#allocation2 + $0x250] sm:$0xff] %vm432_vm2, %v2512_v23  ;;  %v2886_v23 = vld [vmem:[#allocation2 + $0x223] ss:$4 sm:$0xff] }
 0x602   :  { %v2423_v17 = vpop.f32.mrf.mxu1 }
 0x603   :  { %v2424_v45 = vadd.f32 %v5564_v12, %v2423_v17 }
 0x605   :  { %v2473_v49 = vmul.f32 0.01, %v2424_v45 }
 0x607   :  { %v2513_v37 = vmax.f32 %v2424_v45, %v2473_v49  ;;  %v5900_v17 = vpop.f32.mrf.mxu2  ;;  %v5902_v45 = vpop.f32.mrf.mxu3 }
 0x609   :  { %2553 = vst.msk [vmem:[#allocation2 + $0x258] sm:$0xff] %vm432_vm2, %v2513_v37 }
 0x60a   :  { %v2426_v32 = vpop.f32.mrf.mxu1 }
 0x60b   :  { %v2427_v0 = vadd.f32 %v5564_v12, %v2426_v32 }
 0x60d   :  { %v2474_v8 = vmul.f32 0.01, %v2427_v0 }
 0x60f   :  { %v2514_v9 = vmax.f32 %v2427_v0, %v2474_v8  ;;  %v5907_v27 = vpop.f32.mrf.mxu2  ;;  %v5909_v47 = vpop.f32.mrf.mxu3 }
 0x610   :  { %v2599_v52 = vld [vmem:[#allocation2 + $0x241] ss:$4 sm:$0xff]  ;;  %v2575_v15 = vld [vmem:[#allocation2 + $0x240] ss:$4 sm:$0xff]  ;;  %v2777_v13 = vld [vmem:[#allocation2 + $0x242] ss:$4 sm:$0xff] }
 0x611   :  { %2554 = vst.msk [vmem:[#allocation2 + $0x260] sm:$0xff] %vm432_vm2, %v2514_v9  ;;  %4466 = vmatmul.msk.f32.gmra.mxu2 %vm432_vm2, %v2599_v52  ;;  %4476 = vmatmul.msk.f32.gmra.mxu3 %vm432_vm2, %v2575_v15  ;;  %v2888_v49 = vld [vmem:[#allocation2 + $0x243] ss:$4 sm:$0xff]  ;;  %v3205_v52 = vld [vmem:[#allocation2 + $0x146] ss:$4 sm:$0xff] }
 0x612   :  { %4486 = vmatmul.msk.f32.gmra.mxu0 %vm432_vm2, %v2777_v13  ;;  %v2429_v25 = vpop.f32.mrf.mxu1  ;;  %v3316_v15 = vld [vmem:[#allocation2 + $0x147] ss:$4 sm:$0xff] }
 0x613   :  { %v2430_v20 = vadd.f32 %v5564_v12, %v2429_v25 }
 0x615   :  { %v2475_v38 = vmul.f32 0.01, %v2430_v20 }
 0x617   :  { %v2515_v30 = vmax.f32 %v2430_v20, %v2475_v38  ;;  %v5914_v62 = vpop.f32.mrf.mxu2  ;;  %v5916_v2 = vpop.f32.mrf.mxu3 }
 0x618   :  { %v2999_v37 = vld [vmem:[#allocation2 + $0x244] ss:$4 sm:$0xff]  ;;  %v3110_v32 = vld [vmem:[#allocation2 + $0x245] ss:$4 sm:$0xff]  ;;  %v3221_v51 = vld [vmem:[#allocation2 + $0x246] ss:$4 sm:$0xff] }
 0x619   :  { %2555 = vst.msk [vmem:[#allocation2 + $0x268] sm:$0xff] %vm432_vm2, %v2515_v30  ;;  %v3209_v30 = vld [vmem:[#allocation2 + $0x186] ss:$4 sm:$0xff] }
 0x61a   :  { %v2432_v55 = vpop.f32.mrf.mxu1 }
 0x61b   :  { %v2433_v34 = vadd.f32 %v5564_v12, %v2432_v55  ;;  %v3320_v55 = vld [vmem:[#allocation2 + $0x187] ss:$4 sm:$0xff] }
 0x61d   :  { %v2476_v50 = vmul.f32 0.01, %v2433_v34 }
 0x61f   :  { %v2516_v53 = vmax.f32 %v2433_v34, %v2476_v50  ;;  %v5920_v13 = vpop.f32.mrf.mxu2  ;;  %v5922_v25 = vpop.f32.mrf.mxu3 }
 0x621   :  { %2556 = vst.msk [vmem:[#allocation2 + $0x270] sm:$0xff] %vm432_vm2, %v2516_v53  ;;  %v3211_v53 = vld [vmem:[#allocation2 + $0x1a6] ss:$4 sm:$0xff] }
 0x622   :  { %v2435_v3 = vpop.f32.mrf.mxu1 }
 0x623   :  { %v2436_v33 = vadd.f32 %v5564_v12, %v2435_v3  ;;  %v2874_v12 = vld [vmem:[#allocation2 + $0x163] ss:$4 sm:$0xff] }
 0x624   :  { %v3322_v3 = vld [vmem:[#allocation2 + $0x1a7] ss:$4 sm:$0xff] }
 0x625   :  { %v2477_v40 = vmul.f32 0.01, %v2436_v33 }
 0x627   :  { %v2517_v21 = vmax.f32 %v2436_v33, %v2477_v40  ;;  %v5934_v33 = vpop.f32.mrf.mxu0  ;;  %v3213_v40 = vld [vmem:[#allocation2 + $0x1c6] ss:$4 sm:$0xff] }
 0x628   :  { %v2601_v44 = vld [vmem:[#allocation2 + $0x261] ss:$4 sm:$0x3f]  ;;  %v2577_v36 = vld [vmem:[#allocation2 + $0x260] ss:$4 sm:$0x3f] }
 0x629   :  { %2557 = vst.msk [vmem:[#allocation2 + $0x278] sm:$0xf] %vm472_vm3, %v2517_v21  ;;  %4467 = vmatmul.msk.f32.gmra.mxu2 %vm432_vm2, %v2601_v44  ;;  %4477 = vmatmul.msk.f32.gmra.mxu3 %vm432_vm2, %v2577_v36  ;;  %v2779_v22 = vld [vmem:[#allocation2 + $0x262] ss:$4 sm:$0x3f]  ;;  %vm2076_vm3 = vcmask 56320  }
 0x62a   :  { %4487 = vmatmul.msk.f32.gmra.mxu0 %vm432_vm2, %v2779_v22  ;;  %v2890_v0 = vld [vmem:[#allocation2 + $0x263] ss:$4 sm:$0x3f] }
 0x62b   :  { %v3324_v21 = vld [vmem:[#allocation2 + $0x1c7] ss:$4 sm:$0xff] }
 0x62f   :  { %v5942_v22 = vpop.f32.mrf.mxu0 }
 0x630   :  { %v3001_v8 = vld [vmem:[#allocation2 + $0x264] ss:$4 sm:$0x3f]  ;;  %v3112_v9 = vld [vmem:[#allocation2 + $0x265] ss:$4 sm:$0x3f] }
 0x631   :  { %4488 = vmatmul.msk.f32.vlgmr.msrb.gmra.mxu2 %vm432_vm2, %v2872_v1  ;;  %4498 = vmatmul.msk.f32.vlgmr.msra.gmra.mxu3 %vm432_vm2, %v2983_v43  ;;  %v3215_v1 = vld [vmem:[#allocation2 + $0x1e6] ss:$4 sm:$0xff]  ;;  %v3326_v43 = vld [vmem:[#allocation2 + $0x1e7] ss:$4 sm:$0xff] }
 0x632   :  { %4508 = vmatmul.msk.f32.vlgmr.msra.gmra.mxu0 %vm432_vm2, %v3094_v24 }
 0x634   :  { %v2668_v20 = vpop.f32.mrf.mxu2  ;;  %v2745_v38 = vpop.f32.mrf.mxu3 }
 0x639   :  { %4489 = vmatmul.msk.f32.gmra.mxu2 %vm432_vm2, %v2874_v12  ;;  %4499 = vmatmul.msk.f32.gmra.mxu3 %vm432_vm2, %v2985_v60  ;;  %v5950_v60 = vpop.f32.mrf.mxu0 }
 0x63a   :  { %4509 = vmatmul.msk.f32.gmra.mxu0 %vm432_vm2, %v3096_v35  ;;  %v3217_v35 = vld [vmem:[#allocation2 + $0x206] ss:$4 sm:$0xff] }
 0x641   :  { %4490 = vmatmul.msk.f32.gmra.mxu2 %vm432_vm2, %v2876_v41  ;;  %4500 = vmatmul.msk.f32.gmra.mxu3 %vm432_vm2, %v2987_v39  ;;  %v5958_v39 = vpop.f32.mrf.mxu0 }
 0x642   :  { %4510 = vmatmul.msk.f32.gmra.mxu0 %vm432_vm2, %v3098_v18  ;;  %v3219_v18 = vld [vmem:[#allocation2 + $0x226] ss:$4 sm:$0xff] }
 0x649   :  { %4491 = vmatmul.msk.f32.gmra.mxu2 %vm432_vm2, %v2878_v11  ;;  %4501 = vmatmul.msk.f32.gmra.mxu3 %vm432_vm2, %v2989_v63  ;;  %v3330_v11 = vld [vmem:[#allocation2 + $0x227] ss:$4 sm:$0xff]  ;;  %v5966_v29 = vpop.f32.mrf.mxu0 }
 0x64a   :  { %4511 = vmatmul.msk.f32.gmra.mxu0 %vm432_vm2, %v3100_v16 }
 0x651   :  { %4492 = vmatmul.msk.f32.gmra.mxu2 %vm432_vm2, %v2880_v26  ;;  %4502 = vmatmul.msk.f32.gmra.mxu3 %vm432_vm2, %v2991_v42  ;;  %v3332_v26 = vld [vmem:[#allocation2 + $0x247] ss:$4 sm:$0xff] }
 0x652   :  { %4512 = vmatmul.msk.f32.gmra.mxu0 %vm432_vm2, %v3102_v31 }
 0x654   :  { %v2671_v34 = vpop.f32.mrf.mxu2  ;;  %v2748_v50 = vpop.f32.mrf.mxu3 }
 0x659   :  { %4493 = vmatmul.msk.f32.gmra.mxu2 %vm432_vm2, %v2882_v4  ;;  %4503 = vmatmul.msk.f32.gmra.mxu3 %vm432_vm2, %v2993_v10  ;;  %v2846_v4 = vpop.f32.mrf.mxu0  ;;  %v3223_v10 = vld [vmem:[#allocation2 + $0x266] ss:$4 sm:$0x3f] }
 0x65a   :  { %4513 = vmatmul.msk.f32.gmra.mxu0 %vm432_vm2, %v3104_v58  ;;  %v3334_v58 = vld [vmem:[#allocation2 + $0x267] ss:$4 sm:$0x3f] }
 0x661   :  { %4494 = vmatmul.msk.f32.gmra.mxu2 %vm432_vm2, %v2884_v61  ;;  %4504 = vmatmul.msk.f32.gmra.mxu3 %vm432_vm2, %v2995_v46 }
 0x662   :  { %4514 = vmatmul.msk.f32.gmra.mxu0 %vm432_vm2, %v3106_v14  ;;  %v2849_v14 = vpop.f32.mrf.mxu0 }
 0x669   :  { %4495 = vmatmul.msk.f32.gmra.mxu2 %vm432_vm2, %v2886_v23  ;;  %4505 = vmatmul.msk.f32.gmra.mxu3 %vm432_vm2, %v2997_v48  ;;  %v3491_v23 = vld [vmem:[%s6389_s5 + $0x38] sm:$0xff] }
 0x66a   :  { %4515 = vmatmul.msk.f32.gmra.mxu0 %vm432_vm2, %v3108_v59 }
 0x66b   :  { %3519 = vmatpush.msrb.mxu0 %v3491_v23 }
 0x671   :  { %4496 = vmatmul.msk.f32.gmra.mxu2 %vm432_vm2, %v2888_v49  ;;  %4506 = vmatmul.msk.f32.gmra.mxu3 %vm432_vm2, %v2999_v37  ;;  %v2852_v49 = vpop.f32.mrf.mxu0  ;;  %v2746_v37 = vadd.f32 %v2745_v38, %v2668_v20 }
 0x672   :  { %4516 = vmatmul.msk.f32.gmra.mxu0 %vm432_vm2, %v3110_v32 }
 0x673   :  { %v2866_v32 = vadd.f32 %v2846_v4, %v2746_v37 }
 0x674   :  { %v5930_v7 = vpop.f32.mrf.mxu2  ;;  %v5932_v56 = vpop.f32.mrf.mxu3 }
 0x675   :  { %v2752_v20 = vadd.f32 %v5932_v56, %v5930_v7 }
 0x679   :  { %4497 = vmatmul.msk.f32.gmra.mxu2 %vm432_vm2, %v2890_v0  ;;  %4507 = vmatmul.msk.f32.gmra.mxu3 %vm432_vm2, %v3001_v8 }
 0x67a   :  { %4517 = vmatmul.msk.f32.gmra.mxu0 %vm432_vm2, %v3112_v9 }
 0x681   :  { %4518 = vmatmul.msk.f32.vlgmr.msra.gmra.mxu2 %vm432_vm2, %v3205_v52  ;;  %4528 = vmatmul.msk.f32.vlgmr.msrb.gmra.mxu3 %vm432_vm2, %v3316_v15  ;;  %v2749_v15 = vadd.f32 %v2748_v50, %v2671_v34 }
 0x689   :  { %4519 = vmatmul.msk.f32.gmra.mxu2 %vm432_vm2, %v3207_v28  ;;  %4529 = vmatmul.msk.f32.gmra.mxu3 %vm432_vm2, %v3318_v19  ;;  %v3490_v19 = vld [vmem:[%s6389_s5 + $0x30] sm:$0xff] }
 0x68a   :  { %3520 = vmatpush.msrb.mxu0 %v3490_v19  ;;  %v3594_v19 = vld [vmem:[%s6389_s5 + $0x48] sm:$0xff] }
 0x68f   :  { %v2855_v9 = vpop.f32.mrf.mxu0 }
 0x691   :  { %4520 = vmatmul.msk.f32.gmra.mxu2 %vm432_vm2, %v3209_v30  ;;  %4530 = vmatmul.msk.f32.gmra.mxu3 %vm432_vm2, %v3320_v55  ;;  %v2867_v30 = vadd.f32 %v2849_v14, %v2749_v15  ;;  %v2737_v15 = vadd.f32 %v5909_v47, %v5907_v27  ;;  %v3593_v27 = vld [vmem:[%s6389_s5 + $0x40] sm:$0xff] }
 0x692   :  { %v3656_v47 = vld [vmem:[%s6389_s5 + $0x60] sm:$0xff] }
 0x694   :  { %v5938_v44 = vpop.f32.mrf.mxu2  ;;  %v5940_v36 = vpop.f32.mrf.mxu3 }
 0x699   :  { %4521 = vmatmul.msk.f32.gmra.mxu2 %vm432_vm2, %v3211_v53  ;;  %4531 = vmatmul.msk.f32.gmra.mxu3 %vm432_vm2, %v3322_v3 }
 0x6a1   :  { %4522 = vmatmul.msk.f32.gmra.mxu2 %vm432_vm2, %v3213_v40  ;;  %4532 = vmatmul.msk.f32.gmra.mxu3 %vm432_vm2, %v3324_v21  ;;  %v2868_v21 = vadd.f32 %v2852_v49, %v2752_v20 }
 0x6a7   :  { %v2858_v3 = vpop.f32.mrf.mxu0 }
 0x6a9   :  { %4523 = vmatmul.msk.f32.gmra.mxu2 %vm432_vm2, %v3215_v1  ;;  %4533 = vmatmul.msk.f32.gmra.mxu3 %vm432_vm2, %v3326_v43  ;;  %v2755_v43 = vadd.f32 %v5940_v36, %v5938_v44 }
 0x6ac   :  { %v5946_v24 = vpop.f32.mrf.mxu2  ;;  %v5948_v12 = vpop.f32.mrf.mxu3 }
 0x6ad   :  { %v2758_v7 = vadd.f32 %v5948_v12, %v5946_v24  ;;  %v3489_v24 = vld [vmem:[%s6389_s5 + $0x28] sm:$0xff] }
 0x6ae   :  { %3521 = vmatpush.msrb.mxu0 %v3489_v24 }
 0x6af   :  { %v2870_v14 = vadd.f32 %v2858_v3, %v2758_v7  ;;  %v2863_v3 = vadd.f32 %v5950_v60, %v2737_v15 }
 0x6b1   :  { %4524 = vmatmul.msk.f32.gmra.mxu2 %vm432_vm2, %v3217_v35  ;;  %4534 = vmatmul.msk.f32.gmra.mxu3 %vm432_vm2, %v3328_v54  ;;  %v3164_v35 = vpop.f32.mrf.mxu0 }
 0x6b4   :  { %v5954_v57 = vpop.f32.mrf.mxu2  ;;  %v5956_v41 = vpop.f32.mrf.mxu3 }
 0x6b9   :  { %4525 = vmatmul.msk.f32.gmra.mxu2 %vm432_vm2, %v3219_v18  ;;  %4535 = vmatmul.msk.f32.gmra.mxu3 %vm432_vm2, %v3330_v11  ;;  %v2869_v18 = vadd.f32 %v2855_v9, %v2755_v43  ;;  %v3167_v36 = vpop.f32.mrf.mxu0 }
 0x6bc   :  { %v5962_v63 = vpop.f32.mrf.mxu2  ;;  %v5964_v16 = vpop.f32.mrf.mxu3 }
 0x6c1   :  { %4526 = vmatmul.msk.f32.gmra.mxu2 %vm432_vm2, %v3221_v51  ;;  %4536 = vmatmul.msk.f32.gmra.mxu3 %vm432_vm2, %v3332_v26  ;;  %v2731_v26 = vadd.f32 %v5895_v6, %v5893_v5  ;;  %v2734_v5 = vadd.f32 %v5902_v45, %v5900_v17 }
 0x6c3   :  { %v2861_v44 = vadd.f32 %v5934_v33, %v2731_v26  ;;  %v3659_v33 = vld [vmem:[%s6389_s5 + $0x78] sm:$0xff]  ;;  %v2862_v17 = vadd.f32 %v5942_v22, %v2734_v5 }
 0x6c4   :  { %v5970_v42 = vpop.f32.mrf.mxu2  ;;  %v5972_v31 = vpop.f32.mrf.mxu3  ;;  %3687 = vmatpush.msra.mxu3 %v3659_v33 }
 0x6c5   :  { %v2973_v45 = vadd.f32 %v5962_v63, %v2862_v17  ;;  %v6038_v63 = vld [vmem:[%s6388_s4] ss:$0 sm:$0xff]  ;;  %v2974_v20 = vadd.f32 %v5970_v42, %v2863_v3 }
 0x6c9   :  { %4527 = vmatmul.msk.f32.gmra.mxu2 %vm432_vm2, %v3223_v10  ;;  %4537 = vmatmul.msk.f32.gmra.mxu3 %vm432_vm2, %v3334_v58  ;;  %v3596_v10 = vld [vmem:[%s6389_s5 + $0x58] sm:$0xff]  ;;  %v2972_v58 = vadd.f32 %v5954_v57, %v2861_v44  ;;  %v3488_v57 = vld [vmem:[%s6389_s5 + $0x20] sm:$0xff] }
 0x6ca   :  { %3624 = vmatpush.msrb.mxu2 %v3596_v10  ;;  %3522 = vmatpush.msrb.mxu0 %v3488_v57 }
 0x6cb   :  { %v3083_v12 = vadd.f32 %v5956_v41, %v2972_v58  ;;  %v3595_v41 = vld [vmem:[%s6389_s5 + $0x50] sm:$0xff] }
 0x6cc   :  { %v5976_v61 = vpop.f32.mrf.mxu2  ;;  %v5978_v46 = vpop.f32.mrf.mxu3  ;;  %3625 = vmatpush.msrb.mxu2 %v3595_v41 }
 0x6ce   :  { %3626 = vmatpush.msrb.mxu2 %v3594_v19 }
 0x6d0   :  { %3627 = vmatpush.msrb.mxu2 %v3593_v27 }
 0x6d4   :  { %v5983_v48 = vpop.f32.mrf.mxu2  ;;  %v5985_v59 = vpop.f32.mrf.mxu3 }
 0x6dc   :  { %v2957_v0 = vpop.f32.mrf.mxu2  ;;  %v3068_v8 = vpop.f32.mrf.mxu3 }
 0x6dd   :  { %v2977_v52 = vadd.f32 %v2957_v0, %v2866_v32  ;;  %v3170_v32 = vpop.f32.mrf.mxu0  ;;  %v3194_v0 = vadd.f32 %v3164_v35, %v3083_v12 }
 0x6df   :  { %v5987_v28 = vadd.f32 %v3068_v8, %v2977_v52  ;;  %v3658_v8 = vld [vmem:[%s6389_s5 + $0x70] sm:$0xff] }
 0x6e0   :  { %3688 = vmatpush.msra.mxu3 %v3658_v8 }
 0x6e4   :  { %v2960_v55 = vpop.f32.mrf.mxu2  ;;  %v3071_v53 = vpop.f32.mrf.mxu3 }
 0x6e5   :  { %v2978_v40 = vadd.f32 %v2960_v55, %v2867_v30  ;;  %v3657_v30 = vld [vmem:[%s6389_s5 + $0x68] sm:$0xff]  ;;  %v3084_v55 = vadd.f32 %v5964_v16, %v2973_v45  ;;  %v3173_v43 = vpop.f32.mrf.mxu0 }
 0x6e6   :  { %3689 = vmatpush.msra.mxu3 %v3657_v30 }
 0x6e7   :  { %v5994_v38 = vadd.f32 %v3071_v53, %v2978_v40 }
 0x6e8   :  { %3690 = vmatpush.msra.mxu3 %v3656_v47 }
 0x6ec   :  { %v2963_v1 = vpop.f32.mrf.mxu2  ;;  %v3074_v34 = vpop.f32.mrf.mxu3 }
 0x6ed   :  { %v2979_v50 = vadd.f32 %v2963_v1, %v2868_v21  ;;  %v3195_v1 = vadd.f32 %v3167_v36, %v3084_v55  ;;  %v3176_v58 = vpop.f32.mrf.mxu0 }
 0x6ef   :  { %v5998_v54 = vadd.f32 %v3074_v34, %v2979_v50  ;;  %v2740_v50 = vadd.f32 %v5916_v2, %v5914_v62  ;;  %v2743_v62 = vadd.f32 %v5922_v25, %v5920_v13 }
 0x6f1   :  { %v2864_v60 = vadd.f32 %v5958_v39, %v2740_v50  ;;  %v2865_v39 = vadd.f32 %v5966_v29, %v2743_v62 }
 0x6f3   :  { %v2975_v42 = vadd.f32 %v5976_v61, %v2864_v60  ;;  %v2976_v61 = vadd.f32 %v5983_v48, %v2865_v39  ;;  %v3478_v60 = vld [vmem:[%s6389_s5 + $0x8] sm:$0xff] }
 0x6f4   :  { %v2966_v11 = vpop.f32.mrf.mxu2  ;;  %v3077_v51 = vpop.f32.mrf.mxu3 }
 0x6f5   :  { %v2980_v4 = vadd.f32 %v2966_v11, %v2869_v18  ;;  %v3085_v11 = vadd.f32 %v5972_v31, %v2974_v20  ;;  %v3086_v31 = vadd.f32 %v5978_v46, %v2975_v42  ;;  %v3087_v33 = vadd.f32 %v5985_v59, %v2976_v61  ;;  %v3179_v57 = vpop.f32.mrf.mxu0  ;;  %v3480_v59 = vld [vmem:[%s6389_s5 + $0x18] sm:$0xff]  ;;  %v3479_v20 = vld [vmem:[%s6389_s5 + $0x10] sm:$0xff] }
 0x6f6   :  { %3566 = vmatpush.msra.mxu0 %v3480_v59  ;;  %v3199_v30 = vadd.f32 %v3179_v57, %v5987_v28 }
 0x6f7   :  { %v6004_v56 = vadd.f32 %v3077_v51, %v2980_v4  ;;  %v3196_v7 = vadd.f32 %v3170_v32, %v3085_v11  ;;  %v3197_v5 = vadd.f32 %v3173_v43, %v3086_v31  ;;  %v3198_v45 = vadd.f32 %v3176_v58, %v3087_v33 }
 0x6f8   :  { %3567 = vmatpush.msra.mxu0 %v3479_v20  ;;  %v3747_v20 = vld [vmem:[%s6391_s7 + $0x28] sm:$0xff] }
 0x6fa   :  { %3568 = vmatpush.msra.mxu0 %v3478_v60  ;;  %v3824_v60 = vld [vmem:[%s6391_s7 + $0x48] sm:$0xff] }
 0x6fc   :  { %v2969_v23 = vpop.f32.mrf.mxu2  ;;  %v3080_v49 = vpop.f32.mrf.mxu3 }
 0x6fd   :  { %v2981_v6 = vadd.f32 %v2969_v23, %v2870_v14 }
 0x6ff   :  { %v6017_v37 = vadd.f32 %v3080_v49, %v2981_v6 }
 0x704   :  { %v3275_v9 = vpop.f32.mrf.mxu2  ;;  %v3386_v52 = vpop.f32.mrf.mxu3 }
 0x705   :  { %v3305_v22 = vadd.f32 %v3275_v9, %v3194_v0 }
 0x707   :  { %v3416_v53 = vadd.f32 %v3386_v52, %v3305_v22  ;;  %v3182_v22 = vpop.f32.mrf.mxu0 }
 0x708   :  { %v3200_v28 = vadd.f32 %v3182_v22, %v5994_v38  ;;  %v3477_v38 = vld [vmem:[%s6389_s5] sm:$0xff] }
 0x709   :  { %v3430_v40 = vadd.f32 %v6038_v63, %v3416_v53  ;;  %3569 = vmatpush.msra.mxu0 %v3477_v38  ;;  %v3869_v38 = vld [vmem:[%s6391_s7 + $0x68] sm:$0xff] }
 0x70b   :  { %v3440_v21 = vmul.f32 0.01, %v3430_v40 }
 0x70c   :  { %v3278_v16 = vpop.f32.mrf.mxu2  ;;  %v3389_v34 = vpop.f32.mrf.mxu3 }
 0x70d   :  { %v3450_v35 = vmax.f32 %v3430_v40, %v3440_v21  ;;  %v3306_v18 = vadd.f32 %v3278_v16, %v3195_v1 }
 0x70f   :  { %3460 = vst.msk [vmem:[#allocation2 + $0x140] sm:$0xff] %vm432_vm2, %v3450_v35  ;;  %v3417_v51 = vadd.f32 %v3389_v34, %v3306_v18  ;;  %v3185_v35 = vpop.f32.mrf.mxu0 }
 0x711   :  { %v3431_v26 = vadd.f32 %v6038_v63, %v3417_v51 }
 0x713   :  { %v3441_v4 = vmul.f32 0.01, %v3431_v26 }
 0x714   :  { %v3281_v10 = vpop.f32.mrf.mxu2  ;;  %v3392_v44 = vpop.f32.mrf.mxu3 }
 0x715   :  { %v3451_v2 = vmax.f32 %v3431_v26, %v3441_v4  ;;  %v3307_v36 = vadd.f32 %v3281_v10, %v3196_v7  ;;  %v3201_v4 = vadd.f32 %v3185_v35, %v5998_v54  ;;  %v3870_v35 = vld [vmem:[%s6391_s7 + $0x70] sm:$0xff] }
 0x717   :  { %3461 = vst.msk [vmem:[#allocation2 + $0x148] sm:$0xff] %vm432_vm2, %v3451_v2  ;;  %v3418_v14 = vadd.f32 %v3392_v44, %v3307_v36  ;;  %v3188_v31 = vpop.f32.mrf.mxu0 }
 0x718   :  { %v3202_v39 = vadd.f32 %v3188_v31, %v6004_v56 }
 0x719   :  { %v3432_v23 = vadd.f32 %v6038_v63, %v3418_v14 }
 0x71b   :  { %v3442_v49 = vmul.f32 0.01, %v3432_v23 }
 0x71c   :  { %v3284_v6 = vpop.f32.mrf.mxu2  ;;  %v3395_v24 = vpop.f32.mrf.mxu3 }
 0x71d   :  { %v3452_v12 = vmax.f32 %v3432_v23, %v3442_v49  ;;  %v3308_v13 = vadd.f32 %v3284_v6, %v3197_v5 }
 0x71e   :  { %v3481_v25 = vld [vmem:[#allocation2 + $0x141] ss:$2 sm:$0xff] }
 0x71f   :  { %3462 = vst.msk [vmem:[#allocation2 + $0x150] sm:$0xff] %vm432_vm2, %v3452_v12  ;;  %v3419_v46 = vadd.f32 %v3395_v24, %v3308_v13  ;;  %4538 = vmatmul.msk.f32.vlgmr.msrb.gmra.mxu0 %vm432_vm2, %v3481_v25  ;;  %v3191_v13 = vpop.f32.mrf.mxu0 }
 0x720   :  { %v3203_v33 = vadd.f32 %v3191_v13, %v6017_v37 }
 0x721   :  { %v3433_v29 = vadd.f32 %v6038_v63, %v3419_v46 }
 0x723   :  { %v3443_v17 = vmul.f32 0.01, %v3433_v29 }
 0x724   :  { %v3287_v48 = vpop.f32.mrf.mxu2  ;;  %v3398_v32 = vpop.f32.mrf.mxu3 }
 0x725   :  { %v3453_v0 = vmax.f32 %v3433_v29, %v3443_v17  ;;  %v3309_v41 = vadd.f32 %v3287_v48, %v3198_v45 }
 0x726   :  { %v3586_v8 = vld [vmem:[#allocation2 + $0x142] ss:$2 sm:$0xff]  ;;  %v3649_v9 = vld [vmem:[#allocation2 + $0x143] ss:$2 sm:$0xff] }
 0x727   :  { %3463 = vst.msk [vmem:[#allocation2 + $0x158] sm:$0xff] %vm432_vm2, %v3453_v0  ;;  %v3420_v52 = vadd.f32 %v3398_v32, %v3309_v41  ;;  %4548 = vmatmul.msk.f32.vlgmr.msrb.gmra.mxu2 %vm432_vm2, %v3586_v8  ;;  %4553 = vmatmul.msk.f32.vlgmr.msra.gmra.mxu3 %vm432_vm2, %v3649_v9 }
 0x729   :  { %v3434_v15 = vadd.f32 %v6038_v63, %v3420_v52 }
 0x72b   :  { %v3444_v19 = vmul.f32 0.01, %v3434_v15 }
 0x72c   :  { %v3290_v55 = vpop.f32.mrf.mxu2  ;;  %v3401_v53 = vpop.f32.mrf.mxu3 }
 0x72d   :  { %v3454_v27 = vmax.f32 %v3434_v15, %v3444_v19  ;;  %v3310_v47 = vadd.f32 %v3290_v55, %v3199_v30  ;;  %v3749_v55 = vld [vmem:[%s6391_s7 + $0x38] sm:$0xff] }
 0x72e   :  { %v3483_v3 = vld [vmem:[#allocation2 + $0x151] ss:$2 sm:$0xff]  ;;  %v3472_v59 = vld [vmem:[#allocation2 + $0x150] ss:$2 sm:$0xff]  ;;  %3771 = vmatpush.msrb.mxu0 %v3749_v55 }
 0x72f   :  { %3464 = vst.msk [vmem:[#allocation2 + $0x160] sm:$0xff] %vm432_vm2, %v3454_v27  ;;  %v3421_v40 = vadd.f32 %v3401_v53, %v3310_v47  ;;  %4539 = vmatmul.msk.f32.gmra.mxu0 %vm432_vm2, %v3483_v3  ;;  %v3748_v47 = vld [vmem:[%s6391_s7 + $0x30] sm:$0xff] }
 0x730   :  { %3772 = vmatpush.msrb.mxu0 %v3748_v47 }
 0x731   :  { %v3435_v21 = vadd.f32 %v6038_v63, %v3421_v40 }
 0x732   :  { %3773 = vmatpush.msrb.mxu0 %v3747_v20 }
 0x733   :  { %v3445_v1 = vmul.f32 0.01, %v3435_v21 }
 0x734   :  { %v3293_v16 = vpop.f32.mrf.mxu2  ;;  %v3404_v34 = vpop.f32.mrf.mxu3 }
 0x735   :  { %v3455_v50 = vmax.f32 %v3435_v21, %v3445_v1  ;;  %v3311_v43 = vadd.f32 %v3293_v16, %v3200_v28  ;;  %v3826_v21 = vld [vmem:[%s6391_s7 + $0x58] sm:$0xff]  ;;  %v3746_v28 = vld [vmem:[%s6391_s7 + $0x20] sm:$0xff] }
 0x736   :  { %v3588_v18 = vld [vmem:[#allocation2 + $0x152] ss:$2 sm:$0xff]  ;;  %v3651_v11 = vld [vmem:[#allocation2 + $0x153] ss:$2 sm:$0xff]  ;;  %3848 = vmatpush.msra.mxu2 %v3826_v21  ;;  %3774 = vmatpush.msrb.mxu0 %v3746_v28 }
 0x737   :  { %3465 = vst.msk [vmem:[#allocation2 + $0x168] sm:$0xff] %vm432_vm2, %v3455_v50  ;;  %v3422_v51 = vadd.f32 %v3404_v34, %v3311_v43  ;;  %4549 = vmatmul.msk.f32.gmra.mxu2 %vm432_vm2, %v3588_v18  ;;  %4554 = vmatmul.msk.f32.gmra.mxu3 %vm432_vm2, %v3651_v11  ;;  %v3871_v1 = vld [vmem:[%s6391_s7 + $0x78] sm:$0xff]  ;;  %v3825_v43 = vld [vmem:[%s6391_s7 + $0x50] sm:$0xff] }
 0x738   :  { %3893 = vmatpush.msrb.mxu3 %v3871_v1  ;;  %3849 = vmatpush.msra.mxu2 %v3825_v43 }
 0x739   :  { %v3436_v26 = vadd.f32 %v6038_v63, %v3422_v51  ;;  %v6152_v51 = vld [vmem:[%s6390_s6] ss:$0 sm:$0xff] }
 0x73a   :  { %3894 = vmatpush.msrb.mxu3 %v3870_v35  ;;  %3850 = vmatpush.msra.mxu2 %v3824_v60  ;;  %v3934_v60 = vld [vmem:[%s6393_s9 + $0x30] sm:$0xff] }
 0x73b   :  { %v3446_v42 = vmul.f32 0.01, %v3436_v26 }
 0x73c   :  { %v3296_v7 = vpop.f32.mrf.mxu2  ;;  %v3407_v10 = vpop.f32.mrf.mxu3  ;;  %3895 = vmatpush.msrb.mxu3 %v3869_v38  ;;  %v4015_v38 = vld [vmem:[%s6393_s9 + $0x78] sm:$0xff] }
 0x73d   :  { %v3456_v44 = vmax.f32 %v3436_v26, %v3446_v42  ;;  %v3312_v62 = vadd.f32 %v3296_v7, %v3201_v4  ;;  %v3823_v42 = vld [vmem:[%s6391_s7 + $0x40] sm:$0xff] }
 0x73e   :  { %v3484_v2 = vld [vmem:[#allocation2 + $0x161] ss:$2 sm:$0xff]  ;;  %v3473_v15 = vld [vmem:[#allocation2 + $0x160] ss:$2 sm:$0xff]  ;;  %3851 = vmatpush.msra.mxu2 %v3823_v42 }
 0x73f   :  { %3466 = vst.msk [vmem:[#allocation2 + $0x170] sm:$0xff] %vm432_vm2, %v3456_v44  ;;  %v3423_v36 = vadd.f32 %v3407_v10, %v3312_v62  ;;  %4540 = vmatmul.msk.f32.gmra.mxu0 %vm432_vm2, %v3484_v2  ;;  %v3868_v4 = vld [vmem:[%s6391_s7 + $0x60] sm:$0xff]  ;;  %v3933_v42 = vld [vmem:[%s6393_s9 + $0x28] sm:$0xff] }
 0x740   :  { %3896 = vmatpush.msrb.mxu3 %v3868_v4  ;;  %v3985_v4 = vld [vmem:[%s6393_s9 + $0x50] sm:$0xff] }
 0x741   :  { %v3437_v58 = vadd.f32 %v6038_v63, %v3423_v36 }
 0x742   :  { %4031 = vmatpush.msra.mxu3 %v4015_v38 }
 0x743   :  { %v3447_v14 = vmul.f32 0.01, %v3437_v58 }
 0x744   :  { %v3299_v23 = vpop.f32.mrf.mxu2  ;;  %v3410_v61 = vpop.f32.mrf.mxu3 }
 0x745   :  { %v3457_v49 = vmax.f32 %v3437_v58, %v3447_v14  ;;  %v3313_v54 = vadd.f32 %v3299_v23, %v3202_v39  ;;  %v3742_v39 = vld [vmem:[%s6391_s7 + $0x18] sm:$0xff]  ;;  %v3741_v23 = vld [vmem:[%s6391_s7 + $0x10] sm:$0xff] }
 0x746   :  { %v3589_v5 = vld [vmem:[#allocation2 + $0x162] ss:$2 sm:$0xff]  ;;  %v3652_v6 = vld [vmem:[#allocation2 + $0x163] ss:$2 sm:$0xff] }
 0x747   :  { %3467 = vst.msk [vmem:[#allocation2 + $0x178] sm:$0xff] %vm432_vm2, %v3457_v49  ;;  %v3424_v24 = vadd.f32 %v3410_v61, %v3313_v54  ;;  %4550 = vmatmul.msk.f32.gmra.mxu2 %vm432_vm2, %v3589_v5  ;;  %4555 = vmatmul.msk.f32.gmra.mxu3 %vm432_vm2, %v3652_v6  ;;  %v3740_v49 = vld [vmem:[%s6391_s7 + $0x8] sm:$0xff] }
 0x749   :  { %v3438_v12 = vadd.f32 %v6038_v63, %v3424_v24 }
 0x74b   :  { %v3448_v25 = vmul.f32 0.01, %v3438_v12 }
 0x74c   :  { %v3302_v56 = vpop.f32.mrf.mxu2  ;;  %v3413_v29 = vpop.f32.mrf.mxu3 }
 0x74d   :  { %v3458_v46 = vmax.f32 %v3438_v12, %v3448_v25  ;;  %v3314_v57 = vadd.f32 %v3302_v56, %v3203_v33  ;;  %v3739_v56 = vld [vmem:[%s6391_s7] sm:$0xff] }
 0x74e   :  { %v3486_v17 = vld [vmem:[#allocation2 + $0x171] ss:$2 sm:$0xff]  ;;  %v3475_v22 = vld [vmem:[#allocation2 + $0x170] ss:$2 sm:$0xff] }
 0x74f   :  { %3468 = vst.msk [vmem:[#allocation2 + $0x180] sm:$0xff] %vm432_vm2, %v3458_v46  ;;  %v3425_v45 = vadd.f32 %v3413_v29, %v3314_v57  ;;  %4541 = vmatmul.msk.f32.gmra.mxu0 %vm432_vm2, %v3486_v17 }
 0x751   :  { %v3439_v48 = vadd.f32 %v6038_v63, %v3425_v45  ;;  %v3470_v63 = vld [vmem:[#allocation2 + $0x140] ss:$2 sm:$0xff] }
 0x753   :  { %v3449_v32 = vmul.f32 0.01, %v3439_v48 }
 0x755   :  { %v3459_v0 = vmax.f32 %v3439_v48, %v3449_v32 }
 0x756   :  { %v3591_v41 = vld [vmem:[#allocation2 + $0x172] ss:$2 sm:$0xff]  ;;  %v3654_v8 = vld [vmem:[#allocation2 + $0x173] ss:$2 sm:$0xff] }
 0x757   :  { %3469 = vst.msk [vmem:[#allocation2 + $0x188] sm:$0x3f] %vm1384_vm4, %v3459_v0  ;;  %4551 = vmatmul.msk.f32.gmra.mxu2 %vm432_vm2, %v3591_v41  ;;  %4556 = vmatmul.msk.f32.gmra.mxu3 %vm432_vm2, %v3654_v8 }
 0x75e   :  { %v3487_v37 = vld [vmem:[#allocation2 + $0x181] ss:$2 sm:$0x3f]  ;;  %v3592_v9 = vld [vmem:[#allocation2 + $0x182] ss:$2 sm:$0x3f] }
 0x75f   :  { %4542 = vmatmul.msk.f32.gmra.mxu0 %vm432_vm2, %v3487_v37  ;;  %4552 = vmatmul.msk.f32.gmra.mxu2 %vm432_vm2, %v3592_v9  ;;  %v3655_v52 = vld [vmem:[#allocation2 + $0x183] ss:$2 sm:$0x3f]  ;;  %v3476_v19 = vld [vmem:[#allocation2 + $0x180] ss:$2 sm:$0x3f] }
 0x760   :  { %4557 = vmatmul.msk.f32.gmra.mxu3 %vm432_vm2, %v3655_v52 }
 0x767   :  { %4543 = vmatmul.msk.f32.vlgmr.msra.gmra.mxu0 %vm432_vm2, %v3470_v63 }
 0x768   :  { %3806 = vmatpush.msra.mxu0 %v3742_v39  ;;  %v3929_v39 = vld [vmem:[%s6393_s9 + $0x10] sm:$0xff] }
 0x76a   :  { %3807 = vmatpush.msra.mxu0 %v3741_v23 }
 0x76c   :  { %3808 = vmatpush.msra.mxu0 %v3740_v49  ;;  %v3928_v49 = vld [vmem:[%s6393_s9 + $0x8] sm:$0xff] }
 0x76e   :  { %3809 = vmatpush.msra.mxu0 %v3739_v56 }
 0x76f   :  { %4544 = vmatmul.msk.f32.gmra.mxu0 %vm432_vm2, %v3472_v59 }
 0x777   :  { %4545 = vmatmul.msk.f32.gmra.mxu0 %vm432_vm2, %v3473_v15 }
 0x77f   :  { %4546 = vmatmul.msk.f32.gmra.mxu0 %vm432_vm2, %v3475_v22 }
 0x787   :  { %4547 = vmatmul.msk.f32.gmra.mxu0 %vm432_vm2, %v3476_v19 }
 0x79c   :  { %v3524_v30 = vpop.f32.mrf.mxu0 }
 0x7aa   :  { %v3629_v16 = vpop.f32.mrf.mxu2  ;;  %v3692_v18 = vpop.f32.mrf.mxu3 }
 0x7ac   :  { %v3527_v53 = vpop.f32.mrf.mxu0 }
 0x7ba   :  { %v3632_v10 = vpop.f32.mrf.mxu2  ;;  %v3695_v36 = vpop.f32.mrf.mxu3 }
 0x7bc   :  { %v3530_v27 = vpop.f32.mrf.mxu0 }
 0x7ca   :  { %v3635_v54 = vpop.f32.mrf.mxu2  ;;  %v3698_v12 = vpop.f32.mrf.mxu3 }
 0x7cc   :  { %v3533_v3 = vpop.f32.mrf.mxu0 }
 0x7da   :  { %v3638_v57 = vpop.f32.mrf.mxu2  ;;  %v3701_v48 = vpop.f32.mrf.mxu3 }
 0x7dc   :  { %v6129_v40 = vpop.f32.mrf.mxu0 }
 0x7e2   :  { %v3641_v59 = vpop.f32.mrf.mxu2 }
 0x7e3   :  { %v3704_v19 = vpop.f32.mrf.mxu3 }
 0x7e4   :  { %v3571_v34 = vpop.f32.mrf.mxu0 }
 0x7e5   :  { %v3572_v50 = vadd.f32 %v3571_v34, %v3524_v30 }
 0x7e7   :  { %v3644_v11 = vadd.f32 %v3629_v16, %v3572_v50 }
 0x7e9   :  { %v3707_v26 = vadd.f32 %v3692_v18, %v3644_v11  ;;  %v3935_v11 = vld [vmem:[%s6393_s9 + $0x38] sm:$0xff] }
 0x7eb   :  { %v3716_v7 = vadd.f32 %v6152_v51, %v3707_v26 }
 0x7ec   :  { %v3574_v44 = vpop.f32.mrf.mxu0 }
 0x7ed   :  { %v3721_v62 = vmul.f32 0.01, %v3716_v7  ;;  %v3575_v2 = vadd.f32 %v3574_v44, %v3527_v53  ;;  %v3932_v44 = vld [vmem:[%s6393_s9 + $0x20] sm:$0xff] }
 0x7ef   :  { %v3726_v31 = vmax.f32 %v3716_v7, %v3721_v62  ;;  %v3645_v58 = vadd.f32 %v3632_v10, %v3575_v2  ;;  %v4014_v7 = vld [vmem:[%s6393_s9 + $0x70] sm:$0xff]  ;;  %v3984_v10 = vld [vmem:[%s6393_s9 + $0x48] sm:$0xff]  ;;  %v3930_v2 = vld [vmem:[%s6393_s9 + $0x18] sm:$0xff] }
 0x7f0   :  { %4032 = vmatpush.msra.mxu3 %v4014_v7  ;;  %v4013_v62 = vld [vmem:[%s6393_s9 + $0x68] sm:$0xff] }
 0x7f1   :  { %3731 = vst.msk [vmem:[#allocation2 + $0x140] sm:$0xff] %vm432_vm2, %v3726_v31  ;;  %v3708_v14 = vadd.f32 %v3695_v36, %v3645_v58  ;;  %v3983_v36 = vld [vmem:[%s6393_s9 + $0x40] sm:$0xff] }
 0x7f2   :  { %v4012_v31 = vld [vmem:[%s6393_s9 + $0x60] sm:$0xff]  ;;  %4033 = vmatpush.msra.mxu3 %v4013_v62 }
 0x7f3   :  { %v3717_v61 = vadd.f32 %v6152_v51, %v3708_v14 }
 0x7f4   :  { %v3577_v5 = vpop.f32.mrf.mxu0  ;;  %4034 = vmatpush.msra.mxu3 %v4012_v31 }
 0x7f5   :  { %v3722_v6 = vmul.f32 0.01, %v3717_v61  ;;  %v3578_v24 = vadd.f32 %v3577_v5, %v3530_v27  ;;  %v4587_v5 = vld [vmem:[%s6392_s8] ss:$0 sm:$0xff] }
 0x7f7   :  { %v3727_v13 = vmax.f32 %v3717_v61, %v3722_v6  ;;  %v3646_v25 = vadd.f32 %v3635_v54, %v3578_v24  ;;  %v3927_v6 = vld [vmem:[%s6393_s9] sm:$0xff] }
 0x7f9   :  { %3732 = vst.msk [vmem:[#allocation2 + $0x148] sm:$0xff] %vm432_vm2, %v3727_v13  ;;  %v3709_v33 = vadd.f32 %v3698_v12, %v3646_v25 }
 0x7fb   :  { %v3718_v46 = vadd.f32 %v6152_v51, %v3709_v33 }
 0x7fc   :  { %v3580_v29 = vpop.f32.mrf.mxu0 }
 0x7fd   :  { %v3723_v17 = vmul.f32 0.01, %v3718_v46  ;;  %v3581_v45 = vadd.f32 %v3580_v29, %v3533_v3 }
 0x7ff   :  { %v3728_v32 = vmax.f32 %v3718_v46, %v3723_v17  ;;  %v3647_v0 = vadd.f32 %v3638_v57, %v3581_v45 }
 0x800   :  { %v3743_v41 = vld [vmem:[#allocation2 + $0x141] ss:$2 sm:$0xff]  ;;  %v3736_v28 = vld [vmem:[#allocation2 + $0x140] ss:$2 sm:$0xff] }
 0x801   :  { %3733 = vst.msk [vmem:[#allocation2 + $0x150] sm:$0xff] %vm432_vm2, %v3728_v32  ;;  %v3710_v8 = vadd.f32 %v3701_v48, %v3647_v0  ;;  %4558 = vmatmul.msk.f32.vlgmr.msrb.gmra.mxu0 %vm432_vm2, %v3743_v41 }
 0x802   :  { %3951 = vmatpush.msrb.mxu0 %v3935_v11 }
 0x803   :  { %v3719_v37 = vadd.f32 %v6152_v51, %v3710_v8 }
 0x804   :  { %v3583_v9 = vpop.f32.mrf.mxu0  ;;  %3952 = vmatpush.msrb.mxu0 %v3934_v60 }
 0x805   :  { %v3724_v52 = vmul.f32 0.01, %v3719_v37  ;;  %v3584_v63 = vadd.f32 %v3583_v9, %v6129_v40 }
 0x806   :  { %3953 = vmatpush.msrb.mxu0 %v3933_v42 }
 0x807   :  { %v3729_v15 = vmax.f32 %v3719_v37, %v3724_v52  ;;  %v3648_v22 = vadd.f32 %v3641_v59, %v3584_v63 }
 0x808   :  { %v3820_v30 = vld [vmem:[#allocation2 + $0x142] ss:$2 sm:$0xff]  ;;  %v3865_v55 = vld [vmem:[#allocation2 + $0x143] ss:$2 sm:$0xff]  ;;  %3954 = vmatpush.msrb.mxu0 %v3932_v44 }
 0x809   :  { %3734 = vst.msk [vmem:[#allocation2 + $0x158] sm:$0xff] %vm432_vm2, %v3729_v15  ;;  %v3711_v53 = vadd.f32 %v3704_v19, %v3648_v22  ;;  %4564 = vmatmul.msk.f32.vlgmr.msra.gmra.mxu2 %vm432_vm2, %v3820_v30  ;;  %4567 = vmatmul.msk.f32.vlgmr.msrb.gmra.mxu3 %vm432_vm2, %v3865_v55 }
 0x80b   :  { %v3720_v27 = vadd.f32 %v6152_v51, %v3711_v53  ;;  %v3986_v51 = vld [vmem:[%s6393_s9 + $0x58] sm:$0xff] }
 0x80c   :  { %4002 = vmatpush.msrb.mxu2 %v3986_v51  ;;  %v4048_v53 = vld [vmem:[%s6395_s11 + $0x18] sm:$0xff] }
 0x80d   :  { %v3725_v47 = vmul.f32 0.01, %v3720_v27 }
 0x80e   :  { %4003 = vmatpush.msrb.mxu2 %v3985_v4 }
 0x80f   :  { %v3730_v3 = vmax.f32 %v3720_v27, %v3725_v47  ;;  %v4047_v27 = vld [vmem:[%s6395_s11 + $0x10] sm:$0xff]  ;;  %v4046_v47 = vld [vmem:[%s6395_s11 + $0x8] sm:$0xff] }
 0x810   :  { %v3744_v20 = vld [vmem:[#allocation2 + $0x151] ss:$2 sm:$0xff]  ;;  %v3737_v50 = vld [vmem:[#allocation2 + $0x150] ss:$2 sm:$0xff]  ;;  %4004 = vmatpush.msrb.mxu2 %v3984_v10 }
 0x811   :  { %3735 = vst.msk [vmem:[#allocation2 + $0x160] sm:$0x3f] %vm1384_vm4, %v3730_v3  ;;  %4559 = vmatmul.msk.f32.gmra.mxu0 %vm432_vm2, %v3744_v20  ;;  %v4045_v3 = vld [vmem:[%s6395_s11] sm:$0xff]  ;;  %s4602_s11 = smov 127  }
 0x812   :  { %4005 = vmatpush.msrb.mxu2 %v3983_v36 }
 0x818   :  { %v3745_v40 = vld [vmem:[#allocation2 + $0x161] ss:$2 sm:$0x3]  ;;  %v3821_v21 = vld [vmem:[#allocation2 + $0x152] ss:$2 sm:$0xff] }
 0x819   :  { %4560 = vmatmul.msk.f32.gmra.mxu0 %vm432_vm2, %v3745_v40  ;;  %4565 = vmatmul.msk.f32.gmra.mxu2 %vm432_vm2, %v3821_v21  ;;  %v3866_v1 = vld [vmem:[#allocation2 + $0x153] ss:$2 sm:$0xff]  ;;  %v3822_v16 = vld [vmem:[#allocation2 + $0x162] ss:$2 sm:$0x3]  ;;  %v6271_v40 = vpop.trf.xlu0 }
 0x81a   :  { %4568 = vmatmul.msk.f32.gmra.mxu3 %vm432_vm2, %v3866_v1  ;;  %v3867_v34 = vld [vmem:[#allocation2 + $0x163] ss:$2 sm:$0x3]  ;;  %v3738_v43 = vld [vmem:[#allocation2 + $0x160] ss:$2 sm:$0x3]  ;;  %2060 = vrot.lane.b32.xlu0 %v6271_v40, %s4602_s11  ;;  %v2025_v51 = vmul.f32 %v6271_v40, %v6271_v40 }
 0x81c   :  { %v2030_v38 = vsel %vm2029_vm6, %v2025_v51, 0.0 }
 0x821   :  { %4561 = vmatmul.msk.f32.vlgmr.msra.gmra.mxu0 %vm432_vm2, %v3736_v28  ;;  %4566 = vmatmul.msk.f32.gmra.mxu2 %vm432_vm2, %v3822_v16  ;;  %v6273_v1 = vpop.trf.xlu0 }
 0x822   :  { %4569 = vmatmul.msk.f32.gmra.mxu3 %vm432_vm2, %v3867_v34  ;;  %3974 = vmatpush.msra.mxu0 %v3930_v2  ;;  %v2026_v60 = vmul.f32 %v6273_v1, %v6273_v1 }
 0x824   :  { %3975 = vmatpush.msra.mxu0 %v3929_v39 }
 0x826   :  { %3976 = vmatpush.msra.mxu0 %v3928_v49 }
 0x828   :  { %3977 = vmatpush.msra.mxu0 %v3927_v6  ;;  %v4589_v6 = vld [vmem:[%s6396_s12] ss:$0 sm:$0xff]  ;;  %s4603_s12 = smov 7  }
 0x829   :  { %4562 = vmatmul.msk.f32.gmra.mxu0 %vm432_vm2, %v3737_v50  ;;  %v4588_v50 = vld [vmem:[%s6394_s10] ss:$0 sm:$0xff]  ;;  %v6279_v11 = vpop.trf.xlu0 }
 0x82a   :  { %2064 = vrot.lane.b32.xlu2 %v6279_v11, %s4602_s11  ;;  %v2027_v42 = vmul.f32 %v6279_v11, %v6279_v11 }
 0x82c   :  { %v2033_v7 = vsel %vm2029_vm6, %v2027_v42, 0.0 }
 0x831   :  { %4563 = vmatmul.msk.f32.gmra.mxu0 %vm432_vm2, %v3738_v43  ;;  %v6294_v44 = vpop.trf.xlu0 }
 0x832   :  { %v2028_v62 = vmul.f32 %v6294_v44, %v6294_v44 }
 0x834   :  { %v2035_v2 = vsel %vm2029_vm6, %v2028_v62, 0.0 }
 0x87e   :  { %v3776_v35 = vpop.f32.mrf.mxu0 }
 0x88c   :  { %v3853_v58 = vpop.f32.mrf.mxu2  ;;  %v3898_v61 = vpop.f32.mrf.mxu3 }
 0x88e   :  { %v3779_v18 = vpop.f32.mrf.mxu0 }
 0x896   :  { %v3782_v26 = vpop.f32.mrf.mxu0 }
 0x89c   :  { %v3856_v13 = vpop.f32.mrf.mxu2 }
 0x89d   :  { %v3901_v46 = vpop.f32.mrf.mxu3 }
 0x89e   :  { %v3811_v14 = vpop.f32.mrf.mxu0 }
 0x89f   :  { %v3812_v23 = vadd.f32 %v3811_v14, %v3776_v35 }
 0x8a1   :  { %v3862_v54 = vadd.f32 %v3853_v58, %v3812_v23 }
 0x8a3   :  { %v3907_v24 = vadd.f32 %v3898_v61, %v3862_v54 }
 0x8a4   :  { %v3859_v41 = vpop.f32.mrf.mxu2 }
 0x8a5   :  { %v3914_v12 = vadd.f32 %v4587_v5, %v3907_v24  ;;  %v3904_v9 = vpop.f32.mrf.mxu3 }
 0x8a6   :  { %v3814_v25 = vpop.f32.mrf.mxu0 }
 0x8a7   :  { %v3917_v33 = vmul.f32 0.01, %v3914_v12  ;;  %v3815_v56 = vadd.f32 %v3814_v25, %v3779_v18 }
 0x8a9   :  { %v3920_v57 = vmax.f32 %v3914_v12, %v3917_v33  ;;  %v3863_v29 = vadd.f32 %v3856_v13, %v3815_v56 }
 0x8ab   :  { %3923 = vst.msk [vmem:[#allocation2 + $0x140] sm:$0xff] %vm432_vm2, %v3920_v57  ;;  %v3908_v17 = vadd.f32 %v3901_v46, %v3863_v29 }
 0x8ad   :  { %v3915_v45 = vadd.f32 %v4587_v5, %v3908_v17 }
 0x8ae   :  { %v3817_v48 = vpop.f32.mrf.mxu0 }
 0x8af   :  { %v3918_v32 = vmul.f32 0.01, %v3915_v45  ;;  %v3818_v0 = vadd.f32 %v3817_v48, %v3782_v26  ;;  %v2031_v26 = vsel %vm2029_vm6, %v2026_v60, 0.0 }
 0x8b0   :  { %v2032_v4 = vadd.f32 %v2031_v26, %v2030_v38 }
 0x8b1   :  { %v3921_v8 = vmax.f32 %v3915_v45, %v3918_v32  ;;  %v3864_v37 = vadd.f32 %v3859_v41, %v3818_v0 }
 0x8b2   :  { %v2034_v10 = vadd.f32 %v2033_v7, %v2032_v4 }
 0x8b3   :  { %3924 = vst.msk [vmem:[#allocation2 + $0x148] sm:$0xff] %vm432_vm2, %v3921_v8  ;;  %v3909_v52 = vadd.f32 %v3904_v9, %v3864_v37 }
 0x8b4   :  { %v2036_v36 = vadd.f32 %v2035_v2, %v2034_v10 }
 0x8b5   :  { %v3916_v63 = vadd.f32 %v4587_v5, %v3909_v52 }
 0x8b6   :  { %v2037_v31 = vrot.slane %v2036_v36, 4 }
 0x8b7   :  { %v3919_v59 = vmul.f32 0.01, %v3916_v63 }
 0x8b8   :  { %v2038_v58 = vadd.f32 %v2037_v31, %v2036_v36 }
 0x8b9   :  { %v3922_v15 = vmax.f32 %v3916_v63, %v3919_v59 }
 0x8ba   :  { %v3931_v22 = vld [vmem:[#allocation2 + $0x141] ss:$2 sm:$0xff]  ;;  %v3926_v19 = vld [vmem:[#allocation2 + $0x140] ss:$2 sm:$0xff]  ;;  %v2039_v14 = vrot.slane %v2038_v58, 2 }
 0x8bb   :  { %3925 = vst.msk [vmem:[#allocation2 + $0x150] sm:$0x3] %vm1841_vm5, %v3922_v15  ;;  %4570 = vmatmul.msk.f32.vlgmr.msrb.gmra.mxu0 %vm432_vm2, %v3931_v22 }
 0x8bc   :  { %4068 = vmatpush.msrb.mxu0 %v4048_v53  ;;  %v2040_v39 = vadd.f32 %v2039_v14, %v2038_v58 }
 0x8be   :  { %4069 = vmatpush.msrb.mxu0 %v4047_v27  ;;  %v2041_v23 = vrot.slane %v2040_v39, 1 }
 0x8c0   :  { %4070 = vmatpush.msrb.mxu0 %v4046_v47  ;;  %v6299_v61 = vadd.f32 %v2041_v23, %v2040_v39 }
 0x8c2   :  { %v3982_v30 = vld [vmem:[#allocation2 + $0x142] ss:$2 sm:$0xff]  ;;  %v4011_v55 = vld [vmem:[#allocation2 + $0x143] ss:$2 sm:$0xff]  ;;  %4071 = vmatpush.msrb.mxu0 %v4045_v3  ;;  %4590 = vrsqrt.f32 %v6299_v61  ;;  %vm2050_vm7 = vcmp.eq.f32.partialorder %v6299_v61, inf  ;;  %v2053_v56 = vand.u32 2147483648, %v6299_v61 }
 0x8c3   :  { %4571 = vmatmul.msk.f32.vlgmr.msra.gmra.mxu0 %vm432_vm2, %v3926_v19  ;;  %4572 = vmatmul.msk.f32.vlgmr.msrb.gmra.mxu2 %vm432_vm2, %v3982_v30  ;;  %vm2052_vm8 = vcmp.eq.f32.partialorder %v6299_v61, 0.0 }
 0x8c4   :  { %4573 = vmatmul.msk.f32.vlgmr.msra.gmra.mxu3 %vm432_vm2, %v4011_v55 }
 0x8c8   :  { %v4591_v49 = vpop.eup %4590 }
 0x8c9   :  { %v2044_v54 = vmul.f32 %v4591_v49, %v6299_v61 }
 0x8cb   :  { %v2045_v5 = vmul.f32 %v4591_v49, %v2044_v54 }
 0x8cd   :  { %v2046_v24 = vmul.f32 0.5, %v2045_v5 }
 0x8cf   :  { %v2047_v12 = vsub.f32 1.5, %v2046_v24 }
 0x8d1   :  { %v2048_v33 = vmul.f32 %v4591_v49, %v2047_v12 }
 0x8d3   :  { %v2049_v46 = vmul.f32 %v2048_v33, %v6299_v61 }
 0x8d5   :  { %v2051_v57 = vsel %vm2050_vm7, %v6299_v61, %v2049_v46 }
 0x8d6   :  { %v2054_v29 = vsel %vm2052_vm8, %v2053_v56, %v2051_v57  ;;  %v2065_v57 = vpop.permute.xlu2 %2064  ;;  %vm4212_vm8 = vcmask 106496  }
 0x8d7   :  { %v6311_v17 = vmax.f32 %v2054_v29, 1e-08 }
 0x8d9   :  { %2091 = vrot.lane.b32.xlu2 %v6311_v17, %s4602_s11 }
 0x8e1   :  { %2066 = vrot.lane.b32.xlu2 %v6294_v44, %s4602_s11 }
 0x933   :  { %v2092_v29 = vpop.permute.xlu2 %2091 }
 0x938   :  { %v3956_v20 = vpop.f32.mrf.mxu0 }
 0x940   :  { %v3979_v21 = vpop.f32.mrf.mxu0 }
 0x941   :  { %v3980_v28 = vadd.f32 %v3979_v21, %v3956_v20  ;;  %v2110_v21 = vmul.f32 %v6311_v17, %v6311_v17 }
 0x943   :  { %vm2116_vm11 = vweird.f32 %v2110_v21  ;;  %v2122_v2 = vand.u32 2147483648, %v2110_v21  ;;  %v2120_v31 = vand.u32 2147483647, %v2110_v21 }
 0x945   :  { %v2123_v58 = vor.u32 1.1754944e-38, %v2122_v2  ;;  %vm2121_vm14 = vcmp.eq.f32.partialorder %v2120_v31, 8.507059e+37 }
 0x946   :  { %v4007_v16 = vpop.f32.mrf.mxu2 }
 0x947   :  { %v4010_v34 = vadd.f32 %v4007_v16, %v3980_v28  ;;  %v4036_v43 = vpop.f32.mrf.mxu3 }
 0x949   :  { %v4039_v35 = vadd.f32 %v4036_v43, %v4010_v34 }
 0x94b   :  { %v4044_v18 = vadd.f32 %v4588_v50, %v4039_v35 }
 0x94d   :  { %4574 = vmatmul.msk.f32.vlgmr.msrb.gmra.mxu0 %vm432_vm2, %v4044_v18 }
 0x9ca   :  { %v4073_v13 = vpop.f32.mrf.mxu0 }
 0x9cb   :  { %v4074_v25 = vadd.f32 %v4589_v6, %v4073_v13 }
 0x9cd   :  { %4076 = vxpose.xlu1.b32.start.end [1/1] (short) (narrow) %v4074_v25, 32 }
 0xa3f   :  { %2062 = vrot.lane.b32.xlu1 %v6273_v1, %s4602_s11 }
 0xa71   :  { %v6319_v45 = vpop.trf.xlu1 }
 0xa72   :  { %4142 = vrot.lane.b32.xlu2 %v6319_v45, %s4602_s11  ;;  %v4108_v41 = vmul.f32 %v6319_v45, %v6319_v45 }
 0xa74   :  { %v4112_v9 = vsel %vm2029_vm6, %v4108_v41, 0.0 }
 0xa79   :  { %v6323_v48 = vpop.trf.xlu1 }
 0xa7a   :  { %4144 = vrot.lane.b32.xlu2 %v6323_v48, %s4602_s11  ;;  %v4109_v0 = vmul.f32 %v6323_v48, %v6323_v48 }
 0xa7c   :  { %v4113_v37 = vsel %vm2029_vm6, %v4109_v0, 0.0  ;;  %v2067_v0 = vpop.permute.xlu2 %2066 }
 0xa7d   :  { %v4114_v63 = vadd.f32 %v4113_v37, %v4112_v9 }
 0xa81   :  { %v6327_v32 = vpop.trf.xlu1 }
 0xa82   :  { %4146 = vrot.lane.b32.xlu2 %v6327_v32, %s4602_s11  ;;  %v4110_v8 = vmul.f32 %v6327_v32, %v6327_v32 }
 0xa84   :  { %v4115_v52 = vsel %vm2029_vm6, %v4110_v8, 0.0  ;;  %v2061_v8 = vpop.permute.xlu0 %2060 }
 0xa85   :  { %v4116_v22 = vadd.f32 %v4115_v52, %v4114_v63  ;;  %v2072_v9 = vmul.f32 %v2061_v8, %v6271_v40  ;;  %v2074_v63 = vmul.f32 %v2065_v57, %v6279_v11 }
 0xa89   :  { %v6340_v59 = vpop.trf.xlu1 }
 0xa8a   :  { %v4111_v15 = vmul.f32 %v6340_v59, %v6340_v59 }
 0xa8c   :  { %v4117_v19 = vsel %vm2029_vm6, %v4111_v15, 0.0  ;;  %v2077_v15 = vsel %vm2076_vm3, %v2072_v9, 0.0 }
 0xa8d   :  { %v4118_v30 = vadd.f32 %v4117_v19, %v4116_v22  ;;  %v2094_v19 = vmul.f32 %v2092_v29, %v6311_v17 }
 0xa8f   :  { %v4119_v55 = vrot.slane %v4118_v30, 4  ;;  %vm2100_vm4 = vweird.f32 %v2094_v19 }
 0xa91   :  { %v4120_v53 = vadd.f32 %v4119_v55, %v4118_v30  ;;  %v2080_v30 = vsel %vm2076_vm3, %v2074_v63, 0.0  ;;  %v2075_v55 = vmul.f32 %v2067_v0, %v6294_v44 }
 0xa93   :  { %v4121_v27 = vrot.slane %v4120_v53, 2 }
 0xa95   :  { %v4122_v47 = vadd.f32 %v4121_v27, %v4120_v53 }
 0xa97   :  { %v4123_v3 = vrot.slane %v4122_v47, 1 }
 0xa99   :  { %v4124_v20 = vadd.f32 %v4123_v3, %v4122_v47 }
 0xa9b   :  { %4592 = vrsqrt.f32 %v4124_v20  ;;  %vm4132_vm9 = vcmp.eq.f32.partialorder %v4124_v20, inf  ;;  %v4135_v38 = vand.u32 2147483648, %v4124_v20  ;;  %vm4134_vm10 = vcmp.eq.f32.partialorder %v4124_v20, 0.0 }
 0xa9c   :  { %4594 = vrcp.f32 %v2110_v21 }
 0xaa1   :  { %v4593_v28 = vpop.eup %4592 }
 0xaa2   :  { %v4126_v16 = vmul.f32 %v4593_v28, %v4124_v20  ;;  %v4595_v43 = vpop.eup %4594 }
 0xaa3   :  { %v2112_v51 = vmul.f32 %v4595_v43, %v2110_v21  ;;  %vm2117_vm12 = vweird.f32 %v4595_v43 }
 0xaa4   :  { %v4127_v34 = vmul.f32 %v4593_v28, %v4126_v16  ;;  %vm2118_vm13 = vmor %vm2116_vm11, %vm2117_vm12 }
 0xaa5   :  { %v2113_v42 = vsub.f32 1.0, %v2112_v51 }
 0xaa6   :  { %v4128_v50 = vmul.f32 0.5, %v4127_v34 }
 0xaa7   :  { %v2114_v62 = vmul.f32 %v4595_v43, %v2113_v42 }
 0xaa8   :  { %v4129_v35 = vsub.f32 1.5, %v4128_v50 }
 0xaa9   :  { %v2115_v36 = vadd.f32 %v4595_v43, %v2114_v62 }
 0xaaa   :  { %v4130_v18 = vmul.f32 %v4593_v28, %v4129_v35 }
 0xaab   :  { %v2119_v39 = vsel %vm2118_vm13, %v4595_v43, %v2115_v36 }
 0xaac   :  { %v4131_v60 = vmul.f32 %v4130_v18, %v4124_v20  ;;  %v2124_v49 = vsel %vm2121_vm14, %v2123_v58, %v2119_v39 }
 0xaad   :  { %v2125_v24 = vmul.f32 %v2124_v49, %v6299_v61 }
 0xaae   :  { %v4133_v26 = vsel %vm4132_vm9, %v4124_v20, %v4131_v60 }
 0xaaf   :  { %v4136_v4 = vsel %vm4134_vm10, %v4135_v38, %v4133_v26  ;;  %v2106_v38 = vand.u32 2147483648, %v2094_v19 }
 0xab0   :  { %v6347_v7 = vmax.f32 %v4136_v4, 1e-08 }
 0xab1   :  { %v2063_v41 = vpop.permute.xlu1 %2062  ;;  %v2107_v36 = vor.u32 1.1754944e-38, %v2106_v38 }
 0xab2   :  { %v4191_v10 = vmul.f32 %v6347_v7, %v6347_v7  ;;  %4172 = vrot.lane.b32.xlu2 %v6347_v7, %s4602_s11  ;;  %v2073_v37 = vmul.f32 %v2063_v41, %v6273_v1  ;;  %v2082_v1 = vsel %vm2076_vm3, %v2075_v55, 0.0 }
 0xab4   :  { %4596 = vrcp.f32 %v4191_v10  ;;  %v4203_v6 = vand.u32 2147483648, %v4191_v10  ;;  %v4201_v12 = vand.u32 2147483647, %v4191_v10  ;;  %vm4197_vm0 = vweird.f32 %v4191_v10 }
 0xab5   :  { %v2078_v52 = vsel %vm2076_vm3, %v2073_v37, 0.0  ;;  %4598 = vrcp.f32 %v2094_v19 }
 0xab6   :  { %v4204_v33 = vor.u32 1.1754944e-38, %v4203_v6  ;;  %vm4202_vm2 = vcmp.eq.f32.partialorder %v4201_v12, 8.507059e+37  ;;  %v2079_v22 = vadd.f32 %v2078_v52, %v2077_v15 }
 0xab8   :  { %v2081_v27 = vadd.f32 %v2080_v30, %v2079_v22 }
 0xaba   :  { %v4597_v14 = vpop.eup %4596  ;;  %4148 = vrot.lane.b32.xlu2 %v6340_v59, %s4602_s11  ;;  %v2083_v40 = vadd.f32 %v2082_v1, %v2081_v27 }
 0xabb   :  { %v4193_v23 = vmul.f32 %v4597_v14, %v4191_v10  ;;  %vm4198_vm15 = vweird.f32 %v4597_v14  ;;  %v4599_v47 = vpop.eup %4598 }
 0xabc   :  { %vm4199_vm1 = vmor %vm4197_vm0, %vm4198_vm15  ;;  %v2084_v3 = vrot.slane %v2083_v40, 4  ;;  %v2096_v21 = vmul.f32 %v4599_v47, %v2094_v19  ;;  %vm2101_vm5 = vweird.f32 %v4599_v47 }
 0xabd   :  { %v4194_v54 = vsub.f32 1.0, %v4193_v23  ;;  %vm2102_vm6 = vmor %vm2100_vm4, %vm2101_vm5 }
 0xabe   :  { %v2085_v11 = vadd.f32 %v2084_v3, %v2083_v40  ;;  %v2097_v28 = vsub.f32 1.0, %v2096_v21 }
 0xabf   :  { %v4195_v5 = vmul.f32 %v4597_v14, %v4194_v54 }
 0xac0   :  { %v2086_v16 = vrot.slane %v2085_v11, 2  ;;  %v2098_v43 = vmul.f32 %v4599_v47, %v2097_v28 }
 0xac1   :  { %v4196_v13 = vadd.f32 %v4597_v14, %v4195_v5 }
 0xac2   :  { %2127 = vrot.lane.b32.xlu2 %v2125_v24, %s4603_s12  ;;  %v2087_v18 = vadd.f32 %v2086_v16, %v2085_v11  ;;  %v2099_v60 = vadd.f32 %v4599_v47, %v2098_v43 }
 0xac3   :  { %v4200_v25 = vsel %vm4199_vm1, %v4597_v14, %v4196_v13 }
 0xac4   :  { %v4205_v56 = vsel %vm4202_vm2, %v4204_v33, %v4200_v25  ;;  %v2088_v4 = vrot.slane %v2087_v18, 1  ;;  %v2103_v58 = vsel %vm2102_vm6, %v4599_v47, %v2099_v60 }
 0xac5   :  { %v4206_v46 = vmul.f32 %v4205_v56, %v4124_v20 }
 0xac6   :  { %v2089_v14 = vadd.f32 %v2088_v4, %v2087_v18 }
 0xaca   :  { %4208 = vrot.lane.b32.xlu2 %v4206_v46, %s4603_s12 }
 0xacc   :  { %v4143_v61 = vpop.permute.xlu2 %4142 }
 0xacd   :  { %v4154_v44 = vmul.f32 %v4143_v61, %v6319_v45 }
 0xacf   :  { %v4158_v26 = vsel %vm2076_vm3, %v4154_v44, 0.0 }
 0xad4   :  { %v4145_v53 = vpop.permute.xlu2 %4144 }
 0xad5   :  { %v4155_v17 = vmul.f32 %v4145_v53, %v6323_v48  ;;  %v2104_v48 = vand.u32 2147483647, %v2094_v19 }
 0xad7   :  { %v4159_v51 = vsel %vm2076_vm3, %v4155_v17, 0.0  ;;  %vm2105_vm7 = vcmp.eq.f32.partialorder %v2104_v48, 8.507059e+37 }
 0xad8   :  { %v2108_v5 = vsel %vm2105_vm7, %v2107_v36, %v2103_v58 }
 0xad9   :  { %v2109_v6 = vmul.f32 %v2108_v5, %v2089_v14 }
 0xadc   :  { %v4147_v20 = vpop.permute.xlu2 %4146 }
 0xadd   :  { %v4156_v35 = vmul.f32 %v4147_v20, %v6327_v32 }
 0xadf   :  { %v4161_v42 = vsel %vm2076_vm3, %v4156_v35, 0.0 }
 0xb0c   :  { %v4173_v34 = vpop.permute.xlu2 %4172 }
 0xb0d   :  { %v4175_v50 = vmul.f32 %v4173_v34, %v6347_v7  ;;  %v4160_v7 = vadd.f32 %v4159_v51, %v4158_v26 }
 0xb0f   :  { %4600 = vrcp.f32 %v4175_v50  ;;  %v4162_v62 = vadd.f32 %v4161_v42, %v4160_v7  ;;  %v4187_v33 = vand.u32 2147483648, %v4175_v50  ;;  %vm4181_vm10 = vweird.f32 %v4175_v50 }
 0xb10   :  { %v4185_v46 = vand.u32 2147483647, %v4175_v50 }
 0xb11   :  { %v4188_v0 = vor.u32 1.1754944e-38, %v4187_v33 }
 0xb12   :  { %vm4186_vm12 = vcmp.eq.f32.partialorder %v4185_v46, 8.507059e+37 }
 0xb14   :  { %v4149_v10 = vpop.permute.xlu2 %4148 }
 0xb15   :  { %v4601_v45 = vpop.eup %4600  ;;  %v4157_v32 = vmul.f32 %v4149_v10, %v6340_v59 }
 0xb16   :  { %v4177_v2 = vmul.f32 %v4601_v45, %v4175_v50  ;;  %vm4182_vm9 = vweird.f32 %v4601_v45 }
 0xb17   :  { %v4163_v31 = vsel %vm2076_vm3, %v4157_v32, 0.0  ;;  %vm4183_vm11 = vmor %vm4181_vm10, %vm4182_vm9 }
 0xb18   :  { %v4178_v39 = vsub.f32 1.0, %v4177_v2  ;;  %v4164_v23 = vadd.f32 %v4163_v31, %v4162_v62 }
 0xb1a   :  { %v4179_v49 = vmul.f32 %v4601_v45, %v4178_v39  ;;  %v4165_v54 = vrot.slane %v4164_v23, 4 }
 0xb1c   :  { %v4166_v24 = vadd.f32 %v4165_v54, %v4164_v23  ;;  %v2128_v12 = vpop.permute.xlu2 %2127  ;;  %v4180_v25 = vadd.f32 %v4601_v45, %v4179_v49 }
 0xb1d   :  { %v2130_v13 = vsel %vm2076_vm3, %v2109_v6, %v2128_v12 }
 0xb1e   :  { %v4167_v59 = vrot.slane %v4166_v24, 2  ;;  %4213 = vst.msk [vmem:[%s6397_s13] sm:$0x1] %vm4212_vm8, %v2130_v13  ;;  %v4184_v29 = vsel %vm4183_vm11, %v4601_v45, %v4180_v25 }
 0xb1f   :  { %v4189_v8 = vsel %vm4186_vm12, %v4188_v0, %v4184_v29 }
 0xb20   :  { %v4168_v56 = vadd.f32 %v4167_v59, %v4166_v24 }
 0xb22   :  { %v4169_v57 = vrot.slane %v4168_v56, 1 }
 0xb24   :  { %v4170_v41 = vadd.f32 %v4169_v57, %v4168_v56  ;;  %v4209_v61 = vpop.permute.xlu2 %4208 }
 0xb26   :  { %v4190_v37 = vmul.f32 %v4189_v8, %v4170_v41 }
 0xb28   :  { %v4211_v9 = vsel %vm2076_vm3, %v4190_v37, %v4209_v61 }
 0xb29   :  { %4214 = vst.msk [vmem:[%s6397_s13 + $0x1] sm:$0x1] %vm4212_vm8, %v4211_v9 }

</bundles_post_ra>
